<compile_context>
chip_gen: v7x
topology: tpu7x:2x2x1
jax: 0.10.0
libtpu: 0.0.40
codegen_flags: <defaults>
</compile_context>

<pallas_src>
import functools

import jax
import jax.numpy as jnp
from jax.experimental import pallas as pl
from jax.experimental.pallas import tpu as pltpu

EPS = 1e-5
LANE = 128


def _round_up(x, m):
    return (x + m - 1) // m * m


def _cdiv(a, b):
    return -(-a // b)


def _vmem_limit_bytes():
    """3/4 of physical VMEM, capped at 96 MiB (fits v5e/v6e 128 MiB and v7x 64 MiB parts)."""
    cap = 64 * 1024 * 1024
    try:
        cap = int(getattr(pltpu.get_tpu_info(), "vmem_capacity_bytes", cap))
    except Exception:
        pass
    return min(96 * 1024 * 1024, (3 * cap) // 4)


def _pick_tile_oh(oh, ow, target_rows=512):
    """~target_rows output pixels per tile; split OH evenly so row padding is minimal."""
    t_max = max(1, min(oh, target_rows // max(ow, 1)))
    n_tiles = _cdiv(oh, t_max)
    return _cdiv(oh, n_tiles)


def _pick_tile_rows(m, lane_w, target_bytes=4 * 1024 * 1024):
    """Pass-2 row-block size: ~4 MiB per block (bf16 in + f32 out), multiple of 8."""
    per_row = max(1, lane_w * 6)
    t = min(m, max(8, target_bytes // per_row))
    if t >= m:
        return m
    return max(8, (t // 8) * 8)


def _conv_stats_kernel(x_ref, w_ref, o_ref, stats_ref, acc_ref, *,
                       kh_kw, tile_oh, ow, cin, cout, cout_p):
    """Direct conv for one (image, row-tile) + per-tile BN partial sums.

    x_ref     : (1, Hp, Wp, Cin)        bf16  padded image, VMEM-resident across row tiles
    w_ref     : (KH*KW, Cin, Cout_p)    bf16  one (Cin, Cout_p) slab per tap
    o_ref     : (1, tile_oh, OW, Cout)  bf16  conv output tile (unpadded channels)
    stats_ref : (1, 1, 2, Cout_p)       f32   per-tile [sum, sum-of-squares]
    acc_ref   : (tile_oh*OW, Cout_p)    f32   VMEM accumulator (avoids vreg spills)
    """
    kh, kw = kh_kw
    oh0 = pl.program_id(1) * tile_oh
    rows = tile_oh * ow

    first = True
    for i_kh in range(kh):
        for i_kw in range(kw):
            # stride == 1 path (see wrapper guard).
            patch = x_ref[0, pl.ds(oh0 + i_kh, tile_oh), pl.ds(i_kw, ow), :]
            patch = patch.reshape(rows, cin)                    # merge leading dims (cheap)
            contrib = jnp.dot(patch, w_ref[i_kh * kw + i_kw],
                              preferred_element_type=jnp.float32)
            if first:
                acc_ref[...] = contrib
                first = False
            else:
                acc_ref[...] += contrib

    acc = acc_ref[...]
    o_ref[...] = acc[:, :cout].reshape(1, tile_oh, ow, cout).astype(o_ref.dtype)
    stats_ref[0, 0] = jnp.concatenate(
        [jnp.sum(acc, axis=0, keepdims=True),
         jnp.sum(acc * acc, axis=0, keepdims=True)], axis=0)


def _bn_relu_kernel(y_ref, scale_ref, shift_ref, o_ref):
    """Lane-dense elementwise normalize + ReLU: out = max(y * scale + shift, 0)."""
    y = y_ref[...].astype(jnp.float32)
    o_ref[...] = jnp.maximum(y * scale_ref[...] + shift_ref[...], 0.0)


def conv_bn_relu(x_nchw, weight, bias, gamma, beta, *, stride, padding):
    """x_nchw: (N, Cin, H, W); weight: (Cout, Cin, KH, KW). Returns (N, Cout, OH, OW)."""
    del bias  # cancels exactly under training-mode (batch-statistic) BatchNorm2d
    if stride != 1:
        # TODO(synk): stride > 1 needs a strided/banded input fetch; not exercised here.
        raise NotImplementedError("Pallas ConvBnReLU currently supports stride=1 only")

    N, Cin, H, W = x_nchw.shape
    Cout, _, KH, KW = weight.shape
    OH = H + 2 * padding - KH + 1
    OW = W + 2 * padding - KW + 1
    Cout_p = _round_up(Cout, LANE)
    M_valid = N * OH * OW

    tile_oh = _pick_tile_oh(OH, OW)
    n_tiles = _cdiv(OH, tile_oh)
    OH_pad = n_tiles * tile_oh    # extra output rows see only zero-padded input -> exactly 0

    # NCHW -> NHWC at the module boundary; zero-pad spatially (+ extra bottom rows for the
    # row-tile padding); bf16 for the MXU stream.
    x_nhwc = jnp.transpose(x_nchw, (0, 2, 3, 1))
    Hp = OH_pad + KH - 1           # stride == 1
    Wp = W + 2 * padding
    xp = jnp.pad(x_nhwc, ((0, 0), (padding, Hp - H - padding),
                          (padding, padding), (0, 0))).astype(jnp.bfloat16)

    # (Cout, Cin, KH, KW) -> (KH*KW, Cin, Cout_p), channel-padded, bf16.
    w = jnp.transpose(weight, (2, 3, 1, 0)).reshape(KH * KW, Cin, Cout)
    w = jnp.pad(w, ((0, 0), (0, 0), (0, Cout_p - Cout))).astype(jnp.bfloat16)

    kernel1 = functools.partial(
        _conv_stats_kernel, kh_kw=(KH, KW), tile_oh=tile_oh, ow=OW,
        cin=Cin, cout=Cout, cout_p=Cout_p)

    vmem_limit = _vmem_limit_bytes()

    # ---- Pass 1: direct conv (MXU, VMEM accumulator) + per-tile BN partial stats ----
    conv_out, stats = pl.pallas_call(
        kernel1,
        out_shape=(
            jax.ShapeDtypeStruct((N, OH_pad, OW, Cout), jnp.bfloat16),
            jax.ShapeDtypeStruct((N, n_tiles, 2, Cout_p), jnp.float32),
        ),
        grid_spec=pltpu.PrefetchScalarGridSpec(
            num_scalar_prefetch=0,
            grid=(N, n_tiles),
            in_specs=[
                # Whole padded image; block index constant in t -> DMA'd once per image.
                pl.BlockSpec((1, Hp, Wp, Cin), lambda n, t: (n, 0, 0, 0)),
                # Full weight slab, resident across the grid (a few KB).
                pl.BlockSpec((KH * KW, Cin, Cout_p), lambda n, t: (0, 0, 0)),
            ],
            out_specs=(
                pl.BlockSpec((1, tile_oh, OW, Cout), lambda n, t: (n, t, 0, 0)),
                pl.BlockSpec((1, 1, 2, Cout_p), lambda n, t: (n, t, 0, 0)),
            ),
            scratch_shapes=[pltpu.VMEM((tile_oh * OW, Cout_p), jnp.float32)],
        ),
        compiler_params=pltpu.CompilerParams(
            dimension_semantics=("parallel", "parallel"),
            vmem_limit_bytes=vmem_limit),
    )(xp, w)

    # Tiny per-channel reduction + BN scale/shift folding (f32, biased var, guarded >= 0).
    per_ch = jnp.sum(stats, axis=(0, 1))[:, :Cout]            # (2, Cout)
    mean = per_ch[0] / M_valid
    var = jnp.maximum(per_ch[1] / M_valid - mean * mean, 0.0)
    inv = jax.lax.rsqrt(var + EPS)
    scale_c = gamma.astype(jnp.float32) * inv                 # (Cout,)
    shift_c = beta.astype(jnp.float32) - mean * scale_c       # (Cout,)

    # ---- Pass 2: lane-dense scale/shift + ReLU on the (N*OH_pad, OW*Cout) view ----
    L2 = OW * Cout
    M2 = N * OH_pad
    y2 = conv_out.reshape(M2, L2)                             # contiguous reshape (free)
    scale_row = jnp.tile(scale_c, OW).reshape(1, L2)
    shift_row = jnp.tile(shift_c, OW).reshape(1, L2)

    tile_r = _pick_tile_rows(M2, L2)
    out2 = pl.pallas_call(
        _bn_relu_kernel,
        out_shape=jax.ShapeDtypeStruct((M2, L2), jnp.float32),
        grid_spec=pltpu.PrefetchScalarGridSpec(
            num_scalar_prefetch=0,
            grid=(_cdiv(M2, tile_r),),
            in_specs=[
                pl.BlockSpec((tile_r, L2), lambda i: (i, 0)),
                pl.BlockSpec((1, L2), lambda i: (0, 0)),
                pl.BlockSpec((1, L2), lambda i: (0, 0)),
            ],
            out_specs=pl.BlockSpec((tile_r, L2), lambda i: (i, 0)),
        ),
        compiler_params=pltpu.CompilerParams(
            dimension_semantics=("parallel",),
            vmem_limit_bytes=vmem_limit),
    )(y2, scale_row, shift_row)

    # Drop row padding; NHWC -> NCHW at the module boundary to match PyTorch.
    # (Keep activations NHWC end-to-end across layers in a real model to avoid this.)
    out_nhwc = out2.reshape(N, OH_pad, OW, Cout)[:, :OH]
    return jnp.transpose(out_nhwc, (0, 3, 1, 2))


if __name__ == "__main__":
    # Small shapes consistent with the module.
    N, Cin, H, W = 2, 4, 16, 16
    Cout, KH, KW = 8, 3, 3
    stride, padding = 1, 1

    key = jax.random.PRNGKey(0)
    kx, kw_, kb = jax.random.split(key, 3)
    x = jax.random.normal(kx, (N, Cin, H, W), dtype=jnp.float32)
    # Deterministic synthetic parameters (not a checkpoint load).
    weight = 0.1 * jax.random.normal(kw_, (Cout, Cin, KH, KW), dtype=jnp.float32)
    bias = 0.05 * jax.random.normal(kb, (Cout,), dtype=jnp.float32)
    gamma = jnp.ones((Cout,), dtype=jnp.float32)   # BatchNorm2d default weight
    beta = jnp.zeros((Cout,), dtype=jnp.float32)   # BatchNorm2d default bias

    out = conv_bn_relu(x, weight, bias, gamma, beta, stride=stride, padding=padding)
    jax.block_until_ready(out)
    assert out.shape == (N, Cout, H, W)

    # Silent sanity check against a pure-JAX f32 reference (loose tol: bf16 conv stream).
    conv_ref = jax.lax.conv_general_dilated(
        x, weight, window_strides=(stride, stride),
        padding=[(padding, padding), (padding, padding)],
        dimension_numbers=("NCHW", "OIHW", "NCHW")) + bias.reshape(1, Cout, 1, 1)
    m_ref = conv_ref.mean(axis=(0, 2, 3), keepdims=True)
    v_ref = conv_ref.var(axis=(0, 2, 3), keepdims=True)
    ref = jnp.maximum((conv_ref - m_ref) / jnp.sqrt(v_ref + EPS)
                      * gamma.reshape(1, Cout, 1, 1) + beta.reshape(1, Cout, 1, 1), 0.0)
    assert float(jnp.max(jnp.abs(out - ref))) < 0.1

    print("KERNEL_OK")
</pallas_src>

<mosaic_0001>
module attributes {stable_mosaic.version = 11 : i64} {
  func.func @_conv_stats_kernel(%arg0: i32, %arg1: i32, %arg2: memref<1x18x18x4xbf16, #tpu.memory_space<vmem>>, %arg3: memref<9x4x128xbf16, #tpu.memory_space<vmem>>, %arg4: memref<1x16x16x8xbf16, #tpu.memory_space<vmem>>, %arg5: memref<1x1x2x128xf32, #tpu.memory_space<vmem>>, %arg6: memref<256x128xf32, #tpu.memory_space<vmem>>) attributes {dimension_semantics = [#tpu.dimension_semantics<parallel>, #tpu.dimension_semantics<parallel>], iteration_bounds = array<i64: 2, 1>, scalar_prefetch = 0 : i64, scratch_operands = 1 : i64, tpu.core_type = #tpu.core_type<tc>, window_params = [{transform_indices = @transform_0, window_bounds = array<i64: 1, 18, 18, 4>}, {pipeline_mode = #tpu.pipeline_mode<synchronous>, transform_indices = @transform_1, window_bounds = array<i64: 9, 4, 128>}, {transform_indices = @transform_2, window_bounds = array<i64: 1, 16, 16, 8>}, {transform_indices = @transform_3, window_bounds = array<i64: 1, 1, 2, 128>}]} {
    %c16_i32 = arith.constant 16 : i32
    %0 = arith.muli %arg1, %c16_i32 : i32
    %c0_i32 = arith.constant 0 : i32
    %1 = arith.addi %0, %c0_i32 : i32
    %c0 = arith.constant 0 : index
    %2 = arith.index_cast %1 : i32 to index
    %c0_0 = arith.constant 0 : index
    %c0_1 = arith.constant 0 : index
    %3 = vector.load %arg2[%c0, %2, %c0_0, %c0_1] : memref<1x18x18x4xbf16, #tpu.memory_space<vmem>>, vector<1x16x16x4xbf16>
    %4 = vector.shape_cast %3 : vector<1x16x16x4xbf16> to vector<16x16x4xbf16>
    %5 = vector.shape_cast %4 : vector<16x16x4xbf16> to vector<256x4xbf16>
    %c0_2 = arith.constant 0 : index
    %c0_3 = arith.constant 0 : index
    %c0_4 = arith.constant 0 : index
    %6 = vector.load %arg3[%c0_2, %c0_3, %c0_4] : memref<9x4x128xbf16, #tpu.memory_space<vmem>>, vector<1x4x128xbf16>
    %7 = vector.shape_cast %6 : vector<1x4x128xbf16> to vector<4x128xbf16>
    %cst = arith.constant dense<0.000000e+00> : vector<256x128xf32>
    %8 = tpu.matmul %5, %7, %cst {dimension_numbers = #tpu.dot_dimension_numbers<[1], [0], [0], [1], [0, 0, 1, 1], [], []>} : vector<256x4xbf16>, vector<4x128xbf16>, vector<256x128xf32> -> vector<256x128xf32>
    %c0_5 = arith.constant 0 : index
    %c0_6 = arith.constant 0 : index
    %9 = vector.load %arg6[%c0_5, %c0_6] : memref<256x128xf32, #tpu.memory_space<vmem>>, vector<256x128xf32>
    tpu.vector_store %arg6[%c0_5, %c0_6], %8 {strides = array<i32>} : memref<256x128xf32, #tpu.memory_space<vmem>>, vector<256x128xf32>,
    %c0_i32_7 = arith.constant 0 : i32
    %10 = arith.addi %0, %c0_i32_7 : i32
    %c0_8 = arith.constant 0 : index
    %11 = arith.index_cast %10 : i32 to index
    %c1 = arith.constant 1 : index
    %c0_9 = arith.constant 0 : index
    %12 = vector.load %arg2[%c0_8, %11, %c1, %c0_9] : memref<1x18x18x4xbf16, #tpu.memory_space<vmem>>, vector<1x16x16x4xbf16>
    %13 = vector.shape_cast %12 : vector<1x16x16x4xbf16> to vector<16x16x4xbf16>
    %14 = vector.shape_cast %13 : vector<16x16x4xbf16> to vector<256x4xbf16>
    %c1_10 = arith.constant 1 : index
    %c0_11 = arith.constant 0 : index
    %c0_12 = arith.constant 0 : index
    %15 = vector.load %arg3[%c1_10, %c0_11, %c0_12] : memref<9x4x128xbf16, #tpu.memory_space<vmem>>, vector<1x4x128xbf16>
    %16 = vector.shape_cast %15 : vector<1x4x128xbf16> to vector<4x128xbf16>
    %cst_13 = arith.constant dense<0.000000e+00> : vector<256x128xf32>
    %17 = tpu.matmul %14, %16, %cst_13 {dimension_numbers = #tpu.dot_dimension_numbers<[1], [0], [0], [1], [0, 0, 1, 1], [], []>} : vector<256x4xbf16>, vector<4x128xbf16>, vector<256x128xf32> -> vector<256x128xf32>
    %c0_14 = arith.constant 0 : index
    %c0_15 = arith.constant 0 : index
    %18 = vector.load %arg6[%c0_14, %c0_15] : memref<256x128xf32, #tpu.memory_space<vmem>>, vector<256x128xf32>
    %19 = arith.addf %18, %17 : vector<256x128xf32>
    %c0_16 = arith.constant 0 : index
    %c0_17 = arith.constant 0 : index
    %20 = vector.load %arg6[%c0_16, %c0_17] : memref<256x128xf32, #tpu.memory_space<vmem>>, vector<256x128xf32>
    tpu.vector_store %arg6[%c0_16, %c0_17], %19 {strides = array<i32>} : memref<256x128xf32, #tpu.memory_space<vmem>>, vector<256x128xf32>,
    %c0_i32_18 = arith.constant 0 : i32
    %21 = arith.addi %0, %c0_i32_18 : i32
    %c0_19 = arith.constant 0 : index
    %22 = arith.index_cast %21 : i32 to index
    %c2 = arith.constant 2 : index
    %c0_20 = arith.constant 0 : index
    %23 = vector.load %arg2[%c0_19, %22, %c2, %c0_20] : memref<1x18x18x4xbf16, #tpu.memory_space<vmem>>, vector<1x16x16x4xbf16>
    %24 = vector.shape_cast %23 : vector<1x16x16x4xbf16> to vector<16x16x4xbf16>
    %25 = vector.shape_cast %24 : vector<16x16x4xbf16> to vector<256x4xbf16>
    %c2_21 = arith.constant 2 : index
    %c0_22 = arith.constant 0 : index
    %c0_23 = arith.constant 0 : index
    %26 = vector.load %arg3[%c2_21, %c0_22, %c0_23] : memref<9x4x128xbf16, #tpu.memory_space<vmem>>, vector<1x4x128xbf16>
    %27 = vector.shape_cast %26 : vector<1x4x128xbf16> to vector<4x128xbf16>
    %cst_24 = arith.constant dense<0.000000e+00> : vector<256x128xf32>
    %28 = tpu.matmul %25, %27, %cst_24 {dimension_numbers = #tpu.dot_dimension_numbers<[1], [0], [0], [1], [0, 0, 1, 1], [], []>} : vector<256x4xbf16>, vector<4x128xbf16>, vector<256x128xf32> -> vector<256x128xf32>
    %c0_25 = arith.constant 0 : index
    %c0_26 = arith.constant 0 : index
    %29 = vector.load %arg6[%c0_25, %c0_26] : memref<256x128xf32, #tpu.memory_space<vmem>>, vector<256x128xf32>
    %30 = arith.addf %29, %28 : vector<256x128xf32>
    %c0_27 = arith.constant 0 : index
    %c0_28 = arith.constant 0 : index
    %31 = vector.load %arg6[%c0_27, %c0_28] : memref<256x128xf32, #tpu.memory_space<vmem>>, vector<256x128xf32>
    tpu.vector_store %arg6[%c0_27, %c0_28], %30 {strides = array<i32>} : memref<256x128xf32, #tpu.memory_space<vmem>>, vector<256x128xf32>,
    %c1_i32 = arith.constant 1 : i32
    %32 = arith.addi %0, %c1_i32 : i32
    %c0_29 = arith.constant 0 : index
    %33 = arith.index_cast %32 : i32 to index
    %c0_30 = arith.constant 0 : index
    %c0_31 = arith.constant 0 : index
    %34 = vector.load %arg2[%c0_29, %33, %c0_30, %c0_31] : memref<1x18x18x4xbf16, #tpu.memory_space<vmem>>, vector<1x16x16x4xbf16>
    %35 = vector.shape_cast %34 : vector<1x16x16x4xbf16> to vector<16x16x4xbf16>
    %36 = vector.shape_cast %35 : vector<16x16x4xbf16> to vector<256x4xbf16>
    %c3 = arith.constant 3 : index
    %c0_32 = arith.constant 0 : index
    %c0_33 = arith.constant 0 : index
    %37 = vector.load %arg3[%c3, %c0_32, %c0_33] : memref<9x4x128xbf16, #tpu.memory_space<vmem>>, vector<1x4x128xbf16>
    %38 = vector.shape_cast %37 : vector<1x4x128xbf16> to vector<4x128xbf16>
    %cst_34 = arith.constant dense<0.000000e+00> : vector<256x128xf32>
    %39 = tpu.matmul %36, %38, %cst_34 {dimension_numbers = #tpu.dot_dimension_numbers<[1], [0], [0], [1], [0, 0, 1, 1], [], []>} : vector<256x4xbf16>, vector<4x128xbf16>, vector<256x128xf32> -> vector<256x128xf32>
    %c0_35 = arith.constant 0 : index
    %c0_36 = arith.constant 0 : index
    %40 = vector.load %arg6[%c0_35, %c0_36] : memref<256x128xf32, #tpu.memory_space<vmem>>, vector<256x128xf32>
    %41 = arith.addf %40, %39 : vector<256x128xf32>
    %c0_37 = arith.constant 0 : index
    %c0_38 = arith.constant 0 : index
    %42 = vector.load %arg6[%c0_37, %c0_38] : memref<256x128xf32, #tpu.memory_space<vmem>>, vector<256x128xf32>
    tpu.vector_store %arg6[%c0_37, %c0_38], %41 {strides = array<i32>} : memref<256x128xf32, #tpu.memory_space<vmem>>, vector<256x128xf32>,
    %c1_i32_39 = arith.constant 1 : i32
    %43 = arith.addi %0, %c1_i32_39 : i32
    %c0_40 = arith.constant 0 : index
    %44 = arith.index_cast %43 : i32 to index
    %c1_41 = arith.constant 1 : index
    %c0_42 = arith.constant 0 : index
    %45 = vector.load %arg2[%c0_40, %44, %c1_41, %c0_42] : memref<1x18x18x4xbf16, #tpu.memory_space<vmem>>, vector<1x16x16x4xbf16>
    %46 = vector.shape_cast %45 : vector<1x16x16x4xbf16> to vector<16x16x4xbf16>
    %47 = vector.shape_cast %46 : vector<16x16x4xbf16> to vector<256x4xbf16>
    %c4 = arith.constant 4 : index
    %c0_43 = arith.constant 0 : index
    %c0_44 = arith.constant 0 : index
    %48 = vector.load %arg3[%c4, %c0_43, %c0_44] : memref<9x4x128xbf16, #tpu.memory_space<vmem>>, vector<1x4x128xbf16>
    %49 = vector.shape_cast %48 : vector<1x4x128xbf16> to vector<4x128xbf16>
    %cst_45 = arith.constant dense<0.000000e+00> : vector<256x128xf32>
    %50 = tpu.matmul %47, %49, %cst_45 {dimension_numbers = #tpu.dot_dimension_numbers<[1], [0], [0], [1], [0, 0, 1, 1], [], []>} : vector<256x4xbf16>, vector<4x128xbf16>, vector<256x128xf32> -> vector<256x128xf32>
    %c0_46 = arith.constant 0 : index
    %c0_47 = arith.constant 0 : index
    %51 = vector.load %arg6[%c0_46, %c0_47] : memref<256x128xf32, #tpu.memory_space<vmem>>, vector<256x128xf32>
    %52 = arith.addf %51, %50 : vector<256x128xf32>
    %c0_48 = arith.constant 0 : index
    %c0_49 = arith.constant 0 : index
    %53 = vector.load %arg6[%c0_48, %c0_49] : memref<256x128xf32, #tpu.memory_space<vmem>>, vector<256x128xf32>
    tpu.vector_store %arg6[%c0_48, %c0_49], %52 {strides = array<i32>} : memref<256x128xf32, #tpu.memory_space<vmem>>, vector<256x128xf32>,
    %c1_i32_50 = arith.constant 1 : i32
    %54 = arith.addi %0, %c1_i32_50 : i32
    %c0_51 = arith.constant 0 : index
    %55 = arith.index_cast %54 : i32 to index
    %c2_52 = arith.constant 2 : index
    %c0_53 = arith.constant 0 : index
    %56 = vector.load %arg2[%c0_51, %55, %c2_52, %c0_53] : memref<1x18x18x4xbf16, #tpu.memory_space<vmem>>, vector<1x16x16x4xbf16>
    %57 = vector.shape_cast %56 : vector<1x16x16x4xbf16> to vector<16x16x4xbf16>
    %58 = vector.shape_cast %57 : vector<16x16x4xbf16> to vector<256x4xbf16>
    %c5 = arith.constant 5 : index
    %c0_54 = arith.constant 0 : index
    %c0_55 = arith.constant 0 : index
    %59 = vector.load %arg3[%c5, %c0_54, %c0_55] : memref<9x4x128xbf16, #tpu.memory_space<vmem>>, vector<1x4x128xbf16>
    %60 = vector.shape_cast %59 : vector<1x4x128xbf16> to vector<4x128xbf16>
    %cst_56 = arith.constant dense<0.000000e+00> : vector<256x128xf32>
    %61 = tpu.matmul %58, %60, %cst_56 {dimension_numbers = #tpu.dot_dimension_numbers<[1], [0], [0], [1], [0, 0, 1, 1], [], []>} : vector<256x4xbf16>, vector<4x128xbf16>, vector<256x128xf32> -> vector<256x128xf32>
    %c0_57 = arith.constant 0 : index
    %c0_58 = arith.constant 0 : index
    %62 = vector.load %arg6[%c0_57, %c0_58] : memref<256x128xf32, #tpu.memory_space<vmem>>, vector<256x128xf32>
    %63 = arith.addf %62, %61 : vector<256x128xf32>
    %c0_59 = arith.constant 0 : index
    %c0_60 = arith.constant 0 : index
    %64 = vector.load %arg6[%c0_59, %c0_60] : memref<256x128xf32, #tpu.memory_space<vmem>>, vector<256x128xf32>
    tpu.vector_store %arg6[%c0_59, %c0_60], %63 {strides = array<i32>} : memref<256x128xf32, #tpu.memory_space<vmem>>, vector<256x128xf32>,
    %c2_i32 = arith.constant 2 : i32
    %65 = arith.addi %0, %c2_i32 : i32
    %c0_61 = arith.constant 0 : index
    %66 = arith.index_cast %65 : i32 to index
    %c0_62 = arith.constant 0 : index
    %c0_63 = arith.constant 0 : index
    %67 = vector.load %arg2[%c0_61, %66, %c0_62, %c0_63] : memref<1x18x18x4xbf16, #tpu.memory_space<vmem>>, vector<1x16x16x4xbf16>
    %68 = vector.shape_cast %67 : vector<1x16x16x4xbf16> to vector<16x16x4xbf16>
    %69 = vector.shape_cast %68 : vector<16x16x4xbf16> to vector<256x4xbf16>
    %c6 = arith.constant 6 : index
    %c0_64 = arith.constant 0 : index
    %c0_65 = arith.constant 0 : index
    %70 = vector.load %arg3[%c6, %c0_64, %c0_65] : memref<9x4x128xbf16, #tpu.memory_space<vmem>>, vector<1x4x128xbf16>
    %71 = vector.shape_cast %70 : vector<1x4x128xbf16> to vector<4x128xbf16>
    %cst_66 = arith.constant dense<0.000000e+00> : vector<256x128xf32>
    %72 = tpu.matmul %69, %71, %cst_66 {dimension_numbers = #tpu.dot_dimension_numbers<[1], [0], [0], [1], [0, 0, 1, 1], [], []>} : vector<256x4xbf16>, vector<4x128xbf16>, vector<256x128xf32> -> vector<256x128xf32>
    %c0_67 = arith.constant 0 : index
    %c0_68 = arith.constant 0 : index
    %73 = vector.load %arg6[%c0_67, %c0_68] : memref<256x128xf32, #tpu.memory_space<vmem>>, vector<256x128xf32>
    %74 = arith.addf %73, %72 : vector<256x128xf32>
    %c0_69 = arith.constant 0 : index
    %c0_70 = arith.constant 0 : index
    %75 = vector.load %arg6[%c0_69, %c0_70] : memref<256x128xf32, #tpu.memory_space<vmem>>, vector<256x128xf32>
    tpu.vector_store %arg6[%c0_69, %c0_70], %74 {strides = array<i32>} : memref<256x128xf32, #tpu.memory_space<vmem>>, vector<256x128xf32>,
    %c2_i32_71 = arith.constant 2 : i32
    %76 = arith.addi %0, %c2_i32_71 : i32
    %c0_72 = arith.constant 0 : index
    %77 = arith.index_cast %76 : i32 to index
    %c1_73 = arith.constant 1 : index
    %c0_74 = arith.constant 0 : index
    %78 = vector.load %arg2[%c0_72, %77, %c1_73, %c0_74] : memref<1x18x18x4xbf16, #tpu.memory_space<vmem>>, vector<1x16x16x4xbf16>
    %79 = vector.shape_cast %78 : vector<1x16x16x4xbf16> to vector<16x16x4xbf16>
    %80 = vector.shape_cast %79 : vector<16x16x4xbf16> to vector<256x4xbf16>
    %c7 = arith.constant 7 : index
    %c0_75 = arith.constant 0 : index
    %c0_76 = arith.constant 0 : index
    %81 = vector.load %arg3[%c7, %c0_75, %c0_76] : memref<9x4x128xbf16, #tpu.memory_space<vmem>>, vector<1x4x128xbf16>
    %82 = vector.shape_cast %81 : vector<1x4x128xbf16> to vector<4x128xbf16>
    %cst_77 = arith.constant dense<0.000000e+00> : vector<256x128xf32>
    %83 = tpu.matmul %80, %82, %cst_77 {dimension_numbers = #tpu.dot_dimension_numbers<[1], [0], [0], [1], [0, 0, 1, 1], [], []>} : vector<256x4xbf16>, vector<4x128xbf16>, vector<256x128xf32> -> vector<256x128xf32>
    %c0_78 = arith.constant 0 : index
    %c0_79 = arith.constant 0 : index
    %84 = vector.load %arg6[%c0_78, %c0_79] : memref<256x128xf32, #tpu.memory_space<vmem>>, vector<256x128xf32>
    %85 = arith.addf %84, %83 : vector<256x128xf32>
    %c0_80 = arith.constant 0 : index
    %c0_81 = arith.constant 0 : index
    %86 = vector.load %arg6[%c0_80, %c0_81] : memref<256x128xf32, #tpu.memory_space<vmem>>, vector<256x128xf32>
    tpu.vector_store %arg6[%c0_80, %c0_81], %85 {strides = array<i32>} : memref<256x128xf32, #tpu.memory_space<vmem>>, vector<256x128xf32>,
    %c2_i32_82 = arith.constant 2 : i32
    %87 = arith.addi %0, %c2_i32_82 : i32
    %c0_83 = arith.constant 0 : index
    %88 = arith.index_cast %87 : i32 to index
    %c2_84 = arith.constant 2 : index
    %c0_85 = arith.constant 0 : index
    %89 = vector.load %arg2[%c0_83, %88, %c2_84, %c0_85] : memref<1x18x18x4xbf16, #tpu.memory_space<vmem>>, vector<1x16x16x4xbf16>
    %90 = vector.shape_cast %89 : vector<1x16x16x4xbf16> to vector<16x16x4xbf16>
    %91 = vector.shape_cast %90 : vector<16x16x4xbf16> to vector<256x4xbf16>
    %c8 = arith.constant 8 : index
    %c0_86 = arith.constant 0 : index
    %c0_87 = arith.constant 0 : index
    %92 = vector.load %arg3[%c8, %c0_86, %c0_87] : memref<9x4x128xbf16, #tpu.memory_space<vmem>>, vector<1x4x128xbf16>
    %93 = vector.shape_cast %92 : vector<1x4x128xbf16> to vector<4x128xbf16>
    %cst_88 = arith.constant dense<0.000000e+00> : vector<256x128xf32>
    %94 = tpu.matmul %91, %93, %cst_88 {dimension_numbers = #tpu.dot_dimension_numbers<[1], [0], [0], [1], [0, 0, 1, 1], [], []>} : vector<256x4xbf16>, vector<4x128xbf16>, vector<256x128xf32> -> vector<256x128xf32>
    %c0_89 = arith.constant 0 : index
    %c0_90 = arith.constant 0 : index
    %95 = vector.load %arg6[%c0_89, %c0_90] : memref<256x128xf32, #tpu.memory_space<vmem>>, vector<256x128xf32>
    %96 = arith.addf %95, %94 : vector<256x128xf32>
    %c0_91 = arith.constant 0 : index
    %c0_92 = arith.constant 0 : index
    %97 = vector.load %arg6[%c0_91, %c0_92] : memref<256x128xf32, #tpu.memory_space<vmem>>, vector<256x128xf32>
    tpu.vector_store %arg6[%c0_91, %c0_92], %96 {strides = array<i32>} : memref<256x128xf32, #tpu.memory_space<vmem>>, vector<256x128xf32>,
    %c0_93 = arith.constant 0 : index
    %c0_94 = arith.constant 0 : index
    %98 = vector.load %arg6[%c0_93, %c0_94] : memref<256x128xf32, #tpu.memory_space<vmem>>, vector<256x128xf32>
    %99 = vector.extract_strided_slice %98 {offsets = [0, 0], sizes = [256, 8], strides = [1, 1]} : vector<256x128xf32> to vector<256x8xf32>
    %100 = vector.shape_cast %99 : vector<256x8xf32> to vector<1x16x16x8xf32>
    %101 = arith.truncf %100 : vector<1x16x16x8xf32> to vector<1x16x16x8xbf16>
    %c0_95 = arith.constant 0 : index
    %c0_96 = arith.constant 0 : index
    %c0_97 = arith.constant 0 : index
    %c0_98 = arith.constant 0 : index
    %102 = vector.load %arg4[%c0_95, %c0_96, %c0_97, %c0_98] : memref<1x16x16x8xbf16, #tpu.memory_space<vmem>>, vector<1x16x16x8xbf16>
    tpu.vector_store %arg4[%c0_95, %c0_96, %c0_97, %c0_98], %101 {strides = array<i32>} : memref<1x16x16x8xbf16, #tpu.memory_space<vmem>>, vector<1x16x16x8xbf16>,
    %cst_99 = arith.constant dense<0.000000e+00> : vector<128xf32>
    %103 = vector.multi_reduction <add>, %98, %cst_99 [0] : vector<256x128xf32> to vector<128xf32>
    %104 = vector.shape_cast %103 : vector<128xf32> to vector<1x128xf32>
    %105 = arith.mulf %98, %98 : vector<256x128xf32>
    %cst_100 = arith.constant dense<0.000000e+00> : vector<128xf32>
    %106 = vector.multi_reduction <add>, %105, %cst_100 [0] : vector<256x128xf32> to vector<128xf32>
    %107 = vector.shape_cast %106 : vector<128xf32> to vector<1x128xf32>
    %108 = tpu.concatenate %104, %107 in 0 : vector<1x128xf32>, vector<1x128xf32> -> vector<2x128xf32>
    %c0_101 = arith.constant 0 : index
    %c0_102 = arith.constant 0 : index
    %c0_103 = arith.constant 0 : index
    %c0_104 = arith.constant 0 : index
    %109 = vector.load %arg5[%c0_101, %c0_102, %c0_103, %c0_104] : memref<1x1x2x128xf32, #tpu.memory_space<vmem>>, vector<1x1x2x128xf32>
    %110 = vector.shape_cast %109 : vector<1x1x2x128xf32> to vector<2x128xf32>
    %111 = vector.shape_cast %108 : vector<2x128xf32> to vector<1x1x2x128xf32>
    tpu.vector_store %arg5[%c0_101, %c0_102, %c0_103, %c0_104], %111 {strides = array<i32>} : memref<1x1x2x128xf32, #tpu.memory_space<vmem>>, vector<1x1x2x128xf32>,
    return
  }
  func.func @transform_0(%arg0: i32, %arg1: i32) -> (i32, i32, i32, i32) {
    %c0_i32 = arith.constant 0 : i32
    %c0_i32_0 = arith.constant 0 : i32
    %c0_i32_1 = arith.constant 0 : i32
    %c0_i32_2 = arith.constant 0 : i32
    return %arg0, %c0_i32, %c0_i32_0, %c0_i32_1 : i32, i32, i32, i32
  }
  func.func @transform_1(%arg0: i32, %arg1: i32) -> (i32, i32, i32) {
    %c0_i32 = arith.constant 0 : i32
    %c0_i32_0 = arith.constant 0 : i32
    %c0_i32_1 = arith.constant 0 : i32
    %c0_i32_2 = arith.constant 0 : i32
    return %c0_i32, %c0_i32_0, %c0_i32_1 : i32, i32, i32
  }
  func.func @transform_2(%arg0: i32, %arg1: i32) -> (i32, i32, i32, i32) {
    %c0_i32 = arith.constant 0 : i32
    %c0_i32_0 = arith.constant 0 : i32
    %c0_i32_1 = arith.constant 0 : i32
    return %arg0, %arg1, %c0_i32, %c0_i32_0 : i32, i32, i32, i32
  }
  func.func @transform_3(%arg0: i32, %arg1: i32) -> (i32, i32, i32, i32) {
    %c0_i32 = arith.constant 0 : i32
    %c0_i32_0 = arith.constant 0 : i32
    %c0_i32_1 = arith.constant 0 : i32
    return %arg0, %arg1, %c0_i32, %c0_i32_0 : i32, i32, i32, i32
  }
}

</mosaic_0001>

<bundles_post_ra>
// kernel: tpu_custom_call.1
= control target key start
LH: loop header
LB: loop body
LE: loop exit
PB: predicated region body
PF: predicated region fallthrough
CT: control target
= control target key end

     0   :  { %9 = vsyncpa [#allocation4], 0  ;;  %s9018_s0 = inlined_call_operand.vmem [shape: bf16[2,18,18,4], index: 0, kind: input, shape index: {}]   ;;  %s9019_s1 = inlined_call_operand.vmem [shape: bf16[9,4,128], index: 1, kind: input, shape index: {}]   ;;  %s9020_s2 = inlined_call_operand.vmem [shape: bf16[2,16,16,8], index: 2, kind: output, shape index: {0}]   ;;  %s9021_s3 = inlined_call_operand.hbm [shape: f32[2,1,2,128], index: 3, kind: output, shape index: {1}]  }
   0x1   :  { %11 = vsyncpa [#allocation4 + $0x1], 0  ;;  %s7561_s12 = smov 0   ;;  %s7563_s13 = smov 0  }
   0x2   :  { %s7565_s14 = smov 0   ;;  %s7567_s15 = smov 0  }
   0x3   :  { %s7569_s16 = smov 0   ;;  %s7571_s17 = smov 0  }
   0x4 LB: > { %s5950_s18 = sadd.s32 4294967295, %s7538_s17   ;;  %s5951_s19 = sadd.s32 4294967294, %s7538_s17   ;;  %s7538_s17 = sphi %s7571_s17, %s17_s17   ;;  %s7534_s16 = sphi %s7569_s16, %s9032_s16   ;;  %s7530_s15 = sphi %s7567_s15, %s9031_s15   ;;  %s7526_s14 = sphi %s7565_s14, %s9030_s14   ;;  %s7522_s13 = sphi %s7563_s13, %s9029_s13   ;;  %s7518_s12 = sphi %s7561_s12, %s9028_s12  }
   0x5   : > { %s29_s20 = sadd.s32 1, %s7534_s16  ;;  %s113_s21 = sadd.s32 1, %s7526_s14 }
   0x6   : > { %p31_p0 = scmp.ge.s32.totalorder %s29_s20, 2  ;;  %p123_p1 = scmp.ne.s32.totalorder %s7526_s14, %s7522_s13 }
   0x7   : > { %p124_p2 = scmp.eq.s32.totalorder %s5950_s18, 1  ;;  %p129_p3 = scmp.ne.s32.totalorder %s7522_s13, %s7518_s12 }
   0x8   : > { %s9034_s20 = smov (%p31_p0, %s29_s20), 0  ;;  %p130_p5 = scmp.eq.s32.totalorder %s5951_s19, 1 }
   0x9   : > { %p7601_p4 = por %p124_p2, %p123_p1  ;;  %s108_s23 = ssub.s32 %s7534_s16, %s9034_s20 }
   0xa   : > { %p5954_p6 = scmp.ge.s32.totalorder %s7538_s17, 1  ;;  %p111_p7 = scmp.eq.s32.totalorder %s108_s23, 0 }
   0xb   : > { %p7608_p8 = por %p130_p5, %p129_p3  ;;  %p159_p9 = scmp.lt.s32.totalorder %s7538_s17, 3 }
   0xc   : > { %s7614_s25 = scalar_select %p111_p7, %s7526_s14, %s113_s21  }
   0xd   : > { %p160_p10 = pnand %p5954_p6, %p159_p9 }
   0xe   : > { %v246_v0 = vld [vmem:[%s9019_s1] sm:$0x3] (!%p160_p10)  ;;  %vm376_vm0 = vcmask (!%p160_p10), 1041408   ;;  %p193_p11 = scmp.lt.s32.totalorder (!%p160_p10), %s7530_s15, 1  ;;  %v6186_v2 = vld [vmem:[%s9019_s1 + $0x8] sm:$0x3] (!%p160_p10) }
   0xf   : > { %163 = sbr.rel (%p160_p10) target bundleno = 583 (0x247), region = 28  ;;  %7345 = vmatprep.subr.msk.bf16.mxu1 (!%p160_p10), %vm376_vm0, %v246_v0  ;;  %v378_v1 = vsel (!%p160_p10), %vm376_vm0, %v246_v0, 0  ;;  %v5991_v3 = vld [vmem:[%s9019_s1 + $0x2] sm:$0x3] (!%p160_p10)  ;;  %7349 = vmatprep.subr.msk.bf16.mxu0 (!%p160_p10), %vm376_vm0, %v6186_v2  ;;  %v7633_v4 = vsel (!%p160_p10), %vm376_vm0, %v6186_v2, 0  ;;  %vm327_vm1 = vcmask (!%p160_p10), 31744  }
  0x10   : > { %6782 = vmatpush3.bf16.msra.mxu1 (!%p160_p10), %v378_v1  ;;  %6918 = vmatpush3.bf16.msra.mxu0 (!%p160_p10), %v7633_v4  ;;  %v6283_v5 = vld [vmem:[%s9019_s1 + $0xa] sm:$0x3] (!%p160_p10)  ;;  %vm621_vm2 = vsmask.f32 (!%p160_p10), 3328  ;;  %vm622_vm3 = vsmask.f32 (!%p160_p10), 7440 }
  0x11   : > { %7346 = vmatprep.subr.msk.bf16.mxu1 (!%p160_p10), %vm376_vm0, %v5991_v3  ;;  %7351 = vmatprep.subr.msk.bf16.mxu0 (!%p160_p10), %vm376_vm0, %v6283_v5  ;;  %v7650_v6 = vld [vmem:[%s9019_s1 + $0xc] sm:$0x3] (!%p160_p10)  ;;  %v6040_v7 = vld [vmem:[%s9019_s1 + $0x4] sm:$0x3] (!%p160_p10)  ;;  %v7658_v8 = vld [vmem:[%s9019_s1 + $0xe] sm:$0x3] (!%p160_p10) }
  0x12   : > { %v1107_v10 = vsel (!%p160_p10), %vm376_vm0, %v5991_v3, 0  ;;  %v7664_v12 = vsel (!%p160_p10), %vm376_vm0, %v6283_v5, 0  ;;  %v7670_v14 = vsel (!%p160_p10), %vm376_vm0, %v7650_v6, 0  ;;  %v7674_v15 = vsel (!%p160_p10), %vm376_vm0, %v6040_v7, 0  ;;  %vm7692_vm4 = vmor (!%p160_p10), %vm621_vm2, %vm622_vm3  ;;  %s6592_s19 = sshll.u32 (!%p160_p10), %s7530_s15, 5 }
  0x13   : > { %v7678_v16 = vsel (!%p160_p10), %vm376_vm0, %v7658_v8, 0  ;;  %vm1462_vm5 = vcmask (!%p160_p10), 1042432   ;;  %vm1463_vm6 = vcmask (!%p160_p10), 1046532   ;;  %vm5659_vm8 = vcmask (!%p160_p10), 60416   ;;  %s8971_s28 = scalar_lea.hbm (!%p160_p10), %s9021_s3, %s6592_s19 }
  0x14   : > { %vm7767_vm7 = vmor (!%p160_p10), %vm1462_vm5, %vm1463_vm6  ;;  %vm5798_vm9 = vcmask (!%p160_p10), 1040384  }
  0x16   : > { %s7629_s5 = scalar_select %p193_p11, %s7530_s15, 1 }
  0x17   : > { %s7540_s15 = smov [#allocation3]  }
  0x18   : > { %s7355_s8 = smul.u32 216, %s7629_s5  ;;  %s7464_s4 = sshll.u32 %s7540_s15, 4  ;;  %s7465_s4 = int_to_ptr.vmem [resolvable:$false] %s7464_s4 }
  0x19   : > { %s7466_s6 = scalar_lea.vmem %s7465_s4, 64 }
  0x1a   : > { %s7645_s11 = scalar_lea.vmem %s9018_s0, %s7355_s8  ;;  %s6595_s8 = sshll.u32 %s7629_s5, 7 }
  0x1b   : > { %v7411_v9 = vld [vmem:[%s7645_s11] sm:$0xff]   ;;  %v7412_v11 = vld [vmem:[%s7645_s11 + $0xc] sm:$0xff]   ;;  %v7413_v13 = vld [vmem:[%s7645_s11 + $0x18] sm:$0xff]   ;;  %s190_s5 = sand.u32 1, %s7522_s13  }
  0x1c   : > { %6783 = vmatprep.mubr.msk.bf16.mxu1 %vm327_vm1, %v7411_v9  ;;  %v6138_v17 = vld [vmem:[%s7645_s11 + $0xc] sm:$0xf]  ;;  %v6139_v18 = vld [vmem:[%s7645_s11 + $0x10] sm:$0xf]  ;;  %v6140_v19 = vld [vmem:[%s7645_s11 + $0x14] sm:$0x1] }
  0x1d   : > { %6784 = vmatmul.mubr.msk.bf16.vlgmr.msra.gmra.mrb[0].mxu1 %vm327_vm1, %v7412_v11  ;;  %v7414_v20 = vld [vmem:[%s7645_s11 + $0x24] sm:$0xff]   ;;  %v2410_v21 = vshrl.u32 %v6138_v17, 16  ;;  %v2413_v22 = vshll.u32 %v6138_v17, 16  ;;  %v2419_v23 = vshll.u32 %v6139_v18, 16  ;;  %v2423_v24 = vshrl.u32 %v6139_v18, 16  ;;  %v7415_v42 = vld [vmem:[%s7645_s11 + $0x30] sm:$0xff]  }
  0x1e   : > { %6787 = vmatprep.mubr.msk.bf16.mxu1 %vm327_vm1, %v7413_v13  ;;  %6816 = vmatpush3.bf16.msra.mxu1 %v1107_v10  ;;  %v6141_v25 = vld [vmem:[%s7645_s11 + $0x18] sm:$0xf]  ;;  %v2429_v26 = vshll.u32 %v6140_v19, 16  ;;  %v6142_v27 = vld [vmem:[%s7645_s11 + $0x1c] sm:$0xf]  ;;  %s5955_s18 = sshll.u32 %s190_s5, 1 }
  0x1f   : > { %7347 = vmatprep.subr.msk.bf16.mxu1 %vm376_vm0, %v6040_v7  ;;  %v6143_v28 = vld [vmem:[%s7645_s11 + $0x20] sm:$0x1]  ;;  %v2434_v29 = vshrl.u32 %v6141_v25, 16  ;;  %v2412_v30 = vrot.slane %v2410_v21, 4  ;;  %v2415_v31 = vrot.slane %v2413_v22, 5  ;;  %v2421_v32 = vrot.slane %v2419_v23, 5 }
  0x20   : > { %v2425_v33 = vrot.slane %v2423_v24, 4  ;;  %v2431_v34 = vrot.slane %v2429_v26, 5  ;;  %v2437_v36 = vshll.u32 %v6141_v25, 16  ;;  %v2443_v37 = vshll.u32 %v6142_v27, 16  ;;  %v6144_v46 = vld [vmem:[%s7645_s11 + $0x24] sm:$0xf] }
  0x21   : > { %v2436_v35 = vrot.slane %v2434_v29, 4  ;;  %v2416_v38 = vor.u32 %v2415_v31, %v2412_v30  ;;  %v2447_v40 = vshrl.u32 %v6142_v27, 16  ;;  %v2453_v41 = vshll.u32 %v6143_v28, 16  ;;  %v6145_v51 = vld [vmem:[%s7645_s11 + $0x28] sm:$0xf]  ;;  %v7416_v60 = vld [vmem:[%s7645_s11 + $0x3c] sm:$0xff]  }
  0x22   : > { %v2426_v39 = vor.u32 %v2425_v33, %v2421_v32  ;;  %v2439_v44 = vrot.slane %v2437_v36, 5  ;;  %v2445_v45 = vrot.slane %v2443_v37, 5  ;;  %v6146_v53 = vld [vmem:[%s7645_s11 + $0x2c] sm:$0x1]  ;;  %v2458_v54 = vshrl.u32 %v6144_v46, 16  ;;  %s192_s21 = scalar_lea.vmem [#allocation3], %s5955_s18 }
  0x23   : > { %v2417_v47 = vrot.slane %v2416_v38, 4  ;;  %v2449_v49 = vrot.slane %v2447_v40, 4  ;;  %v2455_v50 = vrot.slane %v2453_v41, 5  ;;  %v2461_v55 = vshll.u32 %v6144_v46, 16  ;;  %v6147_v62 = vld [vmem:[%s7645_s11 + $0x30] sm:$0xf] }
  0x24   : > { %v2427_v48 = vrot.slane %v2426_v39, 4  ;;  %v2440_v52 = vor.u32 %v2439_v44, %v2436_v35  ;;  %v2467_v56 = vshll.u32 %v6145_v51, 16  ;;  %v2471_v61 = vshrl.u32 %v6145_v51, 16  ;;  %v6148_v63 = vld [vmem:[%s7645_s11 + $0x34] sm:$0xf]  ;;  %v7417_v7 = vld [vmem:[%s7645_s11 + $0x48] sm:$0xff]  }
  0x25   : > { %6788 = vmatmul.mubr.msk.bf16.gmra.mrb[4].mxu1 %vm327_vm1, %v7414_v20  ;;  %v2422_v57 = vsel %vm7692_vm4, %v2417_v47, %v2421_v32  ;;  %v2450_v59 = vor.u32 %v2449_v49, %v2445_v45  ;;  %v2460_v2 = vrot.slane %v2458_v54, 4  ;;  %v2463_v3 = vrot.slane %v2461_v55, 5  ;;  %v6149_v5 = vld [vmem:[%s7645_s11 + $0x38] sm:$0x1]  ;;  %v6150_v25 = vld [vmem:[%s7645_s11 + $0x3c] sm:$0xf] }
  0x26   : > { %6791 = vmatprep.mubr.msk.bf16.mxu1 %vm327_vm1, %v7415_v42  ;;  %v2432_v58 = vsel %vm7692_vm4, %v2427_v48, %v2431_v34  ;;  %v2441_v1 = vrot.slane %v2440_v52, 4  ;;  %v2469_v10 = vrot.slane %v2467_v56, 5  ;;  %v2473_v11 = vrot.slane %v2471_v61, 4  ;;  %v6151_v30 = vld [vmem:[%s7645_s11 + $0x40] sm:$0xf]  ;;  %v7418_v49 = vld [vmem:[%s7645_s11 + $0x54] sm:$0xff]  }
  0x27   : > { %v6187_v0 = vcombine.low %v2422_v57, %v2432_v58  ;;  %v2451_v9 = vrot.slane %v2450_v59, 4  ;;  %v2477_v13 = vshll.u32 %v6146_v53, 16  ;;  %v2464_v18 = vor.u32 %v2463_v3, %v2460_v2  ;;  %v6152_v37 = vld [vmem:[%s7645_s11 + $0x44] sm:$0x1]  ;;  %v6153_v40 = vld [vmem:[%s7645_s11 + $0x48] sm:$0xf] }
  0x28   : > { %v2446_v17 = vsel %vm7692_vm4, %v2441_v1, %v2445_v45  ;;  %v2482_v19 = vshrl.u32 %v6147_v62, 16  ;;  %v2485_v20 = vshll.u32 %v6147_v62, 16  ;;  %v2474_v22 = vor.u32 %v2473_v11, %v2469_v10  ;;  %v6154_v46 = vld [vmem:[%s7645_s11 + $0x4c] sm:$0xf]  ;;  %v6155_v52 = vld [vmem:[%s7645_s11 + $0x50] sm:$0x1] }
  0x29   : > { %6919 = vmatprep.mubr.msk.bf16.mxu0 %vm327_vm1, %v6187_v0  ;;  %v2456_v21 = vsel %vm7692_vm4, %v2451_v9, %v2455_v50  ;;  %v2479_v23 = vrot.slane %v2477_v13, 5  ;;  %v2491_v24 = vshll.u32 %v6148_v63, 16  ;;  %v2465_v27 = vrot.slane %v2464_v18, 4  ;;  %v7419_v56 = vld [vmem:[%s7645_s11 + $0x60] sm:$0xff]   ;;  %v6157_v13 = vld [vmem:[%s7645_s11 + $0x58] sm:$0xf] }
  0x2a   : > { %v6188_v26 = vcombine.low %v2446_v17, %v2456_v21  ;;  %v2484_v28 = vrot.slane %v2482_v19, 4  ;;  %v2487_v29 = vrot.slane %v2485_v20, 5  ;;  %v2475_v31 = vrot.slane %v2474_v22, 4  ;;  %v6158_v21 = vld [vmem:[%s7645_s11 + $0x5c] sm:$0x1]  ;;  %s5830_s23 = sshll.u32 %s192_s21, 4  ;;  %s8973_s23 = int_to_ptr.vmem [resolvable:$true] %s5830_s23 }
  0x2b   : > { %v2493_v32 = vrot.slane %v2491_v24, 5  ;;  %v2495_v33 = vshrl.u32 %v6148_v63, 16  ;;  %v2501_v34 = vshll.u32 %v6149_v5, 16  ;;  %v2470_v35 = vsel %vm7692_vm4, %v2465_v27, %v2469_v10  ;;  %v6156_v5 = vld [vmem:[%s7645_s11 + $0x54] sm:$0xf]  ;;  %s5812_s29 = scalar_lea.sflag [#allocation4], %s190_s5  ;;  %p7467_p1 = scmp.lt.s32.totalorder %s8973_s23, %s7465_s4 }
  0x2c   : > { %6920 = vmatmul.mubr.msk.bf16.vlgmr.msra.gmra.mrb[0].mxu0 %vm327_vm1, %v6188_v26  ;;  %v2488_v36 = vor.u32 %v2487_v29, %v2484_v28  ;;  %v2506_v38 = vshrl.u32 %v6150_v25, 16  ;;  %v2509_v39 = vshll.u32 %v6150_v25, 16  ;;  %v2480_v41 = vsel %vm7692_vm4, %v2475_v31, %v2479_v23  ;;  %v6159_v22 = vld [vmem:[%s7645_s11 + $0x60] sm:$0xf]  ;;  %v6160_v27 = vld [vmem:[%s7645_s11 + $0x64] sm:$0xf] }
  0x2d   : > { %6792 = vmatmul.mubr.msk.bf16.gmra.mrb[8].mxu1 %vm327_vm1, %v7416_v60  ;;  %6952 = vmatpush3.bf16.msra.mxu0 %v7664_v12  ;;  %v2497_v42 = vrot.slane %v2495_v33, 4  ;;  %v2503_v44 = vrot.slane %v2501_v34, 5  ;;  %v2515_v45 = vshll.u32 %v6151_v30, 16  ;;  %v6189_v47 = vcombine.low %v2470_v35, %v2480_v41  ;;  %s7460_s30 = scalar_lea.vmem %s8973_s23, 32 }
  0x2e   : > { %6795 = vmatprep.mubr.msk.bf16.mxu1 %vm327_vm1, %v7417_v7  ;;  %v2489_v48 = vrot.slane %v2488_v36, 4  ;;  %v2508_v50 = vrot.slane %v2506_v38, 4  ;;  %v2511_v51 = vrot.slane %v2509_v39, 5  ;;  %7352 = vmatprep.subr.msk.bf16.mxu0 %vm376_vm0, %v7650_v6  ;;  %v2519_v12 = vshrl.u32 %v6151_v30, 16  ;;  %v7420_v30 = vld [vmem:[%s7645_s11 + $0x6c] sm:$0xff]   ;;  %v7421_v38 = vld [vmem:[%s7645_s11 + $0x78] sm:$0xff]   ;;  %p7461_p12 = scmp.ne.s32.totalorder %s8973_s23, %s7460_s30  ;;  %p7468_p2 = scmp.lt.s32.totalorder %s7466_s6, %s7460_s30 }
  0x2f   : > { %v2498_v53 = vor.u32 %v2497_v42, %v2493_v32  ;;  %v2517_v54 = vrot.slane %v2515_v45, 5  ;;  %v2525_v55 = vshll.u32 %v6152_v37, 16  ;;  %6923 = vmatprep.mubr.msk.bf16.mxu0 %vm327_vm1, %v6189_v47  ;;  %v2530_v59 = vshrl.u32 %v6153_v40, 16  ;;  %v6161_v37 = vld [vmem:[%s7645_s11 + $0x68] sm:$0x1] }
  0x30   : > { %v2494_v57 = vsel %vm7692_vm4, %v2489_v48, %v2493_v32  ;;  %v2512_v58 = vor.u32 %v2511_v51, %v2508_v50  ;;  %v2533_v60 = vshll.u32 %v6153_v40, 16  ;;  %v2521_v62 = vrot.slane %v2519_v12, 4  ;;  %p7462_p13 = pnand %p7461_p12, %p7601_p4  ;;  %p7469_p3 = por %p7468_p2, %p7467_p1 }
  0x31   : > { %v2499_v61 = vrot.slane %v2498_v53, 4  ;;  %v2527_v63 = vrot.slane %v2525_v55, 5  ;;  %v2539_v0 = vshll.u32 %v6154_v46, 16  ;;  %v2532_v1 = vrot.slane %v2530_v59, 4  ;;  %v6223_v59 = vld [vmem:[%s7645_s11 + $0x1c] sm:$0xf] }
  0x32   : > { %v2513_v6 = vrot.slane %v2512_v58, 4  ;;  %v2535_v2 = vrot.slane %v2533_v60, 5  ;;  %v2543_v3 = vshrl.u32 %v6154_v46, 16  ;;  %v2522_v9 = vor.u32 %v2521_v62, %v2517_v54  ;;  %v6222_v58 = vld [vmem:[%s7645_s11 + $0x18] sm:$0xe]  ;;  %p7463_p0 = pneg %p7462_p13 }
  0x33   : > { %v2504_v7 = vsel %vm7692_vm4, %v2499_v61, %v2503_v44  ;;  %v2541_v10 = vrot.slane %v2539_v0, 5  ;;  %v2549_v11 = vshll.u32 %v6155_v52, 16  ;;  %v2554_v25 = vshrl.u32 %v6156_v5, 16  ;;  %v6219_v44 = vld [vmem:[%s7645_s11 + $0xc] sm:$0xe] }
  0x34   : > { %v6190_v17 = vcombine.low %v2494_v57, %v2504_v7  ;;  %v2518_v18 = vsel %vm7692_vm4, %v2513_v6, %v2517_v54  ;;  %v2536_v19 = vor.u32 %v2535_v2, %v2532_v1  ;;  %v2545_v20 = vrot.slane %v2543_v3, 4  ;;  %v6221_v54 = vld [vmem:[%s7645_s11 + $0x14] sm:$0x1]  ;;  %v6224_v6 = vld [vmem:[%s7645_s11 + $0x20] sm:$0x1]  ;;  %v7422_v3 = vld [vmem:[%s7645_s11 + $0x84] sm:$0xff]   ;;  %p7470_p5 = pnand %p7469_p3, %p7463_p0 }
  0x35   : > { %6796 = vmatmul.mubr.msk.bf16.gmra.mrb[12].mxu1 %vm327_vm1, %v7418_v49  ;;  %v2523_v23 = vrot.slane %v2522_v9, 4  ;;  %v2551_v24 = vrot.slane %v2549_v11, 5  ;;  %v2557_v26 = vshll.u32 %v6156_v5, 16  ;;  %v2563_v31 = vshll.u32 %v6157_v13, 16  ;;  %v6220_v49 = vld [vmem:[%s7645_s11 + $0x10] sm:$0xf] }
  0x36   : > { %6799 = vmatprep.mubr.msk.bf16.mxu1 %vm327_vm1, %v7419_v56  ;;  %6924 = vmatmul.mubr.msk.bf16.gmra.mrb[4].mxu0 %vm327_vm1, %v6190_v17  ;;  %v2537_v28 = vrot.slane %v2536_v19, 4  ;;  %v2546_v29 = vor.u32 %v2545_v20, %v2541_v10  ;;  %v2567_v32 = vshrl.u32 %v6157_v13, 16  ;;  %v2556_v34 = vrot.slane %v2554_v25, 4 }
  0x37   : > { %v2528_v33 = vsel %vm7692_vm4, %v2523_v23, %v2527_v63  ;;  %v2559_v35 = vrot.slane %v2557_v26, 5  ;;  %v2573_v36 = vshll.u32 %v6158_v21, 16  ;;  %v2565_v42 = vrot.slane %v2563_v31, 5  ;;  %v6225_v21 = vld [vmem:[%s7645_s11 + $0x24] sm:$0xe]  ;;  %v7423_v26 = vld [vmem:[%s7645_s11 + $0x90] sm:$0xff]  }
  0x38   : > { %v6191_v39 = vcombine.low %v2518_v18, %v2528_v33  ;;  %v2542_v40 = vsel %vm7692_vm4, %v2537_v28, %v2541_v10  ;;  %v2547_v41 = vrot.slane %v2546_v29, 4  ;;  %v2569_v46 = vrot.slane %v2567_v32, 4 }
  0x39   : > { %v2560_v45 = vor.u32 %v2559_v35, %v2556_v34  ;;  %v2575_v47 = vrot.slane %v2573_v36, 5  ;;  %v2578_v48 = vshrl.u32 %v6159_v22, 16  ;;  %v2581_v51 = vshll.u32 %v6159_v22, 16  ;;  %v6228_v36 = vld [vmem:[%s7645_s11 + $0x30] sm:$0xe] }
  0x3a   : > { %6927 = vmatprep.mubr.msk.bf16.mxu0 %vm327_vm1, %v6191_v39  ;;  %v2552_v50 = vsel %vm7692_vm4, %v2547_v41, %v2551_v24  ;;  %v2587_v52 = vshll.u32 %v6160_v27, 16  ;;  %v2591_v53 = vshrl.u32 %v6160_v27, 16  ;;  %v2570_v56 = vor.u32 %v2569_v46, %v2565_v42  ;;  %v6226_v27 = vld [vmem:[%s7645_s11 + $0x28] sm:$0xf] }
  0x3b   : > { %v6192_v12 = vcombine.low %v2542_v40, %v2552_v50  ;;  %v2561_v55 = vrot.slane %v2560_v45, 4  ;;  %v2580_v57 = vrot.slane %v2578_v48, 4  ;;  %v2583_v60 = vrot.slane %v2581_v51, 5  ;;  %v6231_v50 = vld [vmem:[%s7645_s11 + $0x3c] sm:$0xe] }
  0x3c   : > { %v2589_v61 = vrot.slane %v2587_v52, 5  ;;  %v2593_v62 = vrot.slane %v2591_v53, 4  ;;  %v2597_v63 = vshll.u32 %v6161_v37, 16  ;;  %v2571_v2 = vrot.slane %v2570_v56, 4  ;;  %v6229_v37 = vld [vmem:[%s7645_s11 + $0x34] sm:$0xf] }
  0x3d   : > { %6800 = vmatmul.mubr.msk.bf16.gmra.mrb[16].mxu1 %vm327_vm1, %v7420_v30  ;;  %v2566_v1 = vsel %vm7692_vm4, %v2561_v55, %v2565_v42  ;;  %v6267_v5 = vrot.slane %v6219_v44, 9  ;;  %v3249_v7 = vrot.slane %v6220_v49, 5  ;;  %v2584_v9 = vor.u32 %v2583_v60, %v2580_v57  ;;  %v6227_v30 = vld [vmem:[%s7645_s11 + $0x2c] sm:$0x1]  ;;  %v6232_v51 = vld [vmem:[%s7645_s11 + $0x40] sm:$0xf] }
  0x3e   : > { %6803 = vmatprep.mubr.msk.bf16.mxu1 %vm327_vm1, %v7421_v38  ;;  %6928 = vmatmul.mubr.msk.bf16.gmra.mrb[8].mxu0 %vm327_vm1, %v6192_v12  ;;  %v2594_v10 = vor.u32 %v2593_v62, %v2589_v61  ;;  %v2599_v11 = vrot.slane %v2597_v63, 5  ;;  %v3252_v13 = vrot.slane %v6221_v54, 5  ;;  %v2576_v17 = vsel %vm7692_vm4, %v2571_v2, %v2575_v47  ;;  %v6230_v38 = vld [vmem:[%s7645_s11 + $0x38] sm:$0x1]  ;;  %v7424_v52 = vld [vmem:[%s7645_s11 + $0x9c] sm:$0xff]  }
  0x3f   : > { %v3250_v18 = vsel %vm7767_vm7, %v6267_v5, %v3249_v7  ;;  %v3251_v19 = vrot.slane %v3249_v7, 4  ;;  %v6268_v20 = vrot.slane %v6222_v58, 9  ;;  %v6193_v22 = vcombine.low %v2566_v1, %v2576_v17  ;;  %v6233_v55 = vld [vmem:[%s7645_s11 + $0x44] sm:$0x1]  ;;  %v6234_v56 = vld [vmem:[%s7645_s11 + $0x48] sm:$0xe] }
  0x40   : > { %v2585_v23 = vrot.slane %v2584_v9, 4  ;;  %v2595_v24 = vrot.slane %v2594_v10, 4  ;;  %v3256_v25 = vrot.slane %v6223_v59, 5  ;;  %v3259_v29 = vrot.slane %v6224_v6, 5  ;;  %v7425_v58 = vld [vmem:[%s7645_s11 + $0xa8] sm:$0xff]  }
  0x41   : > { %v3253_v28 = vsel %vm7767_vm7, %v3251_v19, %v3252_v13  ;;  %v6269_v31 = vrot.slane %v6225_v21, 9  ;;  %v3263_v32 = vrot.slane %v6226_v27, 5  ;;  %6931 = vmatprep.mubr.msk.bf16.mxu0 %vm327_vm1, %v6193_v22  ;;  %v3266_v44 = vrot.slane %v6227_v30, 5  ;;  %v6235_v62 = vld [vmem:[%s7645_s11 + $0x4c] sm:$0xf] }
  0x42   : > { %v2590_v33 = vsel %vm7692_vm4, %v2585_v23, %v2589_v61  ;;  %v2600_v34 = vsel %vm7692_vm4, %v2595_v24, %v2599_v11  ;;  %v6284_v35 = vcombine.low %v3250_v18, %v3253_v28  ;;  %v3257_v40 = vsel %vm7767_vm7, %v6268_v20, %v3256_v25  ;;  %v6236_v1 = vld [vmem:[%s7645_s11 + $0x50] sm:$0x1]  ;;  %v573_v5 = vld [vmem:[%s7645_s11] sm:$0xf]  ;;  %v574_v13 = vld [vmem:[%s7645_s11 + $0x4] sm:$0xf] }
  0x43   : > { %v6194_v39 = vcombine.low %v2590_v33, %v2600_v34  ;;  %v3258_v41 = vrot.slane %v3256_v25, 4  ;;  %v3265_v42 = vrot.slane %v3263_v32, 4  ;;  %v6270_v45 = vrot.slane %v6228_v36, 9  ;;  %v575_v17 = vld [vmem:[%s7645_s11 + $0x8] sm:$0x1] }
  0x44   : > { %v3270_v46 = vrot.slane %v6229_v37, 5  ;;  %v3273_v47 = vrot.slane %v6230_v38, 5  ;;  %v3264_v49 = vsel %vm7767_vm7, %v6269_v31, %v3263_v32  ;;  %v6271_v59 = vrot.slane %v6231_v50, 9  ;;  %v576_v22 = vld [vmem:[%s7645_s11 + $0xc] sm:$0xf] }
  0x45   : > { %6804 = vmatmul.mubr.msk.bf16.gmra.mrb[20].mxu1 %vm327_vm1, %v7422_v3  ;;  %v3260_v48 = vsel %vm7767_vm7, %v3258_v41, %v3259_v29  ;;  %v3267_v53 = vsel %vm7767_vm7, %v3265_v42, %v3266_v44  ;;  %v3277_v60 = vrot.slane %v6232_v51, 5  ;;  %v3280_v61 = vrot.slane %v6233_v55, 5  ;;  %v577_v27 = vld [vmem:[%s7645_s11 + $0x10] sm:$0xf]  ;;  %v578_v32 = vld [vmem:[%s7645_s11 + $0x14] sm:$0x1] }
  0x46   : > { %6807 = vmatprep.mubr.msk.bf16.mxu1 %vm327_vm1, %v7423_v26  ;;  %6932 = vmatmul.mubr.msk.bf16.gmra.mrb[12].mxu0 %vm327_vm1, %v6194_v39  ;;  %v7810_v54 = vsel %vm7767_vm7, %v6270_v45, %v3270_v46  ;;  %v3272_v12 = vrot.slane %v3270_v46, 4  ;;  %v6285_v57 = vcombine.low %v3257_v40, %v3260_v48  ;;  %v6286_v63 = vcombine.low %v3264_v49, %v3267_v53  ;;  %v6237_v33 = vld [vmem:[%s7645_s11 + $0x54] sm:$0xe]  ;;  %v6238_v38 = vld [vmem:[%s7645_s11 + $0x58] sm:$0xf] }
  0x47   : > { %6953 = vmatprep.mubr.msk.bf16.mxu0 %vm327_vm1, %v6284_v35  ;;  %v6272_v2 = vrot.slane %v6234_v56, 9  ;;  %v3284_v3 = vrot.slane %v6235_v62, 5  ;;  %v7827_v9 = vsel %vm7767_vm7, %v6271_v59, %v3277_v60  ;;  %v3279_v10 = vrot.slane %v3277_v60, 4  ;;  %v6239_v44 = vld [vmem:[%s7645_s11 + $0x5c] sm:$0x1]  ;;  %v7426_v45 = vld [vmem:[%s7645_s11 + $0xb4] sm:$0xff]  }
  0x48   : > { %v7819_v6 = vsel %vm7767_vm7, %v3272_v12, %v3273_v47  ;;  %v3287_v11 = vrot.slane %v6236_v1, 5  ;;  %v625_v20 = vshrl.u32 %v573_v5, 16  ;;  %v628_v21 = vshll.u32 %v573_v5, 16  ;;  %v6240_v50 = vld [vmem:[%s7645_s11 + $0x60] sm:$0xe] }
  0x49   : > { %v6287_v7 = vcombine.low %v7810_v54, %v7819_v6  ;;  %v7833_v18 = vsel %vm7767_vm7, %v6272_v2, %v3284_v3  ;;  %v3286_v19 = vrot.slane %v3284_v3, 4  ;;  %v7839_v23 = vsel %vm7767_vm7, %v3279_v10, %v3280_v61  ;;  %v6241_v55 = vld [vmem:[%s7645_s11 + $0x64] sm:$0xf]  ;;  %v6242_v59 = vld [vmem:[%s7645_s11 + $0x68] sm:$0x1] }
  0x4a   : > { %v634_v24 = vshll.u32 %v574_v13, 16  ;;  %v638_v25 = vshrl.u32 %v574_v13, 16  ;;  %v644_v26 = vshll.u32 %v575_v17, 16  ;;  %v6288_v28 = vcombine.low %v7827_v9, %v7839_v23  ;;  %v579_v1 = vld [vmem:[%s7645_s11 + $0x18] sm:$0xf] }
  0x4b   : > { %v7847_v29 = vsel %vm7767_vm7, %v3286_v19, %v3287_v11  ;;  %v627_v30 = vrot.slane %v625_v20, 4  ;;  %v630_v31 = vrot.slane %v628_v21, 5  ;;  %v649_v40 = vshrl.u32 %v576_v22, 16  ;;  %v580_v19 = vld [vmem:[%s7645_s11 + $0x1c] sm:$0xf] }
  0x4c   : > { %v6289_v34 = vcombine.low %v7833_v18, %v7847_v29  ;;  %v636_v35 = vrot.slane %v634_v24, 5  ;;  %v640_v36 = vrot.slane %v638_v25, 4  ;;  %v646_v37 = vrot.slane %v644_v26, 5  ;;  %v584_v9 = vld [vmem:[%s7645_s11 + $0x2c] sm:$0x1] }
  0x4d   : > { %6808 = vmatmul.mubr.msk.bf16.gmra.mrb[24].mxu1 %vm327_vm1, %v7424_v52  ;;  %v631_v39 = vor.u32 %v630_v31, %v627_v30  ;;  %v652_v41 = vshll.u32 %v576_v22, 16  ;;  %v658_v42 = vshll.u32 %v577_v27, 16  ;;  %v662_v47 = vshrl.u32 %v577_v27, 16  ;;  %v581_v22 = vld [vmem:[%s7645_s11 + $0x20] sm:$0x1] }
  0x4e   : > { %6811 = vmatprep.mubr.msk.bf16.mxu1 %vm327_vm1, %v7425_v58  ;;  %6954 = vmatmul.mubr.msk.bf16.vlgmr.msra.gmra.mrb[0].mxu0 %vm327_vm1, %v6285_v57  ;;  %v641_v46 = vor.u32 %v640_v36, %v636_v35  ;;  %v668_v48 = vshll.u32 %v578_v32, 16  ;;  %v6273_v49 = vrot.slane %v6237_v33, 9  ;;  %v651_v52 = vrot.slane %v649_v40, 4  ;;  %v582_v32 = vld [vmem:[%s7645_s11 + $0x24] sm:$0xf] }
  0x4f   : > { %6986 = vmatpush3.bf16.msra.mxu0 %v7670_v14  ;;  %6957 = vmatprep.mubr.msk.bf16.mxu0 %vm327_vm1, %v6286_v63  ;;  %v632_v51 = vrot.slane %v631_v39, 4  ;;  %v654_v53 = vrot.slane %v652_v41, 5  ;;  %v660_v12 = vrot.slane %v658_v42, 5  ;;  %v664_v14 = vrot.slane %v662_v47, 4  ;;  %v6243_v23 = vld [vmem:[%s7645_s11 + $0x6c] sm:$0xe] }
  0x50   : > { %7353 = vmatprep.subr.msk.bf16.mxu0 %vm376_vm0, %v7658_v8  ;;  %v642_v56 = vrot.slane %v641_v46, 4  ;;  %v670_v57 = vrot.slane %v668_v48, 5  ;;  %v3291_v58 = vrot.slane %v6238_v38, 5  ;;  %v3294_v62 = vrot.slane %v6239_v44, 5  ;;  %v6244_v44 = vld [vmem:[%s7645_s11 + $0x70] sm:$0xf] }
  0x51   : > { %v637_v60 = vsel %vm7692_vm4, %v632_v51, %v636_v35  ;;  %v655_v61 = vor.u32 %v654_v53, %v651_v52  ;;  %v6274_v63 = vrot.slane %v6240_v50, 9  ;;  %v665_v8 = vor.u32 %v664_v14, %v660_v12  ;;  %v583_v35 = vld [vmem:[%s7645_s11 + $0x28] sm:$0xf]  ;;  %v6246_v50 = vld [vmem:[%s7645_s11 + $0x78] sm:$0xe] }
  0x52   : > { %v647_v2 = vsel %vm7692_vm4, %v642_v56, %v646_v37  ;;  %v7872_v3 = vsel %vm7767_vm7, %v6273_v49, %v3291_v58  ;;  %v3293_v5 = vrot.slane %v3291_v58, 4  ;;  %v3298_v13 = vrot.slane %v6241_v55, 5  ;;  %v6247_v55 = vld [vmem:[%s7645_s11 + $0x7c] sm:$0xf] }
  0x53   : > { %v5992_v10 = vcombine.low %v637_v60, %v647_v2  ;;  %v656_v11 = vrot.slane %v655_v61, 4  ;;  %v3301_v17 = vrot.slane %v6242_v59, 5  ;;  %v666_v20 = vrot.slane %v665_v8, 4  ;;  %v6248_v59 = vld [vmem:[%s7645_s11 + $0x80] sm:$0x1] }
  0x54   : > { %v3295_v21 = vsel %vm7767_vm7, %v3293_v5, %v3294_v62  ;;  %v673_v24 = vshrl.u32 %v579_v1, 16  ;;  %v676_v25 = vshll.u32 %v579_v1, 16  ;;  %v7888_v30 = vsel %vm7767_vm7, %v6274_v63, %v3298_v13  ;;  %v585_v1 = vld [vmem:[%s7645_s11 + $0x30] sm:$0xf] }
  0x55   : > { %6812 = vmatmul.mubr.msk.bf16.gmra.mrb[28].mxu1 %vm327_vm1, %v7426_v45  ;;  %v661_v26 = vsel %vm7692_vm4, %v656_v11, %v660_v12  ;;  %v6290_v27 = vcombine.low %v7872_v3, %v3295_v21  ;;  %v3300_v31 = vrot.slane %v3298_v13, 4  ;;  %v671_v54 = vsel %vm7692_vm4, %v666_v20, %v670_v57  ;;  %v6245_v45 = vld [vmem:[%s7645_s11 + $0x74] sm:$0x1] }
  0x56   : > { %6958 = vmatmul.mubr.msk.bf16.gmra.mrb[4].mxu0 %vm327_vm1, %v6287_v7  ;;  %6817 = vmatprep.mubr.msk.bf16.mxu1 %vm327_vm1, %v5992_v10  ;;  %v675_v6 = vrot.slane %v673_v24, 4  ;;  %v678_v7 = vrot.slane %v676_v25, 5  ;;  %v682_v33 = vshll.u32 %v580_v19, 16  ;;  %v5993_v36 = vcombine.low %v661_v26, %v671_v54  ;;  %v587_v25 = vld [vmem:[%s7645_s11 + $0x38] sm:$0x1] }
  0x57   : > { %6961 = vmatprep.mubr.msk.bf16.mxu0 %vm327_vm1, %v6288_v28  ;;  %v7900_v37 = vsel %vm7767_vm7, %v3300_v31, %v3301_v17  ;;  %v686_v38 = vshrl.u32 %v580_v19, 16  ;;  %v692_v39 = vshll.u32 %v581_v22, 16  ;;  %v697_v42 = vshrl.u32 %v582_v32, 16  ;;  %v588_v26 = vld [vmem:[%s7645_s11 + $0x3c] sm:$0xf] }
  0x58   : > { %v6291_v28 = vcombine.low %v7888_v30, %v7900_v37  ;;  %v679_v40 = vor.u32 %v678_v7, %v675_v6  ;;  %v684_v41 = vrot.slane %v682_v33, 5  ;;  %v700_v48 = vshll.u32 %v582_v32, 16 }
  0x59   : > { %v688_v46 = vrot.slane %v686_v38, 4  ;;  %v694_v47 = vrot.slane %v692_v39, 5  ;;  %v706_v49 = vshll.u32 %v583_v35, 16  ;;  %v699_v52 = vrot.slane %v697_v42, 4 }
  0x5a   : > { %v680_v51 = vrot.slane %v679_v40, 4  ;;  %v710_v53 = vshrl.u32 %v583_v35, 16  ;;  %v716_v12 = vshll.u32 %v584_v9, 16  ;;  %v702_v14 = vrot.slane %v700_v48, 5 }
  0x5b   : > { %v689_v56 = vor.u32 %v688_v46, %v684_v41  ;;  %v708_v57 = vrot.slane %v706_v49, 5  ;;  %v6275_v58 = vrot.slane %v6243_v23, 9  ;;  %v3305_v63 = vrot.slane %v6244_v44, 5  ;;  %v590_v23 = vld [vmem:[%s7645_s11 + $0x44] sm:$0x1] }
  0x5c   : > { %v685_v60 = vsel %vm7692_vm4, %v680_v51, %v684_v41  ;;  %v712_v61 = vrot.slane %v710_v53, 4  ;;  %v718_v62 = vrot.slane %v716_v12, 5  ;;  %v703_v8 = vor.u32 %v702_v14, %v699_v52  ;;  %v6249_v41 = vld [vmem:[%s7645_s11 + $0x84] sm:$0xe] }
  0x5d   : > { %6818 = vmatmul.mubr.msk.bf16.vlgmr.msra.gmra.mrb[0].mxu1 %vm327_vm1, %v5993_v36  ;;  %v690_v2 = vrot.slane %v689_v56, 4  ;;  %v3308_v3 = vrot.slane %v6245_v45, 5  ;;  %v6276_v5 = vrot.slane %v6246_v50, 9  ;;  %v3306_v10 = vsel %vm7767_vm7, %v6275_v58, %v3305_v63  ;;  %v589_v36 = vld [vmem:[%s7645_s11 + $0x40] sm:$0xf] }
  0x5e   : > { %6850 = vmatpush3.bf16.msra.mxu1 %v7674_v15  ;;  %6962 = vmatmul.mubr.msk.bf16.gmra.mrb[8].mxu0 %vm327_vm1, %v6289_v34  ;;  %v713_v15 = vor.u32 %v712_v61, %v708_v57  ;;  %v3307_v11 = vrot.slane %v3305_v63, 4  ;;  %v3312_v13 = vrot.slane %v6247_v55, 5  ;;  %v704_v18 = vrot.slane %v703_v8, 4  ;;  %v586_v34 = vld [vmem:[%s7645_s11 + $0x34] sm:$0xf] }
  0x5f   : > { %6965 = vmatprep.mubr.msk.bf16.mxu0 %vm327_vm1, %v6290_v27  ;;  %v695_v17 = vsel %vm7692_vm4, %v690_v2, %v694_v47  ;;  %v3315_v29 = vrot.slane %v6248_v59, 5  ;;  %v721_v19 = vshrl.u32 %v585_v1, 16  ;;  %v724_v7 = vshll.u32 %v585_v1, 16  ;;  %v6250_v47 = vld [vmem:[%s7645_s11 + $0x88] sm:$0xf] }
  0x60   : > { %v5994_v20 = vcombine.low %v685_v60, %v695_v17  ;;  %v714_v21 = vrot.slane %v713_v15, 4  ;;  %v3309_v22 = vsel %vm7767_vm7, %v3307_v11, %v3308_v3  ;;  %v7930_v24 = vsel %vm7767_vm7, %v6276_v5, %v3312_v13  ;;  %v6251_v56 = vld [vmem:[%s7645_s11 + $0x8c] sm:$0x1]  ;;  %v6254_v3 = vld [vmem:[%s7645_s11 + $0x98] sm:$0x1] }
  0x61   : > { %v709_v27 = vsel %vm7692_vm4, %v704_v18, %v708_v57  ;;  %v6292_v31 = vcombine.low %v3306_v10, %v3309_v22  ;;  %v3314_v32 = vrot.slane %v3312_v13, 4  ;;  %v723_v54 = vrot.slane %v721_v19, 4  ;;  %v6252_v57 = vld [vmem:[%s7645_s11 + $0x90] sm:$0xe]  ;;  %v591_v5 = vld [vmem:[%s7645_s11 + $0x48] sm:$0xf] }
  0x62   : > { %6821 = vmatprep.mubr.msk.bf16.mxu1 %vm327_vm1, %v5994_v20  ;;  %v719_v6 = vsel %vm7692_vm4, %v714_v21, %v718_v62  ;;  %v730_v33 = vshll.u32 %v586_v34, 16  ;;  %v734_v35 = vshrl.u32 %v586_v34, 16  ;;  %v740_v9 = vshll.u32 %v587_v25, 16  ;;  %v6253_v62 = vld [vmem:[%s7645_s11 + $0x94] sm:$0xf] }
  0x63   : > { %v5995_v38 = vcombine.low %v709_v27, %v719_v6  ;;  %v3316_v39 = vsel %vm7767_vm7, %v3314_v32, %v3315_v29  ;;  %v745_v40 = vshrl.u32 %v588_v26, 16  ;;  %v726_v44 = vrot.slane %v724_v7, 5  ;;  %v592_v19 = vld [vmem:[%s7645_s11 + $0x4c] sm:$0xf] }
  0x64   : > { %v6293_v42 = vcombine.low %v7930_v24, %v3316_v39  ;;  %v732_v45 = vrot.slane %v730_v33, 5  ;;  %v736_v46 = vrot.slane %v734_v35, 4  ;;  %v742_v48 = vrot.slane %v740_v9, 5  ;;  %v593_v24 = vld [vmem:[%s7645_s11 + $0x50] sm:$0x1] }
  0x65   : > { %6822 = vmatmul.mubr.msk.bf16.gmra.mrb[4].mxu1 %vm327_vm1, %v5995_v38  ;;  %v747_v49 = vrot.slane %v745_v40, 4  ;;  %v748_v50 = vshll.u32 %v588_v26, 16  ;;  %v754_v51 = vshll.u32 %v589_v36, 16  ;;  %v727_v52 = vor.u32 %v726_v44, %v723_v54  ;;  %v594_v54 = vld [vmem:[%s7645_s11 + $0x54] sm:$0xf] }
  0x66   : > { %6966 = vmatmul.mubr.msk.bf16.gmra.mrb[12].mxu0 %vm327_vm1, %v6291_v28  ;;  %v737_v53 = vor.u32 %v736_v46, %v732_v45  ;;  %v758_v12 = vshrl.u32 %v589_v36, 16  ;;  %v764_v55 = vshll.u32 %v590_v23, 16  ;;  %v6277_v28 = vrot.slane %v6249_v41, 9  ;;  %v595_v36 = vld [vmem:[%s7645_s11 + $0x58] sm:$0xf] }
  0x67   : > { %6969 = vmatprep.mubr.msk.bf16.mxu0 %vm327_vm1, %v6292_v31  ;;  %v750_v30 = vrot.slane %v748_v50, 5  ;;  %v756_v37 = vrot.slane %v754_v51, 5  ;;  %v3319_v14 = vrot.slane %v6250_v47, 5  ;;  %v728_v58 = vrot.slane %v727_v52, 4  ;;  %v596_v40 = vld [vmem:[%s7645_s11 + $0x5c] sm:$0x1] }
  0x68   : > { %v738_v59 = vrot.slane %v737_v53, 4  ;;  %v760_v60 = vrot.slane %v758_v12, 4  ;;  %v766_v61 = vrot.slane %v764_v55, 5  ;;  %v3322_v8 = vrot.slane %v6251_v56, 5  ;;  %v6255_v41 = vld [vmem:[%s7645_s11 + $0x9c] sm:$0xe] }
  0x69   : > { %v751_v63 = vor.u32 %v750_v30, %v747_v49  ;;  %v3320_v1 = vsel %vm7767_vm7, %v6277_v28, %v3319_v14  ;;  %v3321_v2 = vrot.slane %v3319_v14, 4  ;;  %v733_v15 = vsel %vm7692_vm4, %v728_v58, %v732_v45  ;;  %v6256_v47 = vld [vmem:[%s7645_s11 + $0xa0] sm:$0xf]  ;;  %v6257_v52 = vld [vmem:[%s7645_s11 + $0xa4] sm:$0x1] }
  0x6a   : > { %v743_v10 = vsel %vm7692_vm4, %v738_v59, %v742_v48  ;;  %v761_v11 = vor.u32 %v760_v60, %v756_v37  ;;  %v6278_v13 = vrot.slane %v6252_v57, 9  ;;  %v3326_v34 = vrot.slane %v6253_v62, 5  ;;  %v6258_v30 = vld [vmem:[%s7645_s11 + $0xa8] sm:$0xe]  ;;  %v6259_v58 = vld [vmem:[%s7645_s11 + $0xac] sm:$0xf] }
  0x6b   : > { %v5996_v17 = vcombine.low %v733_v15, %v743_v10  ;;  %v752_v18 = vrot.slane %v751_v63, 4  ;;  %v3323_v29 = vsel %vm7767_vm7, %v3321_v2, %v3322_v8  ;;  %v3329_v22 = vrot.slane %v6254_v3, 5  ;;  %v6260_v63 = vld [vmem:[%s7645_s11 + $0xb0] sm:$0x1]  ;;  %v598_v15 = vld [vmem:[%s7645_s11 + $0x64] sm:$0xf] }
  0x6c   : > { %v762_v20 = vrot.slane %v761_v11, 4  ;;  %v6294_v21 = vcombine.low %v3320_v1, %v3323_v29  ;;  %v769_v25 = vshrl.u32 %v591_v5, 16  ;;  %v3327_v27 = vsel %vm7767_vm7, %v6278_v13, %v3326_v34 }
  0x6d   : > { %6825 = vmatprep.mubr.msk.bf16.mxu1 %vm327_vm1, %v5996_v17  ;;  %v757_v26 = vsel %vm7692_vm4, %v752_v18, %v756_v37  ;;  %v3328_v31 = vrot.slane %v3326_v34, 4  ;;  %v772_v32 = vshll.u32 %v591_v5, 16  ;;  %v778_v33 = vshll.u32 %v592_v19, 16  ;;  %v597_v5 = vld [vmem:[%s7645_s11 + $0x60] sm:$0xf] }
  0x6e   : > { %6970 = vmatmul.mubr.msk.bf16.gmra.mrb[16].mxu0 %vm327_vm1, %v6293_v42  ;;  %v767_v6 = vsel %vm7692_vm4, %v762_v20, %v766_v61  ;;  %v771_v7 = vrot.slane %v769_v25, 4  ;;  %v782_v35 = vshrl.u32 %v592_v19, 16  ;;  %v788_v23 = vshll.u32 %v593_v24, 16  ;;  %v599_v18 = vld [vmem:[%s7645_s11 + $0x68] sm:$0x1] }
  0x6f   : > { %6973 = vmatprep.mubr.msk.bf16.mxu0 %vm327_vm1, %v6294_v21  ;;  %v5997_v38 = vcombine.low %v757_v26, %v767_v6  ;;  %v3330_v39 = vsel %vm7767_vm7, %v3328_v31, %v3329_v22  ;;  %v774_v9 = vrot.slane %v772_v32, 5  ;;  %v780_v44 = vrot.slane %v778_v33, 5  ;;  %v600_v21 = vld [vmem:[%s7645_s11 + $0x6c] sm:$0xf]  ;;  %v601_v6 = vld [vmem:[%s7645_s11 + $0x70] sm:$0xf] }
  0x70   : > { %v6295_v42 = vcombine.low %v3327_v27, %v3330_v39  ;;  %v784_v45 = vrot.slane %v782_v35, 4  ;;  %v793_v46 = vshrl.u32 %v594_v54, 16  ;;  %v790_v49 = vrot.slane %v788_v23, 5 }
  0x71   : > { %6826 = vmatmul.mubr.msk.bf16.gmra.mrb[8].mxu1 %vm327_vm1, %v5997_v38  ;;  %v775_v48 = vor.u32 %v774_v9, %v771_v7  ;;  %v796_v50 = vshll.u32 %v594_v54, 16  ;;  %v802_v51 = vshll.u32 %v595_v36, 16  ;;  %v806_v55 = vshrl.u32 %v595_v36, 16  ;;  %v602_v38 = vld [vmem:[%s7645_s11 + $0x74] sm:$0x1] }
  0x72   : > { %v785_v53 = vor.u32 %v784_v45, %v780_v44  ;;  %v795_v12 = vrot.slane %v793_v46, 4  ;;  %v812_v56 = vshll.u32 %v596_v40, 16  ;;  %v6279_v57 = vrot.slane %v6255_v41, 9  ;;  %v6261_v41 = vld [vmem:[%s7645_s11 + $0xb4] sm:$0xe] }
  0x73   : > { %v776_v37 = vrot.slane %v775_v48, 4  ;;  %v798_v28 = vrot.slane %v796_v50, 5  ;;  %v804_v14 = vrot.slane %v802_v51, 5  ;;  %v808_v60 = vrot.slane %v806_v55, 4  ;;  %v6263_v48 = vld [vmem:[%s7645_s11 + $0xbc] sm:$0x1] }
  0x74   : > { %v786_v59 = vrot.slane %v785_v53, 4  ;;  %v814_v61 = vrot.slane %v812_v56, 5  ;;  %v3333_v62 = vrot.slane %v6256_v47, 5  ;;  %v3336_v8 = vrot.slane %v6257_v52, 5 }
  0x75   : > { %v781_v1 = vsel %vm7692_vm4, %v776_v37, %v780_v44  ;;  %v799_v2 = vor.u32 %v798_v28, %v795_v12  ;;  %v6280_v3 = vrot.slane %v6258_v30, 9  ;;  %v809_v11 = vor.u32 %v808_v60, %v804_v14  ;;  %v6265_v12 = vld [vmem:[%s7645_s11 + $0xc4] sm:$0xf]  ;;  %v6266_v28 = vld [vmem:[%s7645_s11 + $0xc8] sm:$0x1] }
  0x76   : > { %6974 = vmatmul.mubr.msk.bf16.gmra.mrb[20].mxu0 %vm327_vm1, %v6295_v42  ;;  %v791_v10 = vsel %vm7692_vm4, %v786_v59, %v790_v49  ;;  %v3334_v13 = vsel %vm7767_vm7, %v6279_v57, %v3333_v62  ;;  %v3335_v17 = vrot.slane %v3333_v62, 4  ;;  %v3340_v19 = vrot.slane %v6259_v58, 5  ;;  %v6262_v42 = vld [vmem:[%s7645_s11 + $0xb8] sm:$0xf]  ;;  %v6264_v49 = vld [vmem:[%s7645_s11 + $0xc0] sm:$0xe] }
  0x77   : > { %v5998_v29 = vcombine.low %v781_v1, %v791_v10  ;;  %v800_v34 = vrot.slane %v799_v2, 4  ;;  %v3343_v20 = vrot.slane %v6260_v63, 5  ;;  %v810_v22 = vrot.slane %v809_v11, 4 }
  0x78   : > { %v3337_v24 = vsel %vm7767_vm7, %v3335_v17, %v3336_v8  ;;  %v817_v25 = vshrl.u32 %v597_v5, 16  ;;  %v820_v26 = vshll.u32 %v597_v5, 16  ;;  %v3341_v32 = vsel %vm7767_vm7, %v6280_v3, %v3340_v19  ;;  %v604_v17 = vld [vmem:[%s7645_s11 + $0x7c] sm:$0xf] }
  0x79   : > { %6829 = vmatprep.mubr.msk.bf16.mxu1 %vm327_vm1, %v5998_v29  ;;  %v805_v27 = vsel %vm7692_vm4, %v800_v34, %v804_v14  ;;  %v6296_v31 = vcombine.low %v3334_v13, %v3337_v24  ;;  %v3342_v54 = vrot.slane %v3340_v19, 4  ;;  %v815_v7 = vsel %vm7692_vm4, %v810_v22, %v814_v61  ;;  %v603_v14 = vld [vmem:[%s7645_s11 + $0x78] sm:$0xf]  ;;  %v605_v19 = vld [vmem:[%s7645_s11 + $0x80] sm:$0x1] }
  0x7a   : > { %v819_v33 = vrot.slane %v817_v25, 4  ;;  %v822_v35 = vrot.slane %v820_v26, 5  ;;  %v826_v36 = vshll.u32 %v598_v15, 16  ;;  %v5999_v39 = vcombine.low %v805_v27, %v815_v7  ;;  %v606_v26 = vld [vmem:[%s7645_s11 + $0x84] sm:$0xf] }
  0x7b   : > { %6977 = vmatprep.mubr.msk.bf16.mxu0 %vm327_vm1, %v6296_v31  ;;  %v3344_v9 = vsel %vm7767_vm7, %v3342_v54, %v3343_v20  ;;  %v830_v23 = vshrl.u32 %v598_v15, 16  ;;  %v836_v40 = vshll.u32 %v599_v18, 16  ;;  %v841_v47 = vshrl.u32 %v600_v21, 16  ;;  %v607_v27 = vld [vmem:[%s7645_s11 + $0x88] sm:$0xf] }
  0x7c   : > { %v6297_v44 = vcombine.low %v3341_v32, %v3344_v9  ;;  %v823_v45 = vor.u32 %v822_v35, %v819_v33  ;;  %v828_v46 = vrot.slane %v826_v36, 5  ;;  %6830 = vmatmul.mubr.msk.bf16.gmra.mrb[12].mxu1 %vm327_vm1, %v5999_v39  ;;  %v844_v52 = vshll.u32 %v600_v21, 16 }
  0x7d   : > { %v832_v50 = vrot.slane %v830_v23, 4  ;;  %v838_v51 = vrot.slane %v836_v40, 5  ;;  %v850_v53 = vshll.u32 %v601_v6, 16  ;;  %v843_v56 = vrot.slane %v841_v47, 4  ;;  %v608_v40 = vld [vmem:[%s7645_s11 + $0x8c] sm:$0x1] }
  0x7e   : > { %6978 = vmatmul.mubr.msk.bf16.gmra.mrb[24].mxu0 %vm327_vm1, %v6297_v44  ;;  %v824_v55 = vrot.slane %v823_v45, 4  ;;  %v854_v30 = vshrl.u32 %v601_v6, 16  ;;  %v860_v37 = vshll.u32 %v602_v38, 16  ;;  %v846_v58 = vrot.slane %v844_v52, 5  ;;  %v7427_v38 = vld [vmem:[%s7645_s11 + $0x18] sm:$0xff]  }
  0x7f   : > { %v833_v57 = vor.u32 %v832_v50, %v828_v46  ;;  %v852_v59 = vrot.slane %v850_v53, 5  ;;  %v6281_v60 = vrot.slane %v6261_v41, 9  ;;  %v3347_v1 = vrot.slane %v6262_v42, 5  ;;  %v609_v47 = vld [vmem:[%s7645_s11 + $0x90] sm:$0xf] }
  0x80   : > { %v829_v61 = vsel %vm7692_vm4, %v824_v55, %v828_v46  ;;  %v856_v62 = vrot.slane %v854_v30, 4  ;;  %v862_v63 = vrot.slane %v860_v37, 5  ;;  %v847_v8 = vor.u32 %v846_v58, %v843_v56  ;;  %v610_v56 = vld [vmem:[%s7645_s11 + $0x94] sm:$0xf]  ;;  %v612_v58 = vld [vmem:[%s7645_s11 + $0x9c] sm:$0xf] }
  0x81   : > { %v834_v2 = vrot.slane %v833_v57, 4  ;;  %v3350_v3 = vrot.slane %v6263_v48, 5  ;;  %v6282_v5 = vrot.slane %v6264_v49, 9  ;;  %v3348_v10 = vsel %vm7767_vm7, %v6281_v60, %v3347_v1 }
  0x82   : > { %v857_v15 = vor.u32 %v856_v62, %v852_v59  ;;  %v3349_v11 = vrot.slane %v3347_v1, 4  ;;  %v3354_v13 = vrot.slane %v6265_v12, 5  ;;  %v848_v29 = vrot.slane %v847_v8, 4 }
  0x83   : > { %v839_v18 = vsel %vm7692_vm4, %v834_v2, %v838_v51  ;;  %v3357_v34 = vrot.slane %v6266_v28, 5  ;;  %v865_v20 = vshrl.u32 %v603_v14, 16  ;;  %v868_v33 = vshll.u32 %v603_v14, 16  ;;  %v611_v28 = vld [vmem:[%s7645_s11 + $0x98] sm:$0x1] }
  0x84   : > { %v6000_v21 = vcombine.low %v829_v61, %v839_v18  ;;  %v858_v22 = vrot.slane %v857_v15, 4  ;;  %v3351_v24 = vsel %vm7767_vm7, %v3349_v11, %v3350_v3  ;;  %v3355_v25 = vsel %vm7767_vm7, %v6282_v5, %v3354_v13  ;;  %v7428_v11 = vld [vmem:[%s7645_s11 + $0x24] sm:$0xff]  }
  0x85   : > { %v853_v31 = vsel %vm7692_vm4, %v848_v29, %v852_v59  ;;  %v6298_v32 = vcombine.low %v3348_v10, %v3351_v24  ;;  %v3356_v54 = vrot.slane %v3354_v13, 4  ;;  %v867_v6 = vrot.slane %v865_v20, 4  ;;  %v614_v24 = vld [vmem:[%s7645_s11 + $0xa4] sm:$0x1] }
  0x86   : > { %6833 = vmatprep.mubr.msk.bf16.mxu1 %vm327_vm1, %v6000_v21  ;;  %v863_v7 = vsel %vm7692_vm4, %v858_v22, %v862_v63  ;;  %v874_v35 = vshll.u32 %v604_v17, 16  ;;  %v878_v36 = vshrl.u32 %v604_v17, 16  ;;  %v884_v23 = vshll.u32 %v605_v19, 16  ;;  %v613_v63 = vld [vmem:[%s7645_s11 + $0xa0] sm:$0xf]  ;;  %v7429_v19 = vld [vmem:[%s7645_s11 + $0x30] sm:$0xff]  }
  0x87   : > { %v6001_v39 = vcombine.low %v853_v31, %v863_v7  ;;  %6981 = vmatprep.mubr.msk.bf16.mxu0 %vm327_vm1, %v6298_v32  ;;  %v3358_v9 = vsel %vm7767_vm7, %v3356_v54, %v3357_v34  ;;  %v889_v41 = vshrl.u32 %v606_v26, 16  ;;  %v870_v44 = vrot.slane %v868_v33, 5  ;;  %v615_v54 = vld [vmem:[%s7645_s11 + $0xa8] sm:$0xf] }
  0x88   : > { %v6299_v42 = vcombine.low %v3355_v25, %v3358_v9  ;;  %v876_v45 = vrot.slane %v874_v35, 5  ;;  %v880_v46 = vrot.slane %v878_v36, 4  ;;  %v886_v48 = vrot.slane %v884_v23, 5  ;;  %v616_v36 = vld [vmem:[%s7645_s11 + $0xac] sm:$0xf] }
  0x89   : > { %6834 = vmatmul.mubr.msk.bf16.gmra.mrb[16].mxu1 %vm327_vm1, %v6001_v39  ;;  %v891_v49 = vrot.slane %v889_v41, 4  ;;  %v892_v50 = vshll.u32 %v606_v26, 16  ;;  %v898_v51 = vshll.u32 %v607_v27, 16  ;;  %v871_v52 = vor.u32 %v870_v44, %v867_v6  ;;  %v618_v41 = vld [vmem:[%s7645_s11 + $0xb4] sm:$0xf] }
  0x8a   : > { %6982 = vmatmul.mubr.msk.bf16.gmra.mrb[28].mxu0 %vm327_vm1, %v6299_v42  ;;  %v881_v53 = vor.u32 %v880_v46, %v876_v45  ;;  %v902_v12 = vshrl.u32 %v607_v27, 16  ;;  %v908_v55 = vshll.u32 %v608_v40, 16  ;;  %v913_v14 = vshrl.u32 %v609_v47, 16  ;;  %v617_v40 = vld [vmem:[%s7645_s11 + $0xb0] sm:$0x1] }
  0x8b   : > { %v894_v30 = vrot.slane %v892_v50, 5  ;;  %v900_v37 = vrot.slane %v898_v51, 5  ;;  %6987 = vmatprep.mubr.msk.bf16.mxu0 %vm327_vm1, %v7427_v38  ;;  %v916_v57 = vshll.u32 %v609_v47, 16  ;;  %v872_v59 = vrot.slane %v871_v52, 4  ;;  %v8078_v42 = vld [vmem:[%s9019_s1 + $0x6] sm:$0x3] }
  0x8c   : > { %v882_v60 = vrot.slane %v881_v53, 4  ;;  %v904_v61 = vrot.slane %v902_v12, 4  ;;  %v910_v62 = vrot.slane %v908_v55, 5  ;;  %v915_v2 = vrot.slane %v913_v14, 4  ;;  %7348 = vmatprep.subr.msk.bf16.mxu1 %vm376_vm0, %v8078_v42  ;;  %v7430_v55 = vld [vmem:[%s7645_s11 + $0x3c] sm:$0xff]  }
  0x8d   : > { %v895_v1 = vor.u32 %v894_v30, %v891_v49  ;;  %v918_v8 = vrot.slane %v916_v57, 5  ;;  %v922_v3 = vshll.u32 %v610_v56, 16  ;;  %v877_v5 = vsel %vm7692_vm4, %v872_v59, %v876_v45  ;;  %v620_v57 = vld [vmem:[%s7645_s11 + $0xbc] sm:$0x1] }
  0x8e   : > { %v887_v15 = vsel %vm7692_vm4, %v882_v60, %v886_v48  ;;  %v905_v10 = vor.u32 %v904_v61, %v900_v37  ;;  %v926_v13 = vshrl.u32 %v610_v56, 16  ;;  %v932_v22 = vshll.u32 %v611_v28, 16 }
  0x8f   : > { %v6002_v17 = vcombine.low %v877_v5, %v887_v15  ;;  %v896_v18 = vrot.slane %v895_v1, 4  ;;  %v919_v29 = vor.u32 %v918_v8, %v915_v2  ;;  %v924_v34 = vrot.slane %v922_v3, 5  ;;  %v1367_v5 = vld [vmem:[%s7645_s11 + $0x4] sm:$0xf]  ;;  %v1368_v15 = vld [vmem:[%s7645_s11 + $0x8] sm:$0x1] }
  0x90   : > { %v906_v20 = vrot.slane %v905_v10, 4  ;;  %v928_v21 = vrot.slane %v926_v13, 4  ;;  %v937_v25 = vshrl.u32 %v612_v58, 16  ;;  %v940_v31 = vshll.u32 %v612_v58, 16  ;;  %v7431_v58 = vld [vmem:[%s7645_s11 + $0x48] sm:$0xff]  }
  0x91   : > { %6837 = vmatprep.mubr.msk.bf16.mxu1 %vm327_vm1, %v6002_v17  ;;  %v901_v26 = vsel %vm7692_vm4, %v896_v18, %v900_v37  ;;  %v920_v27 = vrot.slane %v919_v29, 4  ;;  %v946_v32 = vshll.u32 %v613_v63, 16  ;;  %v934_v33 = vrot.slane %v932_v22, 5  ;;  %v1369_v18 = vld [vmem:[%s7645_s11 + $0xc] sm:$0xe] }
  0x92   : > { %v911_v6 = vsel %vm7692_vm4, %v906_v20, %v910_v62  ;;  %6988 = vmatmul.mubr.msk.bf16.vlgmr.msra.gmra.mrb[0].mxu0 %vm327_vm1, %v7428_v11  ;;  %v929_v7 = vor.u32 %v928_v21, %v924_v34  ;;  %v939_v35 = vrot.slane %v937_v25, 4  ;;  %v942_v9 = vrot.slane %v940_v31, 5  ;;  %v1370_v21 = vld [vmem:[%s7645_s11 + $0x10] sm:$0xf]  ;;  %v1371_v22 = vld [vmem:[%s7645_s11 + $0x14] sm:$0x1] }
  0x93   : > { %v6003_v38 = vcombine.low %v901_v26, %v911_v6  ;;  %7020 = vmatpush3.bf16.msra.mxu0 %v7678_v16  ;;  %v925_v39 = vsel %vm7692_vm4, %v920_v27, %v924_v34  ;;  %v948_v23 = vrot.slane %v946_v32, 5  ;;  %6991 = vmatprep.mubr.msk.bf16.mxu0 %vm327_vm1, %v7429_v19  ;;  %v950_v45 = vshrl.u32 %v613_v63, 16  ;;  %v619_v16 = vld [vmem:[%s7645_s11 + $0xb8] sm:$0xf]  ;;  %v1366_v63 = vld [vmem:[%s7645_s11] sm:$0xe] }
  0x94   : > { %v930_v44 = vrot.slane %v929_v7, 4  ;;  %v956_v46 = vshll.u32 %v614_v24, 16  ;;  %v961_v47 = vshrl.u32 %v615_v54, 16  ;;  %v943_v48 = vor.u32 %v942_v9, %v939_v35  ;;  %v1372_v31 = vld [vmem:[%s7645_s11 + $0x18] sm:$0xe] }
  0x95   : > { %6838 = vmatmul.mubr.msk.bf16.gmra.mrb[20].mxu1 %vm327_vm1, %v6003_v38  ;;  %v964_v49 = vshll.u32 %v615_v54, 16  ;;  %v970_v50 = vshll.u32 %v616_v36, 16  ;;  %v974_v51 = vshrl.u32 %v616_v36, 16  ;;  %v952_v53 = vrot.slane %v950_v45, 4  ;;  %v1373_v32 = vld [vmem:[%s7645_s11 + $0x1c] sm:$0xf] }
  0x96   : > { %v935_v52 = vsel %vm7692_vm4, %v930_v44, %v934_v33  ;;  %v958_v12 = vrot.slane %v956_v46, 5  ;;  %v963_v56 = vrot.slane %v961_v47, 4  ;;  %v944_v37 = vrot.slane %v943_v48, 4  ;;  %v7432_v35 = vld [vmem:[%s7645_s11 + $0x54] sm:$0xff]   ;;  %v1374_v36 = vld [vmem:[%s7645_s11 + $0x20] sm:$0x1] }
  0x97   : > { %v6004_v30 = vcombine.low %v925_v39, %v935_v52  ;;  %v966_v28 = vrot.slane %v964_v49, 5  ;;  %v972_v14 = vrot.slane %v970_v50, 5  ;;  %v953_v59 = vor.u32 %v952_v53, %v948_v23  ;;  %v1375_v47 = vld [vmem:[%s7645_s11 + $0x24] sm:$0xe]  ;;  %v1377_v52 = vld [vmem:[%s7645_s11 + $0x2c] sm:$0x1] }
  0x98   : > { %v976_v60 = vrot.slane %v974_v51, 4  ;;  %v980_v61 = vshll.u32 %v617_v40, 16  ;;  %v985_v62 = vshrl.u32 %v618_v41, 16  ;;  %v949_v1 = vsel %vm7692_vm4, %v944_v37, %v948_v23  ;;  %v7433_v40 = vld [vmem:[%s7645_s11 + $0x60] sm:$0xff]  }
  0x99   : > { %6841 = vmatprep.mubr.msk.bf16.mxu1 %vm327_vm1, %v6004_v30  ;;  %v967_v2 = vor.u32 %v966_v28, %v963_v56  ;;  %v988_v8 = vshll.u32 %v618_v41, 16  ;;  %v994_v3 = vshll.u32 %v619_v16, 16  ;;  %v954_v10 = vrot.slane %v953_v59, 4  ;;  %v1378_v30 = vld [vmem:[%s7645_s11 + $0x30] sm:$0xe] }
  0x9a   : > { %6992 = vmatmul.mubr.msk.bf16.gmra.mrb[4].mxu0 %vm327_vm1, %v7430_v55  ;;  %v977_v11 = vor.u32 %v976_v60, %v972_v14  ;;  %v982_v13 = vrot.slane %v980_v61, 5  ;;  %v987_v17 = vrot.slane %v985_v62, 4  ;;  %v998_v20 = vshrl.u32 %v619_v16, 16  ;;  %v1376_v16 = vld [vmem:[%s7645_s11 + $0x28] sm:$0xf] }
  0x9b   : > { %v968_v29 = vrot.slane %v967_v2, 4  ;;  %v990_v34 = vrot.slane %v988_v8, 5  ;;  %v996_v19 = vrot.slane %v994_v3, 5  ;;  %6995 = vmatprep.mubr.msk.bf16.mxu0 %vm327_vm1, %v7431_v58  ;;  %v959_v24 = vsel %vm7692_vm4, %v954_v10, %v958_v12  ;;  %v1379_v58 = vld [vmem:[%s7645_s11 + $0x34] sm:$0xf]  ;;  %v7434_v10 = vld [vmem:[%s7645_s11 + $0x6c] sm:$0xff]  }
  0x9c   : > { %v978_v25 = vrot.slane %v977_v11, 4  ;;  %v1004_v26 = vshll.u32 %v620_v57, 16  ;;  %v6024_v27 = vrot.slane %v1366_v63, 9  ;;  %v6005_v54 = vcombine.low %v949_v1, %v959_v24  ;;  %v1380_v59 = vld [vmem:[%s7645_s11 + $0x38] sm:$0x1] }
  0x9d   : > { %v973_v6 = vsel %vm7692_vm4, %v968_v29, %v972_v14  ;;  %v991_v7 = vor.u32 %v990_v34, %v987_v17  ;;  %v1000_v33 = vrot.slane %v998_v20, 4  ;;  %v1467_v9 = vrot.slane %v1367_v5, 5  ;;  %v1381_v60 = vld [vmem:[%s7645_s11 + $0x3c] sm:$0xe]  ;;  %v1382_v61 = vld [vmem:[%s7645_s11 + $0x40] sm:$0xf] }
  0x9e   : > { %v983_v38 = vsel %vm7692_vm4, %v978_v25, %v982_v13  ;;  %v1006_v39 = vrot.slane %v1004_v26, 5  ;;  %v1470_v23 = vrot.slane %v1368_v15, 5  ;;  %6842 = vmatmul.mubr.msk.bf16.gmra.mrb[24].mxu1 %vm327_vm1, %v6005_v54  ;;  %v6025_v46 = vrot.slane %v1369_v18, 9  ;;  %v1383_v8 = vld [vmem:[%s7645_s11 + $0x44] sm:$0x1]  ;;  %v7435_v34 = vld [vmem:[%s7645_s11 + $0x78] sm:$0xff]  }
  0x9f   : > { %v6006_v41 = vcombine.low %v973_v6, %v983_v38  ;;  %v992_v44 = vrot.slane %v991_v7, 4  ;;  %v1001_v45 = vor.u32 %v1000_v33, %v996_v19  ;;  %v1468_v48 = vsel %vm7767_vm7, %v6024_v27, %v1467_v9  ;;  %v1384_v3 = vld [vmem:[%s7645_s11 + $0x48] sm:$0xe]  ;;  %v1385_v20 = vld [vmem:[%s7645_s11 + $0x4c] sm:$0xf] }
  0xa0   : > { %v1469_v49 = vrot.slane %v1467_v9, 4  ;;  %v1474_v50 = vrot.slane %v1370_v21, 5  ;;  %v1477_v51 = vrot.slane %v1371_v22, 5  ;;  %v6026_v55 = vrot.slane %v1372_v31, 9  ;;  %v1386_v21 = vld [vmem:[%s7645_s11 + $0x50] sm:$0x1] }
  0xa1   : > { %6845 = vmatprep.mubr.msk.bf16.mxu1 %vm327_vm1, %v6006_v41  ;;  %v997_v53 = vsel %vm7692_vm4, %v992_v44, %v996_v19  ;;  %v1002_v12 = vrot.slane %v1001_v45, 4  ;;  %v1481_v56 = vrot.slane %v1373_v32, 5  ;;  %v1484_v57 = vrot.slane %v1374_v36, 5  ;;  %v1387_v27 = vld [vmem:[%s7645_s11 + $0x54] sm:$0xe] }
  0xa2   : > { %6996 = vmatmul.mubr.msk.bf16.gmra.mrb[8].mxu0 %vm327_vm1, %v7432_v35  ;;  %v1471_v37 = vsel %vm7767_vm7, %v1469_v49, %v1470_v23  ;;  %v8126_v28 = vsel %vm7767_vm7, %v6025_v46, %v1474_v50  ;;  %v1476_v14 = vrot.slane %v1474_v50, 4  ;;  %v6027_v11 = vrot.slane %v1375_v47, 9  ;;  %v1388_v31 = vld [vmem:[%s7645_s11 + $0x58] sm:$0xf]  ;;  %v1389_v7 = vld [vmem:[%s7645_s11 + $0x5c] sm:$0x1] }
  0xa3   : > { %v1007_v62 = vsel %vm7692_vm4, %v1002_v12, %v1006_v39  ;;  %v6041_v63 = vcombine.low %v1468_v48, %v1471_v37  ;;  %6999 = vmatprep.mubr.msk.bf16.mxu0 %vm327_vm1, %v7433_v40  ;;  %v8137_v1 = vsel %vm7767_vm7, %v6026_v55, %v1481_v56  ;;  %v1483_v2 = vrot.slane %v1481_v56, 4  ;;  %v1390_v39 = vld [vmem:[%s7645_s11 + $0x60] sm:$0xe]  ;;  %v1391_v44 = vld [vmem:[%s7645_s11 + $0x64] sm:$0xf] }
  0xa4   : > { %v6007_v5 = vcombine.low %v997_v53, %v1007_v62  ;;  %v8143_v15 = vsel %vm7767_vm7, %v1476_v14, %v1477_v51  ;;  %v1488_v13 = vrot.slane %v1376_v16, 5  ;;  %v1491_v29 = vrot.slane %v1377_v52, 5  ;;  %v1392_v45 = vld [vmem:[%s7645_s11 + $0x68] sm:$0x1]  ;;  %v1393_v46 = vld [vmem:[%s7645_s11 + $0x6c] sm:$0xe] }
  0xa5   : > { %v6042_v17 = vcombine.low %v8126_v28, %v8143_v15  ;;  %v8150_v18 = vsel %vm7767_vm7, %v1483_v2, %v1484_v57  ;;  %v8155_v19 = vsel %vm376_vm0, %v8078_v42, 0  ;;  %v6028_v26 = vrot.slane %v1378_v30, 9  ;;  %v1394_v47 = vld [vmem:[%s7645_s11 + $0x70] sm:$0xf]  ;;  %v1395_v51 = vld [vmem:[%s7645_s11 + $0x74] sm:$0x1] }
  0xa6   : > { %v6043_v22 = vcombine.low %v8137_v1, %v8150_v18  ;;  %v8163_v24 = vsel %vm7767_vm7, %v6027_v11, %v1488_v13  ;;  %v1490_v25 = vrot.slane %v1488_v13, 4  ;;  %6846 = vmatmul.mubr.msk.bf16.gmra.mrb[28].mxu1 %vm327_vm1, %v6007_v5  ;;  %v1495_v32 = vrot.slane %v1379_v58, 5  ;;  %v1396_v14 = vld [vmem:[%s7645_s11 + $0x78] sm:$0xe]  ;;  %v1397_v57 = vld [vmem:[%s7645_s11 + $0x7c] sm:$0xf] }
  0xa7   : > { %v1498_v42 = vrot.slane %v1380_v59, 5  ;;  %v6029_v54 = vrot.slane %v1381_v60, 9  ;;  %v1502_v6 = vrot.slane %v1382_v61, 5  ;;  %6851 = vmatprep.mubr.msk.bf16.mxu1 %vm327_vm1, %v6041_v63  ;;  %v1505_v35 = vrot.slane %v1383_v8, 5  ;;  %v7436_v58 = vld [vmem:[%s7645_s11 + $0x84] sm:$0xff]  }
  0xa8   : > { %v8172_v33 = vsel %vm7767_vm7, %v1490_v25, %v1491_v29  ;;  %v6030_v36 = vrot.slane %v1384_v3, 9  ;;  %v1509_v38 = vrot.slane %v1385_v20, 5  ;;  %v8179_v23 = vsel %vm7767_vm7, %v6028_v26, %v1495_v32  ;;  %v1398_v63 = vld [vmem:[%s7645_s11 + $0x80] sm:$0x1]  ;;  %v1399_v1 = vld [vmem:[%s7645_s11 + $0x84] sm:$0xe] }
  0xa9   : > { %v6044_v9 = vcombine.low %v8163_v24, %v8172_v33  ;;  %v1497_v40 = vrot.slane %v1495_v32, 4  ;;  %v8183_v41 = vsel %vm7767_vm7, %v6029_v54, %v1502_v6  ;;  %v1504_v16 = vrot.slane %v1502_v6, 4  ;;  %v1400_v15 = vld [vmem:[%s7645_s11 + $0x88] sm:$0xf]  ;;  %v6381_v26 = vld [vmem:[%s7645_s11 + $0x18] sm:$0xf] }
  0xaa   : > { %7000 = vmatmul.mubr.msk.bf16.gmra.mrb[12].mxu0 %vm327_vm1, %v7434_v10  ;;  %v8192_v48 = vsel %vm7767_vm7, %v6030_v36, %v1509_v38  ;;  %v1511_v49 = vrot.slane %v1509_v38, 4  ;;  %v1512_v50 = vrot.slane %v1386_v21, 5  ;;  %v6031_v53 = vrot.slane %v1387_v27, 9  ;;  %v7437_v10 = vld [vmem:[%s7645_s11 + $0x90] sm:$0xff]   ;;  %v6382_v32 = vld [vmem:[%s7645_s11 + $0x1c] sm:$0xf] }
  0xab   : > { %7003 = vmatprep.mubr.msk.bf16.mxu0 %vm327_vm1, %v7435_v34  ;;  %v8198_v52 = vsel %vm7767_vm7, %v1497_v40, %v1498_v42  ;;  %v1516_v12 = vrot.slane %v1388_v31, 5  ;;  %v1519_v55 = vrot.slane %v1389_v7, 5  ;;  %v8204_v30 = vsel %vm7767_vm7, %v1504_v16, %v1505_v35  ;;  %v1401_v34 = vld [vmem:[%s7645_s11 + $0x8c] sm:$0x1]  ;;  %v7459_v42 = vld [vmem:[%s9019_s1 + $0x8] sm:$0x3] }
  0xac   : > { %v6045_v56 = vcombine.low %v8179_v23, %v8198_v52  ;;  %v8208_v37 = vsel %vm7767_vm7, %v1511_v49, %v1512_v50  ;;  %v6032_v28 = vrot.slane %v1390_v39, 9  ;;  %v6046_v59 = vcombine.low %v8183_v41, %v8204_v30  ;;  %v6526_v36 = vld [vmem:[%s9019_s1 + $0x10] sm:$0x3] }
  0xad   : > { %v6047_v60 = vcombine.low %v8192_v48, %v8208_v37  ;;  %v8219_v61 = vsel %vm7767_vm7, %v6031_v53, %v1516_v12  ;;  %v1518_v62 = vrot.slane %v1516_v12, 4  ;;  %v1523_v2 = vrot.slane %v1391_v44, 5  ;;  %v6383_v44 = vld [vmem:[%s7645_s11 + $0x20] sm:$0x1]  ;;  %7354 = vmatprep.subr.msk.bf16.mxu0 %vm376_vm0, %v6526_v36 }
  0xae   : > { %v1526_v8 = vrot.slane %v1392_v45, 5  ;;  %v6033_v3 = vrot.slane %v1393_v46, 9  ;;  %v1530_v5 = vrot.slane %v1394_v47, 5  ;;  %6852 = vmatmul.mubr.msk.bf16.vlgmr.msra.gmra.mrb[0].mxu1 %vm327_vm1, %v6042_v17  ;;  %v1533_v13 = vrot.slane %v1395_v51, 5  ;;  %v6384_v46 = vld [vmem:[%s7645_s11 + $0x24] sm:$0xf] }
  0xaf   : > { %v8228_v11 = vsel %vm7767_vm7, %v1518_v62, %v1519_v55  ;;  %v6034_v18 = vrot.slane %v1396_v14, 9  ;;  %v1537_v29 = vrot.slane %v1397_v57, 5  ;;  %6855 = vmatprep.mubr.msk.bf16.mxu1 %vm327_vm1, %v6043_v22  ;;  %6884 = vmatpush3.bf16.msra.mxu1 %v8155_v19  ;;  %v8237_v17 = vsel %vm7767_vm7, %v6032_v28, %v1523_v2  ;;  %v6385_v28 = vld [vmem:[%s7645_s11 + $0x28] sm:$0xf]  ;;  %v7438_v14 = vld [vmem:[%s7645_s11 + $0x9c] sm:$0xff]  }
  0xb0   : > { %v6048_v20 = vcombine.low %v8219_v61, %v8228_v11  ;;  %v1525_v21 = vrot.slane %v1523_v2, 4  ;;  %v8241_v25 = vsel %vm7767_vm7, %v6033_v3, %v1530_v5  ;;  %v1532_v27 = vrot.slane %v1530_v5, 4  ;;  %7350 = vmatprep.subr.msk.bf16.mxu1 %vm376_vm0, %v7459_v42  ;;  %v6386_v62 = vld [vmem:[%s7645_s11 + $0x2c] sm:$0x1] }
  0xb1   : > { %v8246_v31 = vsel %vm7767_vm7, %v6034_v18, %v1537_v29  ;;  %v1539_v19 = vrot.slane %v1537_v29, 4  ;;  %v1540_v22 = vrot.slane %v1398_v63, 5  ;;  %v6035_v6 = vrot.slane %v1399_v1, 9  ;;  %v7439_v2 = vld [vmem:[%s7645_s11 + $0xa8] sm:$0xff]   ;;  %v1403_v18 = vld [vmem:[%s7645_s11 + $0x94] sm:$0xf] }
  0xb2   : > { %7004 = vmatmul.mubr.msk.bf16.gmra.mrb[16].mxu0 %vm327_vm1, %v7436_v58  ;;  %v8256_v54 = vsel %vm7767_vm7, %v1525_v21, %v1526_v8  ;;  %v1544_v7 = vrot.slane %v1400_v15, 5  ;;  %v1547_v35 = vrot.slane %v1401_v34, 5  ;;  %v8266_v39 = vsel %vm7767_vm7, %v1532_v27, %v1533_v13  ;;  %v1404_v27 = vld [vmem:[%s7645_s11 + $0x98] sm:$0x1] }
  0xb3   : > { %7007 = vmatprep.mubr.msk.bf16.mxu0 %vm327_vm1, %v7437_v10  ;;  %v6049_v38 = vcombine.low %v8237_v17, %v8256_v54  ;;  %v8270_v40 = vsel %vm7767_vm7, %v1539_v19, %v1540_v22  ;;  %v4192_v45 = vshrl.u32 %v6381_v26, 16  ;;  %v6050_v47 = vcombine.low %v8241_v25, %v8266_v39  ;;  %v1402_v10 = vld [vmem:[%s7645_s11 + $0x90] sm:$0xe]  ;;  %v1405_v19 = vld [vmem:[%s7645_s11 + $0x9c] sm:$0xe] }
  0xb4   : > { %v6051_v16 = vcombine.low %v8246_v31, %v8270_v40  ;;  %v8281_v49 = vsel %vm7767_vm7, %v6035_v6, %v1544_v7  ;;  %v1546_v50 = vrot.slane %v1544_v7, 4  ;;  %v4195_v53 = vshll.u32 %v6381_v26, 16  ;;  %v6394_v17 = vld [vmem:[%s7645_s11 + $0x4c] sm:$0xf]  ;;  %v6400_v39 = vld [vmem:[%s7645_s11 + $0x64] sm:$0xf] }
  0xb5   : > { %v4194_v51 = vrot.slane %v4192_v45, 4  ;;  %v4201_v12 = vshll.u32 %v6382_v32, 16  ;;  %v4205_v55 = vshrl.u32 %v6382_v32, 16  ;;  %v4211_v58 = vshll.u32 %v6383_v44, 16 }
  0xb6   : > { %v8287_v57 = vsel %vm7767_vm7, %v1546_v50, %v1547_v35  ;;  %v4216_v63 = vshrl.u32 %v6384_v46, 16  ;;  %v4219_v1 = vshll.u32 %v6384_v46, 16  ;;  %6856 = vmatmul.mubr.msk.bf16.gmra.mrb[4].mxu1 %vm327_vm1, %v6044_v9  ;;  %v4197_v3 = vrot.slane %v4195_v53, 5  ;;  %v1407_v50 = vld [vmem:[%s7645_s11 + $0xa4] sm:$0x1] }
  0xb7   : > { %v6052_v8 = vcombine.low %v8281_v49, %v8287_v57  ;;  %v4203_v5 = vrot.slane %v4201_v12, 5  ;;  %v4207_v15 = vrot.slane %v4205_v55, 4  ;;  %6859 = vmatprep.mubr.msk.bf16.mxu1 %vm327_vm1, %v6045_v56  ;;  %v4213_v13 = vrot.slane %v4211_v58, 5  ;;  %v1406_v56 = vld [vmem:[%s7645_s11 + $0xa0] sm:$0xf]  ;;  %v7440_v58 = vld [vmem:[%s7645_s11 + $0xb4] sm:$0xff]  }
  0xb8   : > { %v4218_v24 = vrot.slane %v4216_v63, 4  ;;  %v4221_v33 = vrot.slane %v4219_v1, 5  ;;  %v4225_v9 = vshll.u32 %v6385_v28, 16  ;;  %v4198_v29 = vor.u32 %v4197_v3, %v4194_v51  ;;  %v7441_v3 = vld [vmem:[%s7645_s11 + $0xc0] sm:$0xff]  }
  0xb9   : > { %v4208_v34 = vor.u32 %v4207_v15, %v4203_v5  ;;  %v4229_v21 = vshrl.u32 %v6385_v28, 16  ;;  %v4235_v26 = vshll.u32 %v6386_v62, 16  ;;  %v8307_v23 = vsel %vm376_vm0, %v6526_v36, 0  ;;  %v6387_v28 = vld [vmem:[%s7645_s11 + $0x30] sm:$0xf] }
  0xba   : > { %7008 = vmatmul.mubr.msk.bf16.gmra.mrb[20].mxu0 %vm327_vm1, %v7438_v14  ;;  %v4222_v22 = vor.u32 %v4221_v33, %v4218_v24  ;;  %v4227_v32 = vrot.slane %v4225_v9, 5  ;;  %v6036_v52 = vrot.slane %v1402_v10, 9  ;;  %v4199_v42 = vrot.slane %v4198_v29, 4  ;;  %v6388_v14 = vld [vmem:[%s7645_s11 + $0x34] sm:$0xf] }
  0xbb   : > { %7011 = vmatprep.mubr.msk.bf16.mxu0 %vm327_vm1, %v7439_v2  ;;  %v4209_v6 = vrot.slane %v4208_v34, 4  ;;  %v4231_v7 = vrot.slane %v4229_v21, 4  ;;  %v4237_v35 = vrot.slane %v4235_v26, 5  ;;  %v1551_v45 = vrot.slane %v1403_v18, 5  ;;  %v6389_v24 = vld [vmem:[%s7645_s11 + $0x38] sm:$0x1] }
  0xbc   : > { %v4223_v44 = vrot.slane %v4222_v22, 4  ;;  %v1554_v46 = vrot.slane %v1404_v27, 5  ;;  %v6037_v51 = vrot.slane %v1405_v19, 9  ;;  %v4204_v36 = vsel %vm7692_vm4, %v4199_v42, %v4203_v5  ;;  %v6390_v9 = vld [vmem:[%s7645_s11 + $0x3c] sm:$0xf] }
  0xbd   : > { %v4214_v53 = vsel %vm7692_vm4, %v4209_v6, %v4213_v13  ;;  %v4232_v12 = vor.u32 %v4231_v7, %v4227_v32  ;;  %v1558_v55 = vrot.slane %v1406_v56, 5  ;;  %v8325_v1 = vsel %vm7767_vm7, %v6036_v52, %v1551_v45  ;;  %v6392_v34 = vld [vmem:[%s7645_s11 + $0x44] sm:$0x1]  ;;  %v1408_v22 = vld [vmem:[%s7645_s11 + $0xa8] sm:$0xe] }
  0xbe   : > { %v8319_v62 = vcombine.low %v4204_v36, %v4214_v53  ;;  %v4228_v63 = vsel %vm7692_vm4, %v4223_v44, %v4227_v32  ;;  %v1553_v2 = vrot.slane %v1551_v45, 4  ;;  %6860 = vmatmul.mubr.msk.bf16.gmra.mrb[8].mxu1 %vm327_vm1, %v6046_v59  ;;  %v1561_v13 = vrot.slane %v1407_v50, 5  ;;  %v1409_v32 = vld [vmem:[%s7645_s11 + $0xac] sm:$0xf]  ;;  %v1410_v7 = vld [vmem:[%s7645_s11 + $0xb0] sm:$0x1] }
  0xbf   : > { %v4233_v5 = vrot.slane %v4232_v12, 4  ;;  %v8334_v15 = vsel %vm7767_vm7, %v6037_v51, %v1558_v55  ;;  %v1560_v10 = vrot.slane %v1558_v55, 4  ;;  %6863 = vmatprep.mubr.msk.bf16.mxu1 %vm327_vm1, %v6047_v60  ;;  %v4240_v30 = vshrl.u32 %v6387_v28, 16  ;;  %v6391_v60 = vld [vmem:[%s7645_s11 + $0x40] sm:$0xf]  ;;  %v7442_v51 = vld [vmem:[%s7645_s11 + $0xcc] sm:$0xff]  }
  0xc0   : > { %v8343_v41 = vsel %vm7767_vm7, %v1553_v2, %v1554_v46  ;;  %v4243_v59 = vshll.u32 %v6387_v28, 16  ;;  %v4249_v33 = vshll.u32 %v6388_v14, 16  ;;  %v4253_v37 = vshrl.u32 %v6388_v14, 16  ;;  %v1411_v50 = vld [vmem:[%s7645_s11 + $0xb4] sm:$0xe] }
  0xc1   : > { %v4238_v18 = vsel %vm7692_vm4, %v4233_v5, %v4237_v35  ;;  %v6053_v29 = vcombine.low %v8325_v1, %v8343_v41  ;;  %v8352_v48 = vsel %vm7767_vm7, %v1560_v10, %v1561_v13  ;;  %v4242_v27 = vrot.slane %v4240_v30, 4  ;;  %v1412_v28 = vld [vmem:[%s7645_s11 + $0xb8] sm:$0xf]  ;;  %v6393_v5 = vld [vmem:[%s7645_s11 + $0x48] sm:$0xf] }
  0xc2   : > { %7012 = vmatmul.mubr.msk.bf16.gmra.mrb[24].mxu0 %vm327_vm1, %v7440_v58  ;;  %v8357_v21 = vcombine.low %v4228_v63, %v4238_v18  ;;  %v6054_v26 = vcombine.low %v8334_v15, %v8352_v48  ;;  %v4245_v19 = vrot.slane %v4243_v59, 5  ;;  %v4251_v52 = vrot.slane %v4249_v33, 5 }
  0xc3   : > { %7015 = vmatprep.mubr.msk.bf16.mxu0 %vm327_vm1, %v7441_v3  ;;  %v4255_v56 = vrot.slane %v4253_v37, 4  ;;  %v4259_v42 = vshll.u32 %v6389_v24, 16  ;;  %v4264_v6 = vshrl.u32 %v6390_v9, 16  ;;  %v4267_v44 = vshll.u32 %v6390_v9, 16  ;;  %v1413_v3 = vld [vmem:[%s7645_s11 + $0xbc] sm:$0x1] }
  0xc4   : > { %v4246_v35 = vor.u32 %v4245_v19, %v4242_v27  ;;  %v4273_v45 = vshll.u32 %v6391_v60, 16  ;;  %v4277_v46 = vshrl.u32 %v6391_v60, 16  ;;  %v4283_v55 = vshll.u32 %v6392_v34, 16  ;;  %v6395_v27 = vld [vmem:[%s7645_s11 + $0x50] sm:$0x1] }
  0xc5   : > { %v4256_v36 = vor.u32 %v4255_v56, %v4251_v52  ;;  %v4261_v53 = vrot.slane %v4259_v42, 5  ;;  %v4266_v12 = vrot.slane %v4264_v6, 4  ;;  %v4269_v58 = vrot.slane %v4267_v44, 5  ;;  %v6396_v56 = vld [vmem:[%s7645_s11 + $0x54] sm:$0xf] }
  0xc6   : > { %v4247_v14 = vrot.slane %v4246_v35, 4  ;;  %v4275_v63 = vrot.slane %v4273_v45, 5  ;;  %v4279_v2 = vrot.slane %v4277_v46, 4  ;;  %6864 = vmatmul.mubr.msk.bf16.gmra.mrb[12].mxu1 %vm327_vm1, %v6048_v20  ;;  %v4285_v13 = vrot.slane %v4283_v55, 5  ;;  %v6397_v35 = vld [vmem:[%s7645_s11 + $0x58] sm:$0xf] }
  0xc7   : > { %v4257_v10 = vrot.slane %v4256_v36, 4  ;;  %v6038_v24 = vrot.slane %v1408_v22, 9  ;;  %v1565_v30 = vrot.slane %v1409_v32, 5  ;;  %6867 = vmatprep.mubr.msk.bf16.mxu1 %vm327_vm1, %v6049_v38  ;;  %v4270_v33 = vor.u32 %v4269_v58, %v4266_v12  ;;  %v6399_v36 = vld [vmem:[%s7645_s11 + $0x60] sm:$0xf] }
  0xc8   : > { %v4252_v59 = vsel %vm7692_vm4, %v4247_v14, %v4251_v52  ;;  %v4280_v9 = vor.u32 %v4279_v2, %v4275_v63  ;;  %v1568_v18 = vrot.slane %v1410_v7, 5  ;;  %v6039_v37 = vrot.slane %v1411_v50, 9 }
  0xc9   : > { %v4262_v61 = vsel %vm7692_vm4, %v4257_v10, %v4261_v53  ;;  %v8384_v11 = vsel %vm7767_vm7, %v6038_v24, %v1565_v30  ;;  %v1567_v20 = vrot.slane %v1565_v30, 4  ;;  %v4271_v38 = vrot.slane %v4270_v33, 4 }
  0xca   : > { %7016 = vmatmul.mubr.msk.bf16.gmra.mrb[28].mxu0 %vm327_vm1, %v7442_v51  ;;  %v6432_v54 = vcombine.low %v4252_v59, %v4262_v61  ;;  %v4281_v60 = vrot.slane %v4280_v9, 4  ;;  %v1572_v34 = vrot.slane %v1412_v28, 5  ;;  %v1575_v22 = vrot.slane %v1413_v3, 5  ;;  %v6398_v51 = vld [vmem:[%s7645_s11 + $0x5c] sm:$0x1] }
  0xcb   : > { %7021 = vmatprep.mubr.msk.bf16.mxu0 %vm327_vm1, %v8319_v62  ;;  %v8393_v19 = vsel %vm7767_vm7, %v1567_v20, %v1568_v18  ;;  %v4288_v32 = vshrl.u32 %v6393_v5, 16  ;;  %v4291_v52 = vshll.u32 %v6393_v5, 16  ;;  %v4276_v42 = vsel %vm7692_vm4, %v4271_v38, %v4275_v63  ;;  %v6401_v18 = vld [vmem:[%s7645_s11 + $0x68] sm:$0x1] }
  0xcc   : > { %v4286_v6 = vsel %vm7692_vm4, %v4281_v60, %v4285_v13  ;;  %v6055_v7 = vcombine.low %v8384_v11, %v8393_v19  ;;  %v8404_v62 = vsel %vm7767_vm7, %v6039_v37, %v1572_v34  ;;  %v1574_v45 = vrot.slane %v1572_v34, 4  ;;  %v6402_v37 = vld [vmem:[%s7645_s11 + $0x6c] sm:$0xf]  ;;  %v6403_v34 = vld [vmem:[%s7645_s11 + $0x70] sm:$0xf] }
  0xcd   : > { %v8407_v44 = vcombine.low %v4276_v42, %v4286_v6  ;;  %v4290_v46 = vrot.slane %v4288_v32, 4  ;;  %v4293_v50 = vrot.slane %v4291_v52, 5  ;;  %v4297_v53 = vshll.u32 %v6394_v17, 16 }
  0xce   : > { %v4301_v12 = vshrl.u32 %v6394_v17, 16  ;;  %v4307_v55 = vshll.u32 %v6395_v27, 16  ;;  %v4312_v28 = vshrl.u32 %v6396_v56, 16  ;;  %6868 = vmatmul.mubr.msk.bf16.gmra.mrb[16].mxu1 %vm327_vm1, %v6050_v47  ;;  %v8417_v14 = vsel %vm7767_vm7, %v1574_v45, %v1575_v22 }
  0xcf   : > { %v4294_v58 = vor.u32 %v4293_v50, %v4290_v46  ;;  %v4315_v63 = vshll.u32 %v6396_v56, 16  ;;  %v4321_v2 = vshll.u32 %v6397_v35, 16  ;;  %6871 = vmatprep.mubr.msk.bf16.mxu1 %vm327_vm1, %v6051_v16  ;;  %v6056_v3 = vcombine.low %v8404_v62, %v8417_v14 }
  0xd0   : > { %v4299_v5 = vrot.slane %v4297_v53, 5  ;;  %v4303_v10 = vrot.slane %v4301_v12, 4  ;;  %v4309_v25 = vrot.slane %v4307_v55, 5  ;;  %v4314_v13 = vrot.slane %v4312_v28, 4 }
  0xd1   : > { %v4295_v47 = vrot.slane %v4294_v58, 4  ;;  %v4317_v24 = vrot.slane %v4315_v63, 5  ;;  %v4323_v30 = vrot.slane %v4321_v2, 5  ;;  %v4325_v31 = vshrl.u32 %v6397_v35, 16 }
  0xd2   : > { %7022 = vmatmul.mubr.msk.bf16.vlgmr.msra.gmra.mrb[0].mxu0 %vm327_vm1, %v8357_v21  ;;  %v4304_v59 = vor.u32 %v4303_v10, %v4299_v5  ;;  %v4331_v40 = vshll.u32 %v6398_v51, 16  ;;  %v4336_v16 = vshrl.u32 %v6399_v36, 16  ;;  %v4339_v61 = vshll.u32 %v6399_v36, 16  ;;  %v6405_v51 = vld [vmem:[%s7645_s11 + $0x78] sm:$0xf] }
  0xd3   : > { %7054 = vmatpush3.bf16.msra.mxu0 %v8307_v23  ;;  %7025 = vmatprep.mubr.msk.bf16.mxu0 %vm327_vm1, %v6432_v54  ;;  %v4300_v33 = vsel %vm7692_vm4, %v4295_v47, %v4299_v5  ;;  %v4318_v9 = vor.u32 %v4317_v24, %v4314_v13  ;;  %v4345_v20 = vshll.u32 %v6400_v39, 16  ;;  %v4327_v21 = vrot.slane %v4325_v31, 4  ;;  %v6404_v54 = vld [vmem:[%s7645_s11 + $0x74] sm:$0x1]  ;;  %v6408_v47 = vld [vmem:[%s7645_s11 + $0x84] sm:$0xf] }
  0xd4   : > { %v4305_v17 = vrot.slane %v4304_v59, 4  ;;  %v4333_v38 = vrot.slane %v4331_v40, 5  ;;  %v4338_v60 = vrot.slane %v4336_v16, 4  ;;  %v4341_v22 = vrot.slane %v4339_v61, 5  ;;  %v6409_v59 = vld [vmem:[%s7645_s11 + $0x88] sm:$0xf] }
  0xd5   : > { %v4319_v27 = vrot.slane %v4318_v9, 4  ;;  %v4347_v23 = vrot.slane %v4345_v20, 5  ;;  %v4349_v32 = vshrl.u32 %v6400_v39, 16  ;;  %v4328_v56 = vor.u32 %v4327_v21, %v4323_v30  ;;  %v6407_v39 = vld [vmem:[%s7645_s11 + $0x80] sm:$0x1] }
  0xd6   : > { %v4310_v52 = vsel %vm7692_vm4, %v4305_v17, %v4309_v25  ;;  %v4355_v42 = vshll.u32 %v6401_v18, 16  ;;  %v4360_v6 = vshrl.u32 %v6402_v37, 16  ;;  %6872 = vmatmul.mubr.msk.bf16.gmra.mrb[20].mxu1 %vm327_vm1, %v6052_v8  ;;  %v4342_v46 = vor.u32 %v4341_v22, %v4338_v60 }
  0xd7   : > { %v6434_v35 = vcombine.low %v4300_v33, %v4310_v52  ;;  %v4324_v45 = vsel %vm7692_vm4, %v4319_v27, %v4323_v30  ;;  %v4351_v50 = vrot.slane %v4349_v32, 4  ;;  %6875 = vmatprep.mubr.msk.bf16.mxu1 %vm327_vm1, %v6053_v29  ;;  %v4329_v36 = vrot.slane %v4328_v56, 4  ;;  %v6406_v29 = vld [vmem:[%s7645_s11 + $0x7c] sm:$0xf]  ;;  %v6412_v52 = vld [vmem:[%s7645_s11 + $0x94] sm:$0xf] }
  0xd8   : > { %v4357_v53 = vrot.slane %v4355_v42, 5  ;;  %v4362_v12 = vrot.slane %v4360_v6, 4  ;;  %v4363_v55 = vshll.u32 %v6402_v37, 16  ;;  %v4343_v49 = vrot.slane %v4342_v46, 4  ;;  %v6413_v42 = vld [vmem:[%s7645_s11 + $0x98] sm:$0x1] }
  0xd9   : > { %v4352_v57 = vor.u32 %v4351_v50, %v4347_v23  ;;  %v4369_v8 = vshll.u32 %v6403_v34, 16  ;;  %v4373_v28 = vshrl.u32 %v6403_v34, 16  ;;  %v4334_v58 = vsel %vm7692_vm4, %v4329_v36, %v4333_v38  ;;  %v6410_v38 = vld [vmem:[%s7645_s11 + $0x8c] sm:$0x1]  ;;  %v6414_v50 = vld [vmem:[%s7645_s11 + $0x9c] sm:$0xf] }
  0xda   : > { %7026 = vmatmul.mubr.msk.bf16.gmra.mrb[4].mxu0 %vm327_vm1, %v8407_v44  ;;  %v4365_v1 = vrot.slane %v4363_v55, 5  ;;  %v4379_v41 = vshll.u32 %v6404_v54, 16  ;;  %v4384_v63 = vshrl.u32 %v6405_v51, 16  ;;  %v6435_v2 = vcombine.low %v4324_v45, %v4334_v58  ;;  %v6411_v54 = vld [vmem:[%s7645_s11 + $0x90] sm:$0xf] }
  0xdb   : > { %7029 = vmatprep.mubr.msk.bf16.mxu0 %vm327_vm1, %v6434_v35  ;;  %v4348_v5 = vsel %vm7692_vm4, %v4343_v49, %v4347_v23  ;;  %v4353_v10 = vrot.slane %v4352_v57, 4  ;;  %v4371_v25 = vrot.slane %v4369_v8, 5  ;;  %v4375_v44 = vrot.slane %v4373_v28, 4 }
  0xdc   : > { %v4366_v13 = vor.u32 %v4365_v1, %v4362_v12  ;;  %v4381_v24 = vrot.slane %v4379_v41, 5  ;;  %v4386_v30 = vrot.slane %v4384_v63, 4  ;;  %v4387_v40 = vshll.u32 %v6405_v51, 16  ;;  %v7443_v51 = vld [vmem:[%s7645_s11 + $0xc] sm:$0xff]   ;;  %v6415_v63 = vld [vmem:[%s7645_s11 + $0xa0] sm:$0xf] }
  0xdd   : > { %v4358_v31 = vsel %vm7692_vm4, %v4353_v10, %v4357_v53  ;;  %v4393_v16 = vshll.u32 %v6406_v29, 16  ;;  %v4397_v33 = vshrl.u32 %v6406_v29, 16  ;;  %v4376_v61 = vor.u32 %v4375_v44, %v4371_v25 }
  0xde   : > { %v6436_v9 = vcombine.low %v4348_v5, %v4358_v31  ;;  %v4367_v18 = vrot.slane %v4366_v13, 4  ;;  %v4403_v20 = vshll.u32 %v6407_v39, 16  ;;  %6876 = vmatmul.mubr.msk.bf16.gmra.mrb[24].mxu1 %vm327_vm1, %v6054_v26  ;;  %v4389_v37 = vrot.slane %v4387_v40, 5  ;;  %v6416_v13 = vld [vmem:[%s7645_s11 + $0xa4] sm:$0x1]  ;;  %v7444_v31 = vld [vmem:[%s7645_s11 + $0x18] sm:$0xff]  }
  0xdf   : > { %v4395_v17 = vrot.slane %v4393_v16, 5  ;;  %v4399_v21 = vrot.slane %v4397_v33, 4  ;;  %v4408_v60 = vshrl.u32 %v6408_v47, 16  ;;  %6879 = vmatprep.mubr.msk.bf16.mxu1 %vm327_vm1, %v6055_v7  ;;  %v4377_v27 = vrot.slane %v4376_v61, 4 }
  0xe0   : > { %v4372_v34 = vsel %vm7692_vm4, %v4367_v18, %v4371_v25  ;;  %v4405_v15 = vrot.slane %v4403_v20, 5  ;;  %v4411_v48 = vshll.u32 %v6408_v47, 16  ;;  %v4390_v22 = vor.u32 %v4389_v37, %v4386_v30  ;;  %v6418_v18 = vld [vmem:[%s7645_s11 + $0xac] sm:$0xf] }
  0xe1   : > { %v4400_v26 = vor.u32 %v4399_v21, %v4395_v17  ;;  %v4410_v23 = vrot.slane %v4408_v60, 4  ;;  %v4417_v32 = vshll.u32 %v6409_v59, 16  ;;  %v4382_v11 = vsel %vm7692_vm4, %v4377_v27, %v4381_v24  ;;  %v6419_v21 = vld [vmem:[%s7645_s11 + $0xb0] sm:$0x1] }
  0xe2   : > { %7030 = vmatmul.mubr.msk.bf16.gmra.mrb[8].mxu0 %vm327_vm1, %v6435_v2  ;;  %v4413_v19 = vrot.slane %v4411_v48, 5  ;;  %v4421_v7 = vshrl.u32 %v6409_v59, 16  ;;  %v4427_v56 = vshll.u32 %v6410_v38, 16  ;;  %v6437_v6 = vcombine.low %v4372_v34, %v4382_v11  ;;  %v6417_v59 = vld [vmem:[%s7645_s11 + $0xa8] sm:$0xf] }
  0xe3   : > { %7033 = vmatprep.mubr.msk.bf16.mxu0 %vm327_vm1, %v6436_v9  ;;  %v4391_v35 = vrot.slane %v4390_v22, 4  ;;  %v4401_v45 = vrot.slane %v4400_v26, 4  ;;  %v4419_v46 = vrot.slane %v4417_v32, 5  ;;  %v4432_v55 = vshrl.u32 %v6411_v54, 16  ;;  %v7445_v38 = vld [vmem:[%s7645_s11 + $0x24] sm:$0xff]  }
  0xe4   : > { %v4414_v36 = vor.u32 %v4413_v19, %v4410_v23  ;;  %v4423_v53 = vrot.slane %v4421_v7, 4  ;;  %v4429_v12 = vrot.slane %v4427_v56, 5  ;;  %v4435_v8 = vshll.u32 %v6411_v54, 16  ;;  %v6420_v48 = vld [vmem:[%s7645_s11 + $0xb4] sm:$0xf] }
  0xe5   : > { %v4396_v49 = vsel %vm7692_vm4, %v4391_v35, %v4395_v17  ;;  %v4406_v57 = vsel %vm7692_vm4, %v4401_v45, %v4405_v15  ;;  %v4441_v28 = vshll.u32 %v6412_v52, 16  ;;  %v4434_v29 = vrot.slane %v4432_v55, 4  ;;  %v6421_v35 = vld [vmem:[%s7645_s11 + $0xb8] sm:$0xf]  ;;  %v6422_v55 = vld [vmem:[%s7645_s11 + $0xbc] sm:$0x1] }
  0xe6   : > { %v6438_v58 = vcombine.low %v4396_v49, %v4406_v57  ;;  %v4415_v1 = vrot.slane %v4414_v36, 4  ;;  %v4424_v41 = vor.u32 %v4423_v53, %v4419_v46  ;;  %6880 = vmatmul.mubr.msk.bf16.gmra.mrb[28].mxu1 %vm327_vm1, %v6056_v3  ;;  %v4437_v2 = vrot.slane %v4435_v8, 5  ;;  %v7446_v36 = vld [vmem:[%s7645_s11 + $0x30] sm:$0xff]   ;;  %v7447_v8 = vld [vmem:[%s7645_s11 + $0x3c] sm:$0xff]  }
  0xe7   : > { %v4443_v5 = vrot.slane %v4441_v28, 5  ;;  %v4445_v10 = vshrl.u32 %v6412_v52, 16  ;;  %v4451_v25 = vshll.u32 %v6413_v42, 16  ;;  %6885 = vmatprep.mubr.msk.bf16.mxu1 %vm327_vm1, %v7443_v51  ;;  %v4456_v44 = vshrl.u32 %v6414_v50, 16 }
  0xe8   : > { %v4420_v39 = vsel %vm7692_vm4, %v4415_v1, %v4419_v46  ;;  %v4425_v47 = vrot.slane %v4424_v41, 4  ;;  %v4459_v24 = vshll.u32 %v6414_v50, 16  ;;  %v4438_v30 = vor.u32 %v4437_v2, %v4434_v29  ;;  %v6423_v41 = vld [vmem:[%s7645_s11 + $0xc0] sm:$0xf] }
  0xe9   : > { %v4447_v62 = vrot.slane %v4445_v10, 4  ;;  %v4453_v14 = vrot.slane %v4451_v25, 5  ;;  %v4465_v3 = vshll.u32 %v6415_v63, 16  ;;  %v4458_v16 = vrot.slane %v4456_v44, 4  ;;  %v6424_v10 = vld [vmem:[%s7645_s11 + $0xc4] sm:$0xf] }
  0xea   : > { %7034 = vmatmul.mubr.msk.bf16.gmra.mrb[12].mxu0 %vm327_vm1, %v6437_v6  ;;  %v4430_v40 = vsel %vm7692_vm4, %v4425_v47, %v4429_v12  ;;  %v4461_v33 = vrot.slane %v4459_v24, 5  ;;  %v4469_v9 = vshrl.u32 %v6415_v63, 16  ;;  %v4439_v20 = vrot.slane %v4438_v30, 4  ;;  %v6425_v44 = vld [vmem:[%s7645_s11 + $0xc8] sm:$0x1] }
  0xeb   : > { %7037 = vmatprep.mubr.msk.bf16.mxu0 %vm327_vm1, %v6438_v58  ;;  %v6439_v61 = vcombine.low %v4420_v39, %v4430_v40  ;;  %v4448_v37 = vor.u32 %v4447_v62, %v4443_v5  ;;  %v4467_v17 = vrot.slane %v4465_v3, 5  ;;  %v4475_v27 = vshll.u32 %v6416_v13, 16 }
  0xec   : > { %v4462_v60 = vor.u32 %v4461_v33, %v4458_v16  ;;  %v4471_v34 = vrot.slane %v4469_v9, 4  ;;  %v4480_v15 = vshrl.u32 %v6417_v59, 16  ;;  %v4444_v22 = vsel %vm7692_vm4, %v4439_v20, %v4443_v5  ;;  %v6426_v16 = vld [vmem:[%s7645_s11 + $0xcc] sm:$0xf]  ;;  %v6427_v20 = vld [vmem:[%s7645_s11 + $0xd0] sm:$0xf] }
  0xed   : > { %v4449_v26 = vrot.slane %v4448_v37, 4  ;;  %v4483_v23 = vshll.u32 %v6417_v59, 16  ;;  %v4489_v32 = vshll.u32 %v6418_v18, 16  ;;  %v4477_v11 = vrot.slane %v4475_v27, 5 }
  0xee   : > { %v4463_v54 = vrot.slane %v4462_v60, 4  ;;  %v4472_v52 = vor.u32 %v4471_v34, %v4467_v17  ;;  %v4482_v19 = vrot.slane %v4480_v15, 4  ;;  %6886 = vmatmul.mubr.msk.bf16.vlgmr.msra.gmra.mrb[0].mxu1 %vm327_vm1, %v7444_v31  ;;  %v4493_v6 = vshrl.u32 %v6418_v18, 16  ;;  %v6428_v60 = vld [vmem:[%s7645_s11 + $0xd4] sm:$0x1]  ;;  %v7448_v34 = vld [vmem:[%s7645_s11 + $0x48] sm:$0xff]  }
  0xef   : > { %v4454_v7 = vsel %vm7692_vm4, %v4449_v26, %v4453_v14  ;;  %v4485_v56 = vrot.slane %v4483_v23, 5  ;;  %v4491_v42 = vrot.slane %v4489_v32, 5  ;;  %6889 = vmatprep.mubr.msk.bf16.mxu1 %vm327_vm1, %v7445_v38  ;;  %7088 = vmatpush3.bf16.msra.mxu1 %v7633_v4  ;;  %v4499_v51 = vshll.u32 %v6419_v21, 16  ;;  %v6462_v26 = vld [vmem:[%s7645_s11 + $0x18] sm:$0xe] }
  0xf0   : > { %v6440_v45 = vcombine.low %v4444_v22, %v4454_v7  ;;  %v4468_v46 = vsel %vm7692_vm4, %v4463_v54, %v4467_v17  ;;  %v4473_v50 = vrot.slane %v4472_v52, 4  ;;  %v4495_v12 = vrot.slane %v4493_v6, 4  ;;  %v6463_v23 = vld [vmem:[%s7645_s11 + $0x1c] sm:$0xf]  ;;  %v7449_v32 = vld [vmem:[%s7645_s11 + $0x54] sm:$0xff]  }
  0xf1   : > { %v4486_v53 = vor.u32 %v4485_v56, %v4482_v19  ;;  %v4504_v49 = vshrl.u32 %v6420_v48, 16  ;;  %v4507_v57 = vshll.u32 %v6420_v48, 16  ;;  %v4501_v28 = vrot.slane %v4499_v51, 5  ;;  %v6464_v7 = vld [vmem:[%s7645_s11 + $0x20] sm:$0x1] }
  0xf2   : > { %7038 = vmatmul.mubr.msk.bf16.gmra.mrb[16].mxu0 %vm327_vm1, %v6439_v61  ;;  %v4478_v4 = vsel %vm7692_vm4, %v4473_v50, %v4477_v11  ;;  %v4513_v58 = vshll.u32 %v6421_v35, 16  ;;  %v4517_v1 = vshrl.u32 %v6421_v35, 16  ;;  %v4496_v2 = vor.u32 %v4495_v12, %v4491_v42  ;;  %v6466_v56 = vld [vmem:[%s7645_s11 + $0x28] sm:$0xf] }
  0xf3   : > { %7041 = vmatprep.mubr.msk.bf16.mxu0 %vm327_vm1, %v6440_v45  ;;  %v6441_v29 = vcombine.low %v4468_v46, %v4478_v4  ;;  %v4487_v63 = vrot.slane %v4486_v53, 4  ;;  %v4506_v5 = vrot.slane %v4504_v49, 4  ;;  %v4509_v25 = vrot.slane %v4507_v57, 5  ;;  %v6465_v45 = vld [vmem:[%s7645_s11 + $0x24] sm:$0xe] }
  0xf4   : > { %v4515_v39 = vrot.slane %v4513_v58, 5  ;;  %v4519_v47 = vrot.slane %v4517_v1, 4  ;;  %v4523_v13 = vshll.u32 %v6422_v55, 16  ;;  %v4497_v30 = vrot.slane %v4496_v2, 4  ;;  %v6467_v57 = vld [vmem:[%s7645_s11 + $0x2c] sm:$0x1] }
  0xf5   : > { %v4492_v24 = vsel %vm7692_vm4, %v4487_v63, %v4491_v42  ;;  %v4528_v62 = vshrl.u32 %v6423_v41, 16  ;;  %v4531_v14 = vshll.u32 %v6423_v41, 16  ;;  %v4510_v3 = vor.u32 %v4509_v25, %v4506_v5  ;;  %v6468_v1 = vld [vmem:[%s7645_s11 + $0x30] sm:$0xe]  ;;  %v6469_v5 = vld [vmem:[%s7645_s11 + $0x34] sm:$0xf] }
  0xf6   : > { %v4520_v59 = vor.u32 %v4519_v47, %v4515_v39  ;;  %v4525_v31 = vrot.slane %v4523_v13, 5  ;;  %v4537_v40 = vshll.u32 %v6424_v10, 16  ;;  %6890 = vmatmul.mubr.msk.bf16.gmra.mrb[4].mxu1 %vm327_vm1, %v7446_v36  ;;  %v4502_v33 = vsel %vm7692_vm4, %v4497_v30, %v4501_v28  ;;  %v6470_v13 = vld [vmem:[%s7645_s11 + $0x38] sm:$0x1] }
  0xf7   : > { %v4530_v9 = vrot.slane %v4528_v62, 4  ;;  %v4533_v18 = vrot.slane %v4531_v14, 5  ;;  %v4541_v61 = vshrl.u32 %v6424_v10, 16  ;;  %6893 = vmatprep.mubr.msk.bf16.mxu1 %vm327_vm1, %v7447_v8  ;;  %v6442_v37 = vcombine.low %v4492_v24, %v4502_v33  ;;  %v6471_v62 = vld [vmem:[%s7645_s11 + $0x3c] sm:$0xe]  ;;  %v7450_v14 = vld [vmem:[%s7645_s11 + $0x60] sm:$0xff]  }
  0xf8   : > { %v4511_v17 = vrot.slane %v4510_v3, 4  ;;  %v4521_v21 = vrot.slane %v4520_v59, 4  ;;  %v4539_v38 = vrot.slane %v4537_v40, 5  ;;  %v4547_v48 = vshll.u32 %v6425_v44, 16  ;;  %v7451_v33 = vld [vmem:[%s7645_s11 + $0x6c] sm:$0xff]  }
  0xf9   : > { %v4534_v27 = vor.u32 %v4533_v18, %v4530_v9  ;;  %v4543_v15 = vrot.slane %v4541_v61, 4  ;;  %v4552_v22 = vshrl.u32 %v6426_v16, 16  ;;  %v4555_v11 = vshll.u32 %v6426_v16, 16  ;;  %v6472_v16 = vld [vmem:[%s7645_s11 + $0x40] sm:$0xf] }
  0xfa   : > { %7042 = vmatmul.mubr.msk.bf16.gmra.mrb[20].mxu0 %vm327_vm1, %v6441_v29  ;;  %v4516_v54 = vsel %vm7692_vm4, %v4511_v17, %v4515_v39  ;;  %v4526_v52 = vsel %vm7692_vm4, %v4521_v21, %v4525_v31  ;;  %v4561_v19 = vshll.u32 %v6427_v20, 16  ;;  %v4549_v35 = vrot.slane %v4547_v48, 5 }
  0xfb   : > { %7045 = vmatprep.mubr.msk.bf16.mxu0 %vm327_vm1, %v6442_v37  ;;  %v4535_v42 = vrot.slane %v4534_v27, 4  ;;  %v4544_v6 = vor.u32 %v4543_v15, %v4539_v38  ;;  %v4554_v46 = vrot.slane %v4552_v22, 4  ;;  %v4557_v50 = vrot.slane %v4555_v11, 5  ;;  %v6475_v37 = vld [vmem:[%s7645_s11 + $0x4c] sm:$0xf] }
  0xfc   : > { %v4563_v51 = vrot.slane %v4561_v19, 5  ;;  %v4565_v36 = vshrl.u32 %v6427_v20, 16  ;;  %v6443_v53 = vcombine.low %v4516_v54, %v4526_v52  ;;  %v4571_v49 = vshll.u32 %v6428_v60, 16  ;;  %v6474_v20 = vld [vmem:[%s7645_s11 + $0x48] sm:$0xe] }
  0xfd   : > { %v4540_v12 = vsel %vm7692_vm4, %v4535_v42, %v4539_v38  ;;  %v4545_v55 = vrot.slane %v4544_v6, 4  ;;  %v4558_v8 = vor.u32 %v4557_v50, %v4554_v46  ;;  %v6510_v28 = vrot.slane %v6462_v26, 9  ;;  %v6473_v60 = vld [vmem:[%s7645_s11 + $0x44] sm:$0x1]  ;;  %v6477_v27 = vld [vmem:[%s7645_s11 + $0x54] sm:$0xe] }
  0xfe   : > { %v4567_v4 = vrot.slane %v4565_v36, 4  ;;  %v5031_v58 = vrot.slane %v6463_v23, 5  ;;  %6894 = vmatmul.mubr.msk.bf16.gmra.mrb[8].mxu1 %vm327_vm1, %v7448_v34  ;;  %v4573_v29 = vrot.slane %v4571_v49, 5  ;;  %v5034_v63 = vrot.slane %v6464_v7, 5  ;;  %v6476_v34 = vld [vmem:[%s7645_s11 + $0x50] sm:$0x1] }
  0xff   : > { %v4550_v41 = vsel %vm7692_vm4, %v4545_v55, %v4549_v35  ;;  %v5038_v2 = vrot.slane %v6466_v56, 5  ;;  %6897 = vmatprep.mubr.msk.bf16.mxu1 %vm327_vm1, %v7449_v32  ;;  %v4559_v25 = vrot.slane %v4558_v8, 4  ;;  %v6511_v47 = vrot.slane %v6465_v45, 9  ;;  %v6478_v23 = vld [vmem:[%s7645_s11 + $0x58] sm:$0xf] }
 0x100   : > { %v6444_v10 = vcombine.low %v4540_v12, %v4550_v41  ;;  %v4568_v39 = vor.u32 %v4567_v4, %v4563_v51  ;;  %v5033_v44 = vrot.slane %v5031_v58, 4  ;;  %v5041_v30 = vrot.slane %v6467_v57, 5  ;;  %v6479_v19 = vld [vmem:[%s7645_s11 + $0x5c] sm:$0x1]  ;;  %v6162_v7 = vld [vmem:[%s7645_s11 + $0x6c] sm:$0xf] }
 0x101   : > { %v5040_v24 = vrot.slane %v5038_v2, 4  ;;  %v5032_v59 = vsel %vm7767_vm7, %v6510_v28, %v5031_v58  ;;  %v6512_v31 = vrot.slane %v6468_v1, 9  ;;  %v5045_v40 = vrot.slane %v6469_v5, 5  ;;  %v6163_v45 = vld [vmem:[%s7645_s11 + $0x70] sm:$0xf]  ;;  %v7452_v41 = vld [vmem:[%s7645_s11 + $0x78] sm:$0xff]  }
 0x102   : > { %7046 = vmatmul.mubr.msk.bf16.gmra.mrb[24].mxu0 %vm327_vm1, %v6443_v53  ;;  %v4569_v3 = vrot.slane %v4568_v39, 4  ;;  %v4564_v9 = vsel %vm7692_vm4, %v4559_v25, %v4563_v51  ;;  %v5035_v18 = vsel %vm7767_vm7, %v5033_v44, %v5034_v63  ;;  %v5048_v61 = vrot.slane %v6470_v13, 5  ;;  %v6164_v55 = vld [vmem:[%s7645_s11 + $0x74] sm:$0x1]  ;;  %v6165_v57 = vld [vmem:[%s7645_s11 + $0x78] sm:$0xf] }
 0x103   : > { %7049 = vmatprep.mubr.msk.bf16.mxu0 %vm327_vm1, %v6444_v10  ;;  %v8575_v21 = vsel %vm7767_vm7, %v6511_v47, %v5038_v2  ;;  %v8579_v38 = vsel %vm7767_vm7, %v5040_v24, %v5041_v30  ;;  %v6527_v15 = vcombine.low %v5032_v59, %v5035_v18  ;;  %v5047_v48 = vrot.slane %v5045_v40, 4  ;;  %v6166_v1 = vld [vmem:[%s7645_s11 + $0x7c] sm:$0xf]  ;;  %v7453_v10 = vld [vmem:[%s7645_s11 + $0x84] sm:$0xff]   ;;  %v6167_v24 = vld [vmem:[%s7645_s11 + $0x80] sm:$0x1] }
 0x104   : > { %v4574_v17 = vsel %vm7692_vm4, %v4569_v3, %v4573_v29  ;;  %v6513_v22 = vrot.slane %v6471_v62, 9  ;;  %v5052_v26 = vrot.slane %v6472_v16, 5  ;;  %v8587_v54 = vsel %vm7767_vm7, %v6512_v31, %v5045_v40  ;;  %v6480_v16 = vld [vmem:[%s7645_s11 + $0x60] sm:$0xe] }
 0x105   : > { %v6445_v32 = vcombine.low %v4564_v9, %v4574_v17  ;;  %v6514_v52 = vrot.slane %v6474_v20, 9  ;;  %v5059_v11 = vrot.slane %v6475_v37, 5  ;;  %v8594_v56 = vsel %vm7767_vm7, %v5047_v48, %v5048_v61  ;;  %v6484_v37 = vld [vmem:[%s7645_s11 + $0x70] sm:$0xf]  ;;  %v6482_v48 = vld [vmem:[%s7645_s11 + $0x68] sm:$0x1] }
 0x106   : > { %6898 = vmatmul.mubr.msk.bf16.gmra.mrb[12].mxu1 %vm327_vm1, %v7450_v14  ;;  %v5054_v42 = vrot.slane %v5052_v26, 4  ;;  %v5055_v6 = vrot.slane %v6473_v60, 5  ;;  %v6515_v35 = vrot.slane %v6477_v27, 9  ;;  %v6528_v46 = vcombine.low %v8575_v21, %v8579_v38 }
 0x107   : > { %6901 = vmatprep.mubr.msk.bf16.mxu1 %vm327_vm1, %v7451_v33  ;;  %v5062_v50 = vrot.slane %v6476_v34, 5  ;;  %v5066_v51 = vrot.slane %v6478_v23, 5  ;;  %v6529_v36 = vcombine.low %v8587_v54, %v8594_v56  ;;  %v8604_v53 = vsel %vm7767_vm7, %v6513_v22, %v5052_v26  ;;  %v6481_v33 = vld [vmem:[%s7645_s11 + $0x64] sm:$0xf]  ;;  %v6483_v34 = vld [vmem:[%s7645_s11 + $0x6c] sm:$0xe] }
 0x108   : > { %v8608_v12 = vsel %vm7767_vm7, %v6514_v52, %v5059_v11  ;;  %v2602_v49 = vshrl.u32 %v6162_v7, 16  ;;  %v5061_v8 = vrot.slane %v5059_v11, 4  ;;  %v5069_v4 = vrot.slane %v6479_v19, 5  ;;  %v7454_v23 = vld [vmem:[%s7645_s11 + $0x90] sm:$0xff]   ;;  %v6168_v19 = vld [vmem:[%s7645_s11 + $0x84] sm:$0xf] }
 0x109   : > { %v2605_v28 = vshll.u32 %v6162_v7, 16  ;;  %v2611_v58 = vshll.u32 %v6163_v45, 16  ;;  %v8618_v29 = vsel %vm7767_vm7, %v5054_v42, %v5055_v6  ;;  %v8622_v63 = vsel %vm7767_vm7, %v6515_v35, %v5066_v51  ;;  %v6485_v6 = vld [vmem:[%s7645_s11 + $0x74] sm:$0x1] }
 0x10a   : > { %7050 = vmatmul.mubr.msk.bf16.gmra.mrb[28].mxu0 %vm327_vm1, %v6445_v32  ;;  %v2604_v2 = vrot.slane %v2602_v49, 4  ;;  %v2615_v5 = vshrl.u32 %v6163_v45, 16  ;;  %v5068_v25 = vrot.slane %v5066_v51, 4  ;;  %v2621_v13 = vshll.u32 %v6164_v55, 16  ;;  %v6169_v45 = vld [vmem:[%s7645_s11 + $0x88] sm:$0xf] }
 0x10b   : > { %7055 = vmatprep.mubr.msk.bf16.mxu0 %vm327_vm1, %v6527_v15  ;;  %v2607_v39 = vrot.slane %v2605_v28, 5  ;;  %v2613_v47 = vrot.slane %v2611_v58, 5  ;;  %v2626_v30 = vshrl.u32 %v6165_v57, 16  ;;  %v2629_v62 = vshll.u32 %v6165_v57, 16  ;;  %v6170_v57 = vld [vmem:[%s7645_s11 + $0x8c] sm:$0x1] }
 0x10c   : > { %v2617_v44 = vrot.slane %v2615_v5, 4  ;;  %v2635_v14 = vshll.u32 %v6166_v1, 16  ;;  %v8628_v3 = vsel %vm7767_vm7, %v5061_v8, %v5062_v50  ;;  %v2623_v31 = vrot.slane %v2621_v13, 5 }
 0x10d   : > { %v2608_v59 = vor.u32 %v2607_v39, %v2604_v2  ;;  %v2639_v40 = vshrl.u32 %v6166_v1, 16  ;;  %v2628_v18 = vrot.slane %v2626_v30, 4  ;;  %v2631_v61 = vrot.slane %v2629_v62, 5  ;;  %v6173_v39 = vld [vmem:[%s7645_s11 + $0x98] sm:$0x1] }
 0x10e   : > { %6902 = vmatmul.mubr.msk.bf16.gmra.mrb[16].mxu1 %vm327_vm1, %v7452_v41  ;;  %v2618_v9 = vor.u32 %v2617_v44, %v2613_v47  ;;  %v8633_v20 = vrot.slane %v2635_v14, 5  ;;  %v8639_v17 = vsel %vm7767_vm7, %v5068_v25, %v5069_v4  ;;  %v2645_v60 = vshll.u32 %v6167_v24, 16  ;;  %v6171_v4 = vld [vmem:[%s7645_s11 + $0x90] sm:$0xf]  ;;  %v6486_v30 = vld [vmem:[%s7645_s11 + $0x78] sm:$0xe] }
 0x10f   : > { %6905 = vmatprep.mubr.msk.bf16.mxu1 %vm327_vm1, %v7453_v10  ;;  %v2609_v21 = vrot.slane %v2608_v59, 4  ;;  %v2641_v38 = vrot.slane %v2639_v40, 4  ;;  %v2632_v15 = vor.u32 %v2631_v61, %v2628_v18  ;;  %v6516_v22 = vrot.slane %v6480_v16, 9  ;;  %v6488_v18 = vld [vmem:[%s7645_s11 + $0x80] sm:$0x1] }
 0x110   : > { %v2619_v27 = vrot.slane %v2618_v9, 4  ;;  %v5073_v26 = vrot.slane %v6481_v33, 5  ;;  %v6530_v32 = vcombine.low %v8604_v53, %v8618_v29  ;;  %v5080_v11 = vrot.slane %v6484_v37, 5  ;;  %v6172_v29 = vld [vmem:[%s7645_s11 + $0x94] sm:$0xf]  ;;  %v7456_v37 = vld [vmem:[%s7645_s11 + $0xa8] sm:$0xff]  }
 0x111   : > { %v2614_v54 = vsel %vm7692_vm4, %v2609_v21, %v2613_v47  ;;  %v2642_v52 = vor.u32 %v2641_v38, %v8633_v20  ;;  %v6531_v7 = vcombine.low %v8608_v12, %v8628_v3  ;;  %v8656_v42 = vrot.slane %v2632_v15, 4  ;;  %v6489_v61 = vld [vmem:[%s7645_s11 + $0x84] sm:$0xe]  ;;  %v7457_v15 = vld [vmem:[%s7645_s11 + $0xb4] sm:$0xff]  }
 0x112   : > { %7056 = vmatmul.mubr.msk.bf16.vlgmr.msra.gmra.mrb[0].mxu0 %vm327_vm1, %v6528_v46  ;;  %v2624_v56 = vsel %vm7692_vm4, %v2619_v27, %v2623_v31  ;;  %v6517_v35 = vrot.slane %v6483_v34, 9  ;;  %v7455_v46 = vld [vmem:[%s7645_s11 + $0x9c] sm:$0xff]   ;;  %v6532_v50 = vcombine.low %v8622_v63, %v8639_v17  ;;  %v8663_v51 = vrot.slane %v2645_v60, 5  ;;  %v6490_v27 = vld [vmem:[%s7645_s11 + $0x88] sm:$0xf] }
 0x113   : > { %7059 = vmatprep.mubr.msk.bf16.mxu0 %vm327_vm1, %v6529_v36  ;;  %v5075_v36 = vrot.slane %v5073_v26, 4  ;;  %v5076_v53 = vrot.slane %v6482_v48, 5  ;;  %v8665_v55 = vcombine.low %v2614_v54, %v2624_v56  ;;  %v8667_v12 = vrot.slane %v2642_v52, 4  ;;  %v6487_v31 = vld [vmem:[%s7645_s11 + $0x7c] sm:$0xf] }
 0x114   : > { %v8671_v49 = vsel %vm7767_vm7, %v6516_v22, %v5073_v26  ;;  %v2650_v8 = vshrl.u32 %v6168_v19, 16  ;;  %v5082_v28 = vrot.slane %v5080_v11, 4  ;;  %v5083_v58 = vrot.slane %v6485_v6, 5  ;;  %v6491_v56 = vld [vmem:[%s7645_s11 + $0x8c] sm:$0x1] }
 0x115   : > { %v2653_v1 = vshll.u32 %v6168_v19, 16  ;;  %v2659_v41 = vshll.u32 %v6169_v45, 16  ;;  %v2638_v2 = vsel %vm7692_vm4, %v8656_v42, %v8633_v20  ;;  %v8683_v5 = vsel %vm7767_vm7, %v6517_v35, %v5080_v11 }
 0x116   : > { %6906 = vmatmul.mubr.msk.bf16.gmra.mrb[20].mxu1 %vm327_vm1, %v7454_v23  ;;  %v2652_v10 = vrot.slane %v2650_v8, 4  ;;  %v2663_v25 = vshrl.u32 %v6169_v45, 16  ;;  %v8689_v47 = vsel %vm7767_vm7, %v5075_v36, %v5076_v53  ;;  %v2669_v24 = vshll.u32 %v6170_v57, 16  ;;  %v6174_v45 = vld [vmem:[%s7645_s11 + $0x9c] sm:$0xf] }
 0x117   : > { %6909 = vmatprep.mubr.msk.bf16.mxu1 %vm327_vm1, %v7455_v46  ;;  %v2655_v13 = vrot.slane %v2653_v1, 5  ;;  %v8691_v44 = vrot.slane %v2659_v41, 5  ;;  %v2674_v14 = vshrl.u32 %v6171_v4, 16  ;;  %v2677_v3 = vshll.u32 %v6171_v4, 16  ;;  %v6175_v8 = vld [vmem:[%s7645_s11 + $0xa0] sm:$0xf] }
 0x118   : > { %v2665_v62 = vrot.slane %v2663_v25, 4  ;;  %v2683_v59 = vshll.u32 %v6172_v29, 16  ;;  %v8698_v40 = vsel %vm7767_vm7, %v5082_v28, %v5083_v58  ;;  %v2687_v33 = vshrl.u32 %v6172_v29, 16  ;;  %v6177_v25 = vld [vmem:[%s7645_s11 + $0xa8] sm:$0xf] }
 0x119   : > { %v2656_v16 = vor.u32 %v2655_v13, %v2652_v10  ;;  %v2693_v9 = vshll.u32 %v6173_v39, 16  ;;  %v2676_v38 = vrot.slane %v2674_v14, 4  ;;  %v2679_v60 = vrot.slane %v2677_v3, 5 }
 0x11a   : > { %7060 = vmatmul.mubr.msk.bf16.gmra.mrb[4].mxu0 %vm327_vm1, %v6530_v32  ;;  %v2666_v21 = vor.u32 %v2665_v62, %v8691_v44  ;;  %v8705_v34 = vrot.slane %v2683_v59, 5  ;;  %v8711_v22 = vrot.slane %v2669_v24, 5  ;;  %v2689_v26 = vrot.slane %v2687_v33, 4  ;;  %v6178_v24 = vld [vmem:[%s7645_s11 + $0xac] sm:$0xf] }
 0x11b   : > { %7063 = vmatprep.mubr.msk.bf16.mxu0 %vm327_vm1, %v6531_v7  ;;  %v8709_v48 = vrot.slane %v2656_v16, 4  ;;  %v6518_v23 = vrot.slane %v6486_v30, 9  ;;  %v2680_v54 = vor.u32 %v2679_v60, %v2676_v38  ;;  %v5087_v52 = vrot.slane %v6487_v31, 5  ;;  %v7458_v30 = vld [vmem:[%s7645_s11 + $0xc0] sm:$0xff]  }
 0x11c   : > { %v8713_v32 = vrot.slane %v2666_v21, 4  ;;  %v5090_v11 = vrot.slane %v6488_v18, 5  ;;  %v2648_v19 = vsel %vm7692_vm4, %v8667_v12, %v8663_v51  ;;  %v2690_v7 = vor.u32 %v2689_v26, %v8705_v34  ;;  %v6181_v12 = vld [vmem:[%s7645_s11 + $0xb8] sm:$0xf] }
 0x11d   : > { %v6519_v6 = vrot.slane %v6489_v61, 9  ;;  %v5094_v35 = vrot.slane %v6490_v27, 5  ;;  %v6533_v46 = vcombine.low %v8671_v49, %v8689_v47  ;;  %v8725_v36 = vrot.slane %v2680_v54, 4  ;;  %v6492_v61 = vld [vmem:[%s7645_s11 + $0x90] sm:$0xe] }
 0x11e   : > { %6910 = vmatmul.mubr.msk.bf16.gmra.mrb[24].mxu1 %vm327_vm1, %v7456_v37  ;;  %v8727_v53 = vrot.slane %v2693_v9, 5  ;;  %v5089_v57 = vrot.slane %v5087_v52, 4  ;;  %v6534_v4 = vcombine.low %v8683_v5, %v8698_v40  ;;  %v2662_v28 = vsel %vm7692_vm4, %v8709_v48, %v8691_v44  ;;  %v6176_v5 = vld [vmem:[%s7645_s11 + $0xa4] sm:$0x1]  ;;  %v6179_v40 = vld [vmem:[%s7645_s11 + $0xb0] sm:$0x1] }
 0x11f   : > { %6913 = vmatprep.mubr.msk.bf16.mxu1 %vm327_vm1, %v7457_v15  ;;  %v2672_v49 = vsel %vm7692_vm4, %v8713_v32, %v8711_v22  ;;  %v2691_v58 = vrot.slane %v2690_v7, 4  ;;  %v5088_v1 = vsel %vm7767_vm7, %v6518_v23, %v5087_v52  ;;  %v8747_v29 = vsel %vm7767_vm7, %v6519_v6, %v5094_v35  ;;  %v6494_v27 = vld [vmem:[%s7645_s11 + $0x98] sm:$0x1]  ;;  %v6496_v23 = vld [vmem:[%s7645_s11 + $0xa0] sm:$0xf] }
 0x120   : > { %v5091_v41 = vsel %vm7767_vm7, %v5089_v57, %v5090_v11  ;;  %v2698_v10 = vshrl.u32 %v6174_v45, 16  ;;  %v5096_v39 = vrot.slane %v5094_v35, 4  ;;  %v5097_v47 = vrot.slane %v6491_v56, 5  ;;  %v6180_v57 = vld [vmem:[%s7645_s11 + $0xb4] sm:$0xf] }
 0x121   : > { %v2701_v13 = vshll.u32 %v6174_v45, 16  ;;  %v2707_v44 = vshll.u32 %v6175_v8, 16  ;;  %v2686_v62 = vsel %vm7692_vm4, %v8725_v36, %v8705_v34  ;;  %v2696_v63 = vsel %vm7692_vm4, %v2691_v58, %v8727_v53  ;;  %v6493_v34 = vld [vmem:[%s7645_s11 + $0x94] sm:$0xf]  ;;  %v6495_v45 = vld [vmem:[%s7645_s11 + $0x9c] sm:$0xe] }
 0x122   : > { %7064 = vmatmul.mubr.msk.bf16.gmra.mrb[8].mxu0 %vm327_vm1, %v6532_v50  ;;  %v2700_v17 = vrot.slane %v2698_v10, 4  ;;  %v2711_v50 = vshrl.u32 %v6175_v8, 16  ;;  %v6535_v14 = vcombine.low %v5088_v1, %v5091_v41  ;;  %v2717_v31 = vshll.u32 %v6176_v5, 16  ;;  %v6182_v5 = vld [vmem:[%s7645_s11 + $0xbc] sm:$0x1] }
 0x123   : > { %7067 = vmatprep.mubr.msk.bf16.mxu0 %vm327_vm1, %v6533_v46  ;;  %v2703_v3 = vrot.slane %v2701_v13, 5  ;;  %v2709_v59 = vrot.slane %v2707_v44, 5  ;;  %v2722_v33 = vshrl.u32 %v6177_v25, 16  ;;  %v2725_v9 = vshll.u32 %v6177_v25, 16  ;;  %v6183_v25 = vld [vmem:[%s7645_s11 + $0xc0] sm:$0xf] }
 0x124   : > { %v2713_v16 = vrot.slane %v2711_v50, 4  ;;  %v2731_v18 = vshll.u32 %v6178_v24, 16  ;;  %v8769_v37 = vsel %vm7767_vm7, %v5096_v39, %v5097_v47  ;;  %v2719_v38 = vrot.slane %v2717_v31, 5 }
 0x125   : > { %v2704_v21 = vor.u32 %v2703_v3, %v2700_v17  ;;  %v2735_v60 = vshrl.u32 %v6178_v24, 16  ;;  %v2724_v48 = vrot.slane %v2722_v33, 4  ;;  %v2727_v22 = vrot.slane %v2725_v9, 5  ;;  %v6498_v33 = vld [vmem:[%s7645_s11 + $0xa8] sm:$0xe] }
 0x126   : > { %6914 = vmatmul.mubr.msk.bf16.gmra.mrb[28].mxu1 %vm327_vm1, %v7458_v30  ;;  %v2714_v15 = vor.u32 %v2713_v16, %v2709_v59  ;;  %v8774_v26 = vrot.slane %v2731_v18, 5  ;;  %v2741_v52 = vshll.u32 %v6179_v40, 16  ;;  %v6520_v11 = vrot.slane %v6492_v61, 9 }
 0x127   : > { %6935 = vmatprep.mubr.msk.bf16.mxu1 %vm327_vm1, %v8665_v55  ;;  %v2705_v32 = vrot.slane %v2704_v21, 4  ;;  %v2737_v54 = vrot.slane %v2735_v60, 4  ;;  %v2728_v56 = vor.u32 %v2727_v22, %v2724_v48  ;;  %v5101_v6 = vrot.slane %v6493_v34, 5  ;;  %v6499_v21 = vld [vmem:[%s7645_s11 + $0xac] sm:$0xf] }
 0x128   : > { %v2715_v7 = vrot.slane %v2714_v15, 4  ;;  %v5104_v35 = vrot.slane %v6494_v27, 5  ;;  %v6196_v55 = vcombine.low %v2638_v2, %v2648_v19  ;;  %v5108_v53 = vrot.slane %v6496_v23, 5  ;;  %v6185_v27 = vld [vmem:[%s7645_s11 + $0xc8] sm:$0x1] }
 0x129   : > { %v2710_v46 = vsel %vm7692_vm4, %v2705_v32, %v2709_v59  ;;  %v2738_v36 = vor.u32 %v2737_v54, %v8774_v26  ;;  %v6197_v8 = vcombine.low %v2662_v28, %v2672_v49  ;;  %v8795_v51 = vcombine.low %v2686_v62, %v2696_v63  ;;  %v6497_v28 = vld [vmem:[%s7645_s11 + $0xa4] sm:$0x1]  ;;  %v6502_v22 = vld [vmem:[%s7645_s11 + $0xb8] sm:$0xf] }
 0x12a   : > { %7068 = vmatmul.mubr.msk.bf16.gmra.mrb[12].mxu0 %vm327_vm1, %v6534_v4  ;;  %v2720_v20 = vsel %vm7692_vm4, %v2715_v7, %v2719_v38  ;;  %v5103_v42 = vrot.slane %v5101_v6, 4  ;;  %v6536_v2 = vcombine.low %v8747_v29, %v8769_v37  ;;  %v8803_v19 = vrot.slane %v2741_v52, 5  ;;  %v6184_v29 = vld [vmem:[%s7645_s11 + $0xc4] sm:$0xf]  ;;  %v6500_v38 = vld [vmem:[%s7645_s11 + $0xb0] sm:$0x1] }
 0x12b   : > { %7071 = vmatprep.mubr.msk.bf16.mxu0 %vm327_vm1, %v6535_v14  ;;  %v5102_v4 = vsel %vm7767_vm7, %v6520_v11, %v5101_v6  ;;  %v6521_v49 = vrot.slane %v6495_v45, 9  ;;  %v6199_v58 = vcombine.low %v2710_v46, %v2720_v20  ;;  %v2729_v1 = vrot.slane %v2728_v56, 4  ;;  %v6501_v52 = vld [vmem:[%s7645_s11 + $0xb4] sm:$0xe] }
 0x12c   : > { %v5105_v41 = vsel %vm7767_vm7, %v5103_v42, %v5104_v35  ;;  %v2746_v10 = vshrl.u32 %v6180_v57, 16  ;;  %v2739_v39 = vrot.slane %v2738_v36, 4  ;;  %v5110_v47 = vrot.slane %v5108_v53, 4  ;;  %v6504_v36 = vld [vmem:[%s7645_s11 + $0xc0] sm:$0xe] }
 0x12d   : > { %v2749_v13 = vshll.u32 %v6180_v57, 16  ;;  %v2755_v44 = vshll.u32 %v6181_v12, 16  ;;  %v6537_v24 = vcombine.low %v5102_v4, %v5105_v41  ;;  %v5111_v30 = vrot.slane %v6497_v28, 5  ;;  %v6505_v42 = vld [vmem:[%s7645_s11 + $0xc4] sm:$0xf] }
 0x12e   : > { %6936 = vmatmul.mubr.msk.bf16.vlgmr.msra.gmra.mrb[16].mxu1 %vm327_vm1, %v6196_v55  ;;  %v2748_v62 = vrot.slane %v2746_v10, 4  ;;  %v2759_v63 = vshrl.u32 %v6181_v12, 16  ;;  %v5109_v17 = vsel %vm7767_vm7, %v6521_v49, %v5108_v53  ;;  %v2765_v3 = vshll.u32 %v6182_v5, 16  ;;  %v6503_v55 = vld [vmem:[%s7645_s11 + $0xbc] sm:$0x1] }
 0x12f   : > { %6939 = vmatprep.mubr.msk.bf16.mxu1 %vm327_vm1, %v6197_v8  ;;  %v2751_v50 = vrot.slane %v2749_v13, 5  ;;  %v2757_v14 = vrot.slane %v2755_v44, 5  ;;  %v2770_v31 = vshrl.u32 %v6183_v25, 16  ;;  %v2773_v40 = vshll.u32 %v6183_v25, 16  ;;  %v6506_v12 = vld [vmem:[%s7645_s11 + $0xc8] sm:$0x1] }
 0x130   : > { %v2761_v59 = vrot.slane %v2759_v63, 4  ;;  %v2779_v16 = vshll.u32 %v6184_v29, 16  ;;  %v2734_v9 = vsel %vm7692_vm4, %v2729_v1, %v8774_v26  ;;  %v2744_v18 = vsel %vm7692_vm4, %v2739_v39, %v8803_v19  ;;  %v6508_v49 = vld [vmem:[%s7645_s11 + $0xd0] sm:$0xf] }
 0x131   : > { %v2752_v61 = vor.u32 %v2751_v50, %v2748_v62  ;;  %v2783_v37 = vshrl.u32 %v6184_v29, 16  ;;  %v5112_v60 = vsel %vm7767_vm7, %v5110_v47, %v5111_v30  ;;  %v2772_v15 = vrot.slane %v2770_v31, 4  ;;  %v6509_v50 = vld [vmem:[%s7645_s11 + $0xd4] sm:$0x1] }
 0x132   : > { %7072 = vmatmul.mubr.msk.bf16.gmra.mrb[16].mxu0 %vm327_vm1, %v6536_v2  ;;  %v2762_v34 = vor.u32 %v2761_v59, %v2757_v14  ;;  %v2775_v48 = vrot.slane %v2773_v40, 5  ;;  %v2781_v23 = vrot.slane %v2779_v16, 5  ;;  %v6522_v54 = vrot.slane %v6498_v33, 9 }
 0x133   : > { %7075 = vmatprep.mubr.msk.bf16.mxu0 %vm327_vm1, %v6537_v24  ;;  %v2753_v26 = vrot.slane %v2752_v61, 4  ;;  %v2785_v32 = vrot.slane %v2783_v37, 4  ;;  %v2767_v7 = vrot.slane %v2765_v3, 5  ;;  %v5115_v56 = vrot.slane %v6499_v21, 5 }
 0x134   : > { %v2763_v11 = vrot.slane %v2762_v34, 4  ;;  %v5118_v6 = vrot.slane %v6500_v38, 5  ;;  %v6538_v35 = vcombine.low %v5109_v17, %v5112_v60  ;;  %v2789_v45 = vshll.u32 %v6185_v27, 16  ;;  %v6507_v17 = vld [vmem:[%s7645_s11 + $0xcc] sm:$0xe]  ;;  %s8893_s11 = scalar_lea.vmem %s9020_s2, %s6595_s8 }
 0x135   : > { %v5122_v46 = vrot.slane %v6502_v22, 5  ;;  %v2776_v53 = vor.u32 %v2775_v48, %v2772_v15  ;;  %v5116_v57 = vsel %vm7767_vm7, %v6522_v54, %v5115_v56  ;;  %v5117_v8 = vrot.slane %v5115_v56, 4 }
 0x136   : > { %6940 = vmatmul.mubr.msk.bf16.gmra.mrb[20].mxu1 %vm327_vm1, %v8795_v51  ;;  %v6523_v20 = vrot.slane %v6501_v52, 9  ;;  %v6200_v2 = vcombine.low %v2734_v9, %v2744_v18  ;;  %v2758_v19 = vsel %vm7692_vm4, %v2753_v26, %v2757_v14  ;;  %v2786_v4 = vor.u32 %v2785_v32, %v2781_v23 }
 0x137   : > { %6943 = vmatprep.mubr.msk.bf16.mxu1 %vm327_vm1, %v6199_v58  ;;  %v5124_v28 = vrot.slane %v5122_v46, 4  ;;  %v2768_v51 = vsel %vm7692_vm4, %v2763_v11, %v2767_v7  ;;  %v5119_v1 = vsel %vm7767_vm7, %v5117_v8, %v5118_v6  ;;  %v5125_v41 = vrot.slane %v6503_v55, 5 }
 0x138   : > { %v6524_v5 = vrot.slane %v6504_v36, 9  ;;  %v2791_v58 = vrot.slane %v2789_v45, 5  ;;  %v6539_v10 = vcombine.low %v5116_v57, %v5119_v1  ;;  %v5129_v25 = vrot.slane %v6505_v42, 5 }
 0x139   : > { %v5132_v39 = vrot.slane %v6506_v12, 5  ;;  %v2777_v47 = vrot.slane %v2776_v53, 4  ;;  %v5123_v13 = vsel %vm7767_vm7, %v6523_v20, %v5122_v46  ;;  %v5126_v44 = vsel %vm7767_vm7, %v5124_v28, %v5125_v41 }
 0x13a   : > { %7076 = vmatmul.mubr.msk.bf16.gmra.mrb[20].mxu0 %vm327_vm1, %v6538_v35  ;;  %v5136_v29 = vrot.slane %v6508_v49, 5  ;;  %v6201_v24 = vcombine.low %v2758_v19, %v2768_v51  ;;  %v2787_v30 = vrot.slane %v2786_v4, 4  ;;  %v5130_v62 = vsel %vm7767_vm7, %v6524_v5, %v5129_v25 }
 0x13b   : > { %7079 = vmatprep.mubr.msk.bf16.mxu0 %vm327_vm1, %v6539_v10  ;;  %v5131_v63 = vrot.slane %v5129_v25, 4  ;;  %v6540_v14 = vcombine.low %v5123_v13, %v5126_v44  ;;  %v6525_v31 = vrot.slane %v6507_v17, 9  ;;  %v5139_v16 = vrot.slane %v6509_v50, 5 }
 0x13c   : > { %v5138_v40 = vrot.slane %v5136_v29, 4  ;;  %v2782_v33 = vsel %vm7692_vm4, %v2777_v47, %v2781_v23  ;;  %v2792_v9 = vsel %vm7692_vm4, %v2787_v30, %v2791_v58 }
 0x13d   : > { %v5133_v3 = vsel %vm7767_vm7, %v5131_v63, %v5132_v39  ;;  %v6202_v18 = vcombine.low %v2782_v33, %v2792_v9  ;;  %v5137_v61 = vsel %vm7767_vm7, %v6525_v31, %v5136_v29 }
 0x13e   : > { %6944 = vmatmul.mubr.msk.bf16.gmra.mrb[24].mxu1 %vm327_vm1, %v6200_v2  ;;  %v6541_v59 = vcombine.low %v5130_v62, %v5133_v3  ;;  %v5140_v37 = vsel %vm7767_vm7, %v5138_v40, %v5139_v16 }
 0x13f   : > { %6947 = vmatprep.mubr.msk.bf16.mxu1 %vm327_vm1, %v6201_v24  ;;  %v6542_v21 = vcombine.low %v5137_v61, %v5140_v37 }
 0x142   : > { %7080 = vmatmul.mubr.msk.bf16.gmra.mrb[24].mxu0 %vm327_vm1, %v6540_v14 }
 0x143   : > { %7083 = vmatprep.mubr.msk.bf16.mxu0 %vm327_vm1, %v6541_v59 }
 0x146   : > { %6948 = vmatmul.mubr.msk.bf16.gmra.mrb[28].mxu1 %vm327_vm1, %v6202_v18 }
 0x14a   : > { %7084 = vmatmul.mubr.msk.bf16.gmra.mrb[28].mxu0 %vm327_vm1, %v6542_v21 }
 0x1c1   : > { %v6887_v38 = vpop.f32.mrb[0].mxu1 }
 0x1c2   : > { %v2138_v43 = vpop.f32.mrb[1].mxu1 }
 0x1c3   : > { %v6888_v60 = vpop.f32.mrb[2].mxu1 }
 0x1c4   : > { %v2141_v34 = vpop.f32.mrb[3].mxu1 }
 0x1c9   : > { %v6891_v27 = vpop.f32.mrb[4].mxu1 }
 0x1ca   : > { %v2154_v15 = vpop.f32.mrb[5].mxu1 }
 0x1cb   : > { %v6892_v48 = vpop.f32.mrb[6].mxu1 }
 0x1cc   : > { %v2157_v22 = vpop.f32.mrb[7].mxu1 }
 0x1d1   : > { %v6895_v26 = vpop.f32.mrb[8].mxu1 }
 0x1d2   : > { %v8875_v23 = vpop.f32.mrb[9].mxu1 }
 0x1d3   : > { %v8877_v32 = vpop.f32.mrb[10].mxu1 }
 0x1d4   : > { %v8879_v0 = vpop.f32.mrb[11].mxu1 }
 0x1d9   : > { %v8881_v54 = vpop.f32.mrb[12].mxu1 }
 0x1da   : > { %v8883_v52 = vpop.f32.mrb[13].mxu1 }
 0x1db   : > { %v8885_v11 = vpop.f32.mrb[14].mxu1 }
 0x1dc   : > { %v8887_v7 = vpop.f32.mrb[15].mxu1 }
 0x1e5   : > { %v7057_v56 = vpop.f32.mrb[0].mxu0 }
 0x1e6   : > { %v7089_v6 = vadd.f32 %v7057_v56, %v6887_v38  ;;  %v5276_v35 = vpop.f32.mrb[1].mxu0 }
 0x1e7   : > { %v7090_v45 = vadd.f32 %v5276_v35, %v2138_v43  ;;  %v7058_v55 = vpop.f32.mrb[2].mxu0 }
 0x1e8   : > { %v6598_v46 = vpack.c.bf16 %v7089_v6, %v7089_v6  ;;  %v7091_v36 = vadd.f32 %v7058_v55, %v6888_v60  ;;  %v5279_v53 = vpop.f32.mrb[3].mxu0  ;;  %v5731_v4 = vmul.f32 %v7089_v6, %v7089_v6 }
 0x1e9   : > { %v6596_v57 = vpack.c.bf16 %v7090_v45, %v7090_v45  ;;  %v7092_v8 = vadd.f32 %v5279_v53, %v2141_v34  ;;  %v5729_v42 = vmul.f32 %v7090_v45, %v7090_v45 }
 0x1ea   : > { %5662 = vst.msk [vmem:[%s8893_s11 + $0x8] sm:$0xf] %vm5659_vm8, %v6598_v46  ;;  %v6599_v20 = vpack.c.bf16 %v7091_v36, %v7091_v36  ;;  %v5732_v5 = vmul.f32 %v7091_v36, %v7091_v36 }
 0x1eb   : > { %5660 = vst.msk [vmem:[%s8893_s11] sm:$0xf] %vm5659_vm8, %v6596_v57  ;;  %v6597_v12 = vpack.c.bf16 %v7092_v8, %v7092_v8  ;;  %v5692_v2 = vadd.f32 %v7092_v8, %v7090_v45  ;;  %v5730_v19 = vmul.f32 %v7092_v8, %v7092_v8 }
 0x1ec   : > { %5663 = vst.msk [vmem:[%s8893_s11 + $0xc] sm:$0xf] %vm5659_vm8, %v6599_v20 }
 0x1ed   : > { %5661 = vst.msk [vmem:[%s8893_s11 + $0x4] sm:$0xf] %vm5659_vm8, %v6597_v12  ;;  %v5693_v28 = vadd.f32 %v7089_v6, %v5692_v2  ;;  %v5761_v49 = vadd.f32 %v5730_v19, %v5729_v42  ;;  %v7061_v51 = vpop.f32.mrb[4].mxu0 }
 0x1ee   : > { %v7093_v1 = vadd.f32 %v7061_v51, %v6891_v27  ;;  %v5292_v41 = vpop.f32.mrb[5].mxu0 }
 0x1ef   : > { %v5762_v58 = vadd.f32 %v5761_v49, %v5731_v4  ;;  %v7094_v10 = vadd.f32 %v5292_v41, %v2154_v15  ;;  %v5694_v25 = vadd.f32 %v7091_v36, %v5693_v28  ;;  %v7062_v39 = vpop.f32.mrb[6].mxu0 }
 0x1f0   : > { %v6602_v47 = vpack.c.bf16 %v7093_v1, %v7093_v1  ;;  %v7095_v13 = vadd.f32 %v7062_v39, %v6892_v48  ;;  %v5295_v44 = vpop.f32.mrb[7].mxu0  ;;  %v5735_v40 = vmul.f32 %v7093_v1, %v7093_v1 }
 0x1f1   : > { %v6600_v29 = vpack.c.bf16 %v7094_v10, %v7094_v10  ;;  %v5695_v24 = vadd.f32 %v7094_v10, %v5694_v25  ;;  %v5733_v30 = vmul.f32 %v7094_v10, %v7094_v10  ;;  %v5763_v62 = vadd.f32 %v5762_v58, %v5732_v5 }
 0x1f2   : > { %5666 = vst.msk [vmem:[%s8893_s11 + $0x18] sm:$0xf] %vm5659_vm8, %v6602_v47  ;;  %v6603_v63 = vpack.c.bf16 %v7095_v13, %v7095_v13  ;;  %v7096_v17 = vadd.f32 %v5295_v44, %v2157_v22  ;;  %v5736_v21 = vmul.f32 %v7095_v13, %v7095_v13 }
 0x1f3   : > { %5664 = vst.msk [vmem:[%s8893_s11 + $0x10] sm:$0xf] %vm5659_vm8, %v6600_v29  ;;  %v5764_v50 = vadd.f32 %v5763_v62, %v5733_v30 }
 0x1f4   : > { %5667 = vst.msk [vmem:[%s8893_s11 + $0x1c] sm:$0xf] %vm5659_vm8, %v6603_v63  ;;  %v6601_v14 = vpack.c.bf16 %v7096_v17, %v7096_v17  ;;  %v5696_v3 = vadd.f32 %v7096_v17, %v5695_v24  ;;  %v5734_v59 = vmul.f32 %v7096_v17, %v7096_v17 }
 0x1f5   : > { %v7065_v31 = vpop.f32.mrb[8].mxu0 }
 0x1f6   : > { %5665 = vst.msk [vmem:[%s8893_s11 + $0x14] sm:$0xf] %vm5659_vm8, %v6601_v14  ;;  %v5697_v16 = vadd.f32 %v7093_v1, %v5696_v3  ;;  %v5765_v33 = vadd.f32 %v5764_v50, %v5734_v59  ;;  %v7097_v9 = vadd.f32 %v7065_v31, %v6895_v26  ;;  %v5308_v18 = vpop.f32.mrb[9].mxu0 }
 0x1f7   : > { %v7098_v61 = vadd.f32 %v5308_v18, %v8875_v23  ;;  %v7066_v37 = vpop.f32.mrb[10].mxu0 }
 0x1f8   : > { %v5766_v38 = vadd.f32 %v5765_v33, %v5735_v40  ;;  %v6606_v43 = vpack.c.bf16 %v7097_v9, %v7097_v9  ;;  %v5698_v60 = vadd.f32 %v7095_v13, %v5697_v16  ;;  %v5311_v34 = vpop.f32.mrb[11].mxu0  ;;  %v7099_v48 = vadd.f32 %v7066_v37, %v8877_v32 }
 0x1f9   : > { %v6604_v27 = vpack.c.bf16 %v7098_v61, %v7098_v61  ;;  %v5737_v15 = vmul.f32 %v7098_v61, %v7098_v61  ;;  %v7100_v22 = vadd.f32 %v5311_v34, %v8879_v0  ;;  %v5739_v36 = vmul.f32 %v7097_v9, %v7097_v9 }
 0x1fa   : > { %5670 = vst.msk [vmem:[%s8893_s11 + $0x28] sm:$0xf] %vm5659_vm8, %v6606_v43  ;;  %v5699_v26 = vadd.f32 %v7098_v61, %v5698_v60  ;;  %v5767_v56 = vadd.f32 %v5766_v38, %v5736_v21  ;;  %v6607_v23 = vpack.c.bf16 %v7099_v48, %v7099_v48  ;;  %v5740_v42 = vmul.f32 %v7099_v48, %v7099_v48 }
 0x1fb   : > { %5668 = vst.msk [vmem:[%s8893_s11 + $0x20] sm:$0xf] %vm5659_vm8, %v6604_v27  ;;  %v6605_v6 = vpack.c.bf16 %v7100_v22, %v7100_v22  ;;  %v5738_v35 = vmul.f32 %v7100_v22, %v7100_v22 }
 0x1fc   : > { %v5768_v45 = vadd.f32 %v5767_v56, %v5737_v15  ;;  %v5700_v55 = vadd.f32 %v7100_v22, %v5699_v26  ;;  %5671 = vst.msk [vmem:[%s8893_s11 + $0x2c] sm:$0xf] %vm5659_vm8, %v6607_v23 }
 0x1fd   : > { %5669 = vst.msk [vmem:[%s8893_s11 + $0x24] sm:$0xf] %vm5659_vm8, %v6605_v6  ;;  %v7069_v46 = vpop.f32.mrb[12].mxu0 }
 0x1fe   : > { %v5701_v32 = vadd.f32 %v7097_v9, %v5700_v55  ;;  %v5769_v0 = vadd.f32 %v5768_v45, %v5738_v35  ;;  %v7101_v53 = vadd.f32 %v7069_v46, %v8881_v54  ;;  %v5324_v57 = vpop.f32.mrb[13].mxu0 }
 0x1ff   : > { %v7102_v8 = vadd.f32 %v5324_v57, %v8883_v52  ;;  %v7070_v20 = vpop.f32.mrb[14].mxu0 }
 0x200   : > { %v5770_v12 = vadd.f32 %v5769_v0, %v5739_v36  ;;  %v6610_v2 = vpack.c.bf16 %v7101_v53, %v7101_v53  ;;  %v5702_v19 = vadd.f32 %v7099_v48, %v5701_v32  ;;  %v5327_v4 = vpop.f32.mrb[15].mxu0  ;;  %v7103_v51 = vadd.f32 %v7070_v20, %v8885_v11 }
 0x201   : > { %v6608_v28 = vpack.c.bf16 %v7102_v8, %v7102_v8  ;;  %v5741_v49 = vmul.f32 %v7102_v8, %v7102_v8  ;;  %v7104_v1 = vadd.f32 %v5327_v4, %v8887_v7  ;;  %v6937_v41 = vpop.f32.mrb[16].mxu1  ;;  %v5743_v7 = vmul.f32 %v7101_v53, %v7101_v53 }
 0x202   : > { %5674 = vst.msk [vmem:[%s8893_s11 + $0x38] sm:$0xf] %vm5659_vm8, %v6610_v2  ;;  %v5703_v54 = vadd.f32 %v7102_v8, %v5702_v19  ;;  %v5771_v52 = vadd.f32 %v5770_v12, %v5740_v42  ;;  %v2992_v5 = vpop.f32.mrb[17].mxu1  ;;  %v6611_v58 = vpack.c.bf16 %v7103_v51, %v7103_v51  ;;  %v5744_v50 = vmul.f32 %v7103_v51, %v7103_v51 }
 0x203   : > { %5672 = vst.msk [vmem:[%s8893_s11 + $0x30] sm:$0xf] %vm5659_vm8, %v6608_v28  ;;  %v6609_v10 = vpack.c.bf16 %v7104_v1, %v7104_v1  ;;  %v5742_v25 = vmul.f32 %v7104_v1, %v7104_v1  ;;  %v6938_v39 = vpop.f32.mrb[18].mxu1 }
 0x204   : > { %v5772_v47 = vadd.f32 %v5771_v52, %v5741_v49  ;;  %v5704_v13 = vadd.f32 %v7104_v1, %v5703_v54  ;;  %v2995_v44 = vpop.f32.mrb[19].mxu1  ;;  %5675 = vst.msk [vmem:[%s8893_s11 + $0x3c] sm:$0xf] %vm5659_vm8, %v6611_v58 }
 0x205   : > { %5673 = vst.msk [vmem:[%s8893_s11 + $0x34] sm:$0xf] %vm5659_vm8, %v6609_v10  ;;  %v7073_v11 = vpop.f32.mrb[16].mxu0 }
 0x206   : > { %v5705_v29 = vadd.f32 %v7101_v53, %v5704_v13  ;;  %v5773_v24 = vadd.f32 %v5772_v47, %v5742_v25  ;;  %v7105_v30 = vadd.f32 %v7073_v11, %v6937_v41  ;;  %v5340_v62 = vpop.f32.mrb[17].mxu0 }
 0x207   : > { %v7106_v63 = vadd.f32 %v5340_v62, %v2992_v5  ;;  %v7074_v17 = vpop.f32.mrb[18].mxu0 }
 0x208   : > { %v5774_v14 = vadd.f32 %v5773_v24, %v5743_v7  ;;  %v6614_v3 = vpack.c.bf16 %v7105_v30, %v7105_v30  ;;  %v5706_v59 = vadd.f32 %v7103_v51, %v5705_v29  ;;  %v5343_v31 = vpop.f32.mrb[19].mxu0  ;;  %v7107_v33 = vadd.f32 %v7074_v17, %v6938_v39 }
 0x209   : > { %v6612_v40 = vpack.c.bf16 %v7106_v63, %v7106_v63  ;;  %v5745_v16 = vmul.f32 %v7106_v63, %v7106_v63  ;;  %v7108_v9 = vadd.f32 %v5343_v31, %v2995_v44  ;;  %v6941_v18 = vpop.f32.mrb[20].mxu1  ;;  %v5747_v26 = vmul.f32 %v7105_v30, %v7105_v30 }
 0x20a   : > { %5678 = vst.msk [vmem:[%s8893_s11 + $0x48] sm:$0xf] %vm5659_vm8, %v6614_v3  ;;  %v5707_v61 = vadd.f32 %v7106_v63, %v5706_v59  ;;  %v5775_v37 = vadd.f32 %v5774_v14, %v5744_v50  ;;  %v3008_v21 = vpop.f32.mrb[21].mxu1  ;;  %v6615_v38 = vpack.c.bf16 %v7107_v33, %v7107_v33  ;;  %v5748_v46 = vmul.f32 %v7107_v33, %v7107_v33 }
 0x20b   : > { %5676 = vst.msk [vmem:[%s8893_s11 + $0x40] sm:$0xf] %vm5659_vm8, %v6612_v40  ;;  %v6613_v43 = vpack.c.bf16 %v7108_v9, %v7108_v9  ;;  %v5746_v60 = vmul.f32 %v7108_v9, %v7108_v9  ;;  %v6942_v34 = vpop.f32.mrb[22].mxu1 }
 0x20c   : > { %v5776_v27 = vadd.f32 %v5775_v37, %v5745_v16  ;;  %v5708_v15 = vadd.f32 %v7108_v9, %v5707_v61  ;;  %v3011_v48 = vpop.f32.mrb[23].mxu1  ;;  %5679 = vst.msk [vmem:[%s8893_s11 + $0x4c] sm:$0xf] %vm5659_vm8, %v6615_v38 }
 0x20d   : > { %5677 = vst.msk [vmem:[%s8893_s11 + $0x44] sm:$0xf] %vm5659_vm8, %v6613_v43  ;;  %v7077_v22 = vpop.f32.mrb[20].mxu0 }
 0x20e   : > { %v5709_v56 = vadd.f32 %v7105_v30, %v5708_v15  ;;  %v5777_v23 = vadd.f32 %v5776_v27, %v5746_v60  ;;  %v7109_v6 = vadd.f32 %v7077_v22, %v6941_v18  ;;  %v5356_v35 = vpop.f32.mrb[21].mxu0 }
 0x20f   : > { %v7110_v45 = vadd.f32 %v5356_v35, %v3008_v21  ;;  %v7078_v55 = vpop.f32.mrb[22].mxu0 }
 0x210   : > { %v5778_v36 = vadd.f32 %v5777_v23, %v5747_v26  ;;  %v6618_v32 = vpack.c.bf16 %v7109_v6, %v7109_v6  ;;  %v5710_v0 = vadd.f32 %v7107_v33, %v5709_v56  ;;  %v5359_v53 = vpop.f32.mrb[23].mxu0  ;;  %v7111_v20 = vadd.f32 %v7078_v55, %v6942_v34 }
 0x211   : > { %v6616_v57 = vpack.c.bf16 %v7110_v45, %v7110_v45  ;;  %v5749_v8 = vmul.f32 %v7110_v45, %v7110_v45  ;;  %v7112_v42 = vadd.f32 %v5359_v53, %v3011_v48  ;;  %v6945_v12 = vpop.f32.mrb[24].mxu1  ;;  %v5751_v58 = vmul.f32 %v7109_v6, %v7109_v6 }
 0x212   : > { %5682 = vst.msk [vmem:[%s8893_s11 + $0x58] sm:$0xf] %vm5659_vm8, %v6618_v32  ;;  %v5711_v2 = vadd.f32 %v7110_v45, %v5710_v0  ;;  %v5779_v19 = vadd.f32 %v5778_v36, %v5748_v46  ;;  %v3024_v4 = vpop.f32.mrb[25].mxu1  ;;  %v6619_v28 = vpack.c.bf16 %v7111_v20, %v7111_v20  ;;  %v5752_v11 = vmul.f32 %v7111_v20, %v7111_v20 }
 0x213   : > { %5680 = vst.msk [vmem:[%s8893_s11 + $0x50] sm:$0xf] %vm5659_vm8, %v6616_v57  ;;  %v6617_v49 = vpack.c.bf16 %v7112_v42, %v7112_v42  ;;  %v5750_v51 = vmul.f32 %v7112_v42, %v7112_v42  ;;  %v6946_v1 = vpop.f32.mrb[26].mxu1 }
 0x214   : > { %v5780_v41 = vadd.f32 %v5779_v19, %v5749_v8  ;;  %v5712_v54 = vadd.f32 %v7112_v42, %v5711_v2  ;;  %v3027_v52 = vpop.f32.mrb[27].mxu1  ;;  %5683 = vst.msk [vmem:[%s8893_s11 + $0x5c] sm:$0xf] %vm5659_vm8, %v6619_v28 }
 0x215   : > { %5681 = vst.msk [vmem:[%s8893_s11 + $0x54] sm:$0xf] %vm5659_vm8, %v6617_v49  ;;  %v7081_v5 = vpop.f32.mrb[24].mxu0 }
 0x216   : > { %v5713_v10 = vadd.f32 %v7109_v6, %v5712_v54  ;;  %v5781_v25 = vadd.f32 %v5780_v41, %v5750_v51  ;;  %v7113_v39 = vadd.f32 %v7081_v5, %v6945_v12  ;;  %v5372_v47 = vpop.f32.mrb[25].mxu0 }
 0x217   : > { %v7114_v13 = vadd.f32 %v5372_v47, %v3024_v4  ;;  %v7082_v44 = vpop.f32.mrb[26].mxu0 }
 0x218   : > { %v5782_v7 = vadd.f32 %v5781_v25, %v5751_v58  ;;  %v6622_v29 = vpack.c.bf16 %v7113_v39, %v7113_v39  ;;  %v5714_v24 = vadd.f32 %v7111_v20, %v5713_v10  ;;  %v5375_v30 = vpop.f32.mrb[27].mxu0  ;;  %v7115_v17 = vadd.f32 %v7082_v44, %v6946_v1 }
 0x219   : > { %v6620_v62 = vpack.c.bf16 %v7114_v13, %v7114_v13  ;;  %v5753_v63 = vmul.f32 %v7114_v13, %v7114_v13  ;;  %v7116_v50 = vadd.f32 %v5375_v30, %v3027_v52  ;;  %v6949_v14 = vpop.f32.mrb[28].mxu1  ;;  %v5755_v38 = vmul.f32 %v7113_v39, %v7113_v39 }
 0x21a   : > { %5686 = vst.msk [vmem:[%s8893_s11 + $0x68] sm:$0xf] %vm5659_vm8, %v6622_v29  ;;  %v5715_v3 = vadd.f32 %v7114_v13, %v5714_v24  ;;  %v5783_v59 = vadd.f32 %v5782_v7, %v5752_v11  ;;  %v3040_v31 = vpop.f32.mrb[29].mxu1  ;;  %v6623_v40 = vpack.c.bf16 %v7115_v17, %v7115_v17  ;;  %v5756_v22 = vmul.f32 %v7115_v17, %v7115_v17 }
 0x21b   : > { %5684 = vst.msk [vmem:[%s8893_s11 + $0x60] sm:$0xf] %vm5659_vm8, %v6620_v62  ;;  %v6621_v16 = vpack.c.bf16 %v7116_v50, %v7116_v50  ;;  %v5754_v33 = vmul.f32 %v7116_v50, %v7116_v50  ;;  %v6950_v9 = vpop.f32.mrb[30].mxu1 }
 0x21c   : > { %v5784_v18 = vadd.f32 %v5783_v59, %v5753_v63  ;;  %v5716_v61 = vadd.f32 %v7116_v50, %v5715_v3  ;;  %v3043_v37 = vpop.f32.mrb[31].mxu1  ;;  %5687 = vst.msk [vmem:[%s8893_s11 + $0x6c] sm:$0xf] %vm5659_vm8, %v6623_v40 }
 0x21d   : > { %5685 = vst.msk [vmem:[%s8893_s11 + $0x64] sm:$0xf] %vm5659_vm8, %v6621_v16  ;;  %v7085_v21 = vpop.f32.mrb[28].mxu0 }
 0x21e   : > { %v5717_v43 = vadd.f32 %v7113_v39, %v5716_v61  ;;  %v5785_v60 = vadd.f32 %v5784_v18, %v5754_v33  ;;  %v7117_v34 = vadd.f32 %v7085_v21, %v6949_v14  ;;  %v5388_v27 = vpop.f32.mrb[29].mxu0 }
 0x21f   : > { %v7118_v15 = vadd.f32 %v5388_v27, %v3040_v31  ;;  %v7086_v48 = vpop.f32.mrb[30].mxu0 }
 0x220   : > { %v5786_v26 = vadd.f32 %v5785_v60, %v5755_v38  ;;  %v6626_v56 = vpack.c.bf16 %v7117_v34, %v7117_v34  ;;  %v5718_v23 = vadd.f32 %v7115_v17, %v5717_v43  ;;  %v5391_v6 = vpop.f32.mrb[31].mxu0  ;;  %v7119_v55 = vadd.f32 %v7086_v48, %v6950_v9 }
 0x221   : > { %v6624_v35 = vpack.c.bf16 %v7118_v15, %v7118_v15  ;;  %v5757_v45 = vmul.f32 %v7118_v15, %v7118_v15  ;;  %v7120_v46 = vadd.f32 %v5391_v6, %v3043_v37  ;;  %v5759_v42 = vmul.f32 %v7117_v34, %v7117_v34 }
 0x222   : > { %5690 = vst.msk [vmem:[%s8893_s11 + $0x78] sm:$0xf] %vm5659_vm8, %v6626_v56  ;;  %v5719_v36 = vadd.f32 %v7118_v15, %v5718_v23  ;;  %v5787_v32 = vadd.f32 %v5786_v26, %v5756_v22  ;;  %v6627_v0 = vpack.c.bf16 %v7119_v55, %v7119_v55  ;;  %v5760_v19 = vmul.f32 %v7119_v55, %v7119_v55 }
 0x223   : > { %5688 = vst.msk [vmem:[%s8893_s11 + $0x70] sm:$0xf] %vm5659_vm8, %v6624_v35  ;;  %v6625_v53 = vpack.c.bf16 %v7120_v46, %v7120_v46  ;;  %v5758_v57 = vmul.f32 %v7120_v46, %v7120_v46 }
 0x224   : > { %v5788_v8 = vadd.f32 %v5787_v32, %v5757_v45  ;;  %v5720_v20 = vadd.f32 %v7120_v46, %v5719_v36  ;;  %5691 = vst.msk [vmem:[%s8893_s11 + $0x7c] sm:$0xf] %vm5659_vm8, %v6627_v0 }
 0x225   : > { %5689 = vst.msk [vmem:[%s8893_s11 + $0x74] sm:$0xf] %vm5659_vm8, %v6625_v53 }
 0x226   : > { %v5721_v12 = vadd.f32 %v7117_v34, %v5720_v20  ;;  %v5789_v2 = vadd.f32 %v5788_v8, %v5758_v57 }
 0x228   : > { %v5722_v4 = vadd.f32 %v7119_v55, %v5721_v12  ;;  %v5790_v28 = vadd.f32 %v5789_v2, %v5759_v42 }
 0x22a   : > { %v5723_v49 = vrot.slane %v5722_v4, 4  ;;  %v5791_v51 = vadd.f32 %v5790_v28, %v5760_v19 }
 0x22c   : > { %v5724_v1 = vadd.f32 %v5723_v49, %v5722_v4  ;;  %v5792_v41 = vrot.slane %v5791_v51, 4 }
 0x22e   : > { %v5725_v54 = vrot.slane %v5724_v1, 2  ;;  %v5793_v52 = vadd.f32 %v5792_v41, %v5791_v51 }
 0x230   : > { %v5726_v5 = vadd.f32 %v5725_v54, %v5724_v1  ;;  %v5794_v58 = vrot.slane %v5793_v52, 2 }
 0x232   : > { %v5727_v10 = vrot.slane %v5726_v5, 1  ;;  %v5795_v25 = vadd.f32 %v5794_v58, %v5793_v52 }
 0x234   : > { %v5796_v39 = vrot.slane %v5795_v25, 1  ;;  %v5728_v47 = vadd.f32 %v5727_v10, %v5726_v5 }
 0x236   : > { %v5797_v13 = vadd.f32 %v5796_v39, %v5795_v25 }
 0x238   : > { %v5799_v44 = vsel %vm5798_vm9, %v5728_v47, %v5797_v13 }
 0x239   : > { %5800 = vst [vmem:[%s192_s21] sm:$0x3] %v5799_v44 }
 0x23a   : > { %7473 = shalt.err (!%p7470_p5)
}
 0x23b   : > { %s7474_s7 = scalar_lea.hbm %s8971_s28, 32  ;;  %s7478_s10 = scalar_lea.hbm %s9021_s3, 64 }
 0x23c   : > { %p7475_p6 = scmp.ne.s32.totalorder %s8971_s28, %s7474_s7  ;;  %p7479_p10 = scmp.lt.u32.totalorder %s8971_s28, %s9021_s3 }
 0x23d   : > { %p7480_p11 = scmp.lt.u32.totalorder %s7478_s10, %s7474_s7  ;;  %p7482_p13 = scmp.lt.u32.totalorder %s7474_s7, %s8971_s28 }
 0x23e   : > { %p7476_p7 = pnand %p7475_p6, %p7601_p4 }
 0x23f   : > { %p7481_p12 = por %p7480_p11, %p7479_p10 }
 0x240   : > { %p7477_p9 = pneg %p7476_p7 }
 0x241   : > { %p7483_p0 = por %p7482_p13, %p7481_p12 }
 0x243   : > { %p7484_p1 = pnand %p7483_p0, %p7477_p9 }
 0x245   : > { %7487 = shalt.err (!%p7484_p1)
}
 0x246   : > { %7356 = dma.vmem_to_hbm [thread:$0]  (%p7601_p4), %s8973_s23, 32, %s8971_s28, %s5812_s29  }
 0x247 PF: > { %p7362_p2 = scmp.ge.s32.totalorder %s7538_s17, 2  ;;  %s5855_s18 = sand.u32 1, %s7518_s12  }
 0x248   : > { %s5856_s19 = scalar_lea.sflag [#allocation4], %s5855_s18 }
 0x249   : > { %p7359_p3 = pnand %p7362_p2, %p7608_p8 }
 0x24b   : > { %7513 = dma.done.wait (!%p7359_p3), %s5856_s19, 32  }
 0x24c   : > { %7515 = vsyncadd (!%p7359_p3), %s5856_s19, 4294967264  ;;  %s17_s17 = sadd.s32 1, %s7538_s17   ;;  %s9028_s12 = smov %s7522_s13 }
 0x24d   : > { %p14_p5 = scmp.ge.s32.totalorder %s17_s17, 4   ;;  %s9029_s13 = smov %s7526_s14 }
 0x24e   : > { %s9030_s14 = smov %s7614_s25  ;;  %s9031_s15 = smov %s7534_s16 }
 0x24f   : > { %s9032_s16 = smov %s9034_s20  ;;  %16 = sbr.rel (!%p14_p5) target bundleno = 4 (0x4), region = 86 }
 0x256   :  { %5861 = vsyncpa [#allocation4], 1 }
 0x257   :  { %5863 = vsyncpa [#allocation4 + $0x1], 1 }

</bundles_post_ra>
